<compile_context>
chip_gen: v7x
topology: tpu7x:2x2x1
jax: 0.10.0
libtpu: 0.0.40
codegen_flags: <defaults>
</compile_context>

<pallas_src>
import functools

import jax
import jax.numpy as jnp
from jax import lax
from jax.experimental import pallas as pl
from jax.experimental.pallas import tpu as pltpu


# ----------------------------- in-kernel helpers -----------------------------


def _shift_lanes(a, k):
    """Static shift along the flat (lane) axis: out[:, p] = a[:, p + k], 0 OOB."""
    if k == 0:
        return a
    c, sp = a.shape
    if k > 0:
        return jnp.concatenate([a[:, k:], jnp.zeros((c, k), a.dtype)], axis=1)
    return jnp.concatenate([jnp.zeros((c, -k), a.dtype), a[:, : sp + k]], axis=1)


def _conv3x3_flat(src, w_tap, b_col, taps):
    """3x3 'same' conv in transposed orientation over the padded flat axis.

    src:   (cin, SP) activation (SP = (H+2)*(W+2), zero at padding pixels)
    w_tap: callable t -> (cout, cin) weight matrix for tap t (t = ky*3 + kx)
    b_col: (cout, 1) bias column
    taps:  9 static flat offsets (ky-1)*(W+2) + (kx-1)
    returns (cout, SP) float32 (garbage at padding pixels; caller masks/slices)
    """
    acc = None
    for t, k in enumerate(taps):
        contrib = jnp.dot(w_tap(t), _shift_lanes(src, k),
                          preferred_element_type=jnp.float32)
        acc = contrib if acc is None else acc + contrib
    return acc + b_col.astype(jnp.float32)


# ------------------------------- fused kernel --------------------------------


def _conv_block_kernel(x_ref, mask_ref, w1_ref, b1_ref, wh_ref, bh_ref,
                       w2_ref, b2_ref, o_ref, act_ref, *, n_hidden, wp):
    # x_ref   : (1, C, SP)    zero-padded, flattened NCHW input
    # mask_ref: (1, SP)       1.0 at interior pixels, 0.0 at padding pixels
    # w1_ref  : (9, f, C)     conv1 weights, tap-major, (cout, cin) per tap
    # b1_ref  : (f, 1)
    # wh_ref  : (L, 9, f, f)  hidden conv weights (dummy, never read, if L == 0)
    # bh_ref  : (L, f, 1)
    # w2_ref  : (9, C, f)     conv2 weights
    # b2_ref  : (C, 1)
    # o_ref   : (1, C, SP)    padded-flat output (padding pixels hold garbage;
    #                         the wrapper slices them off)
    # act_ref : VMEM (2, f, SP) ping-pong activations (lane-dense)
    taps = tuple((ky - 1) * wp + (kx - 1) for ky in range(3) for kx in range(3))
    mask = mask_ref[...]

    # conv1 + ReLU  (C -> f); padding pixels re-zeroed by the fused mask.
    a = _conv3x3_flat(x_ref[0].astype(jnp.float32),
                      lambda t: w1_ref[t], b1_ref[...], taps)
    act_ref[0] = jnp.maximum(a, 0.0) * mask

    # hidden convs + ReLU (f -> f), ping-pong between the two VMEM buffers.
    src = 0
    for l in range(n_hidden):
        dst = 1 - src
        a = _conv3x3_flat(act_ref[src], lambda t, l=l: wh_ref[l, t],
                          bh_ref[l], taps)
        act_ref[dst] = jnp.maximum(a, 0.0) * mask
        src = dst

    # conv2 (f -> C) in transposed orientation -> lane-dense (C, SP) result.
    # Residual re-reads the input ref (no long live range); store is lane-dense.
    a = _conv3x3_flat(act_ref[src], lambda t: w2_ref[t], b2_ref[...], taps)
    o_ref[0] = (a + x_ref[0].astype(jnp.float32)).astype(o_ref.dtype)


# --------------------------------- wrapper ------------------------------------


def conv_block_forward(params, x_nchw):
    """Forward of convBlock. Input/output NCHW (same as the PyTorch module)."""
    N, C, H, W = x_nchw.shape
    w1, b1 = params["conv1"]
    f = w1.shape[-1]
    hidden = params["hidden"]
    L = len(hidden)
    w2, b2 = params["conv2"]

    WP = W + 2
    SP = (H + 2) * WP

    # Boundary glue is a lane-dense pad + free reshape (no transposes): fold
    # (H, W) into one zero-padded flat spatial axis so SP is the lane dim.
    x_pf = jnp.pad(x_nchw, ((0, 0), (0, 0), (1, 1), (1, 1))).reshape(N, C, SP)

    # Interior-pixel mask over the padded flat axis (built once, outside).
    row = jnp.arange(H + 2, dtype=jnp.int32)[:, None]
    col = jnp.arange(WP, dtype=jnp.int32)[None, :]
    interior = (row >= 1) & (row <= H) & (col >= 1) & (col <= W)
    mask = interior.astype(jnp.float32).reshape(1, SP)

    def to_taps(w):  # (3, 3, cin, cout) -> (9, cout, cin), tap t = ky*3 + kx
        cout, cin = w.shape[3], w.shape[2]
        return jnp.transpose(w, (0, 1, 3, 2)).reshape(9, cout, cin)

    w1t, b1c = to_taps(w1), b1.reshape(f, 1)
    if L > 0:
        wht = jnp.stack([to_taps(w) for (w, _) in hidden])        # (L, 9, f, f)
        bhc = jnp.stack([b.reshape(f, 1) for (_, b) in hidden])   # (L, f, 1)
    else:  # dummy (never read) so the kernel signature stays fixed
        wht = jnp.zeros((1, 9, f, f), jnp.float32)
        bhc = jnp.zeros((1, f, 1), jnp.float32)
    Ls = wht.shape[0]
    w2t, b2c = to_taps(w2), b2.reshape(C, 1)

    kernel = functools.partial(_conv_block_kernel, n_hidden=L, wp=WP)

    # VMEM budget from the real (8,128)-padded footprint, capped for v7x.
    def _ru(v, m):
        return (v + m - 1) // m * m

    def _buf(shape):  # bytes of one f32 buffer after (8, 128) tile padding
        lead = 1
        for d in shape[:-2]:
            lead *= d
        return lead * _ru(shape[-2], 8) * _ru(shape[-1], 128) * 4

    footprint = (
        2 * 2 * _buf((C, SP))                              # dbuf x / out blocks
        + 2 * _buf((1, SP))                                # mask
        + 2 * (_buf((9, f, C)) + _buf((f, 1)))             # conv1
        + 2 * (_buf((Ls, 9, f, f)) + _buf((Ls, f, 1)))     # hidden
        + 2 * (_buf((9, C, f)) + _buf((C, 1)))             # conv2
        + _buf((2, f, SP))                                 # act ping-pong
        + 4 * _buf((f, SP))                                # temporaries headroom
    )
    vmem_limit = int(min(max(footprint + (8 << 20), 32 << 20), 48 << 20))

    out_pf = pl.pallas_call(
        kernel,
        out_shape=jax.ShapeDtypeStruct((N, C, SP), x_nchw.dtype),
        grid_spec=pltpu.PrefetchScalarGridSpec(
            num_scalar_prefetch=0,
            grid=(N,),
            in_specs=[
                pl.BlockSpec((1, C, SP), lambda n: (n, 0, 0)),
                pl.BlockSpec((1, SP), lambda n: (0, 0)),
                pl.BlockSpec((9, f, C), lambda n: (0, 0, 0)),
                pl.BlockSpec((f, 1), lambda n: (0, 0)),
                pl.BlockSpec((Ls, 9, f, f), lambda n: (0, 0, 0, 0)),
                pl.BlockSpec((Ls, f, 1), lambda n: (0, 0, 0)),
                pl.BlockSpec((9, C, f), lambda n: (0, 0, 0)),
                pl.BlockSpec((C, 1), lambda n: (0, 0)),
            ],
            out_specs=pl.BlockSpec((1, C, SP), lambda n: (n, 0, 0)),
            scratch_shapes=[pltpu.VMEM((2, f, SP), jnp.float32)],
        ),
        compiler_params=pltpu.CompilerParams(
            dimension_semantics=("parallel",),
            vmem_limit_bytes=vmem_limit,
        ),
    )(x_pf, mask, w1t, b1c, wht, bhc, w2t, b2c)

    # Un-pad: drop the halo ring (cheap minor-dim slice; no transpose).
    return out_pf.reshape(N, C, H + 2, WP)[:, :, 1:H + 1, 1:W + 1]


# ------------------------------- parameter init -------------------------------


def init_conv_block_params(key, indim=2, iConvNum=5, f=64):
    """Deterministic parameter init. Weights stored HWIO (3, 3, Cin, Cout)."""
    params = {}
    k = key

    def _init(k, cin, cout):
        kw, kb, knext = jax.random.split(k, 3)
        scale = 1.0 / jnp.sqrt(cin * 9.0)
        w = jax.random.uniform(kw, (3, 3, cin, cout), jnp.float32, -scale, scale)
        b = jax.random.uniform(kb, (cout,), jnp.float32, -scale, scale)
        return (w, b), knext

    params["conv1"], k = _init(k, indim, f)
    hidden = []
    for _ in range(1, iConvNum - 1):
        p, k = _init(k, f, f)
        hidden.append(p)
    params["hidden"] = hidden
    params["conv2"], k = _init(k, f, indim)
    return params


# --------------------------- reference (plain JAX) ----------------------------


def _ref_conv(x_nhwc, w, b):
    y = lax.conv_general_dilated(
        x_nhwc, w, window_strides=(1, 1), padding="SAME",
        dimension_numbers=("NHWC", "HWIO", "NHWC"),
        precision=lax.Precision.HIGHEST,
    )
    return y + b


def conv_block_forward_ref(params, x_nchw):
    x1 = jnp.transpose(x_nchw, (0, 2, 3, 1))
    w1, b1 = params["conv1"]
    x2 = jax.nn.relu(_ref_conv(x1, w1, b1))
    for (w, b) in params["hidden"]:
        x2 = jax.nn.relu(_ref_conv(x2, w, b))
    w2, b2 = params["conv2"]
    x4 = _ref_conv(x2, w2, b2) + x1
    return jnp.transpose(x4, (0, 3, 1, 2))


# ----------------------------------- main --------------------------------------

if __name__ == "__main__":
    indim, iConvNum, f = 2, 5, 32  # small f for the example; module default is 64
    N, H, W = 2, 16, 16

    key = jax.random.PRNGKey(0)
    kp, kx = jax.random.split(key)
    params = init_conv_block_params(kp, indim=indim, iConvNum=iConvNum, f=f)
    x = jax.random.normal(kx, (N, indim, H, W), jnp.float32)  # NCHW like PyTorch

    out = jax.block_until_ready(conv_block_forward(params, x))
    ref = jax.block_until_ready(conv_block_forward_ref(params, x))

    assert out.shape == (N, indim, H, W)
    assert jnp.allclose(out, ref, atol=1e-3, rtol=1e-3), "mismatch vs reference"

    print("KERNEL_OK")
</pallas_src>

<mosaic_0001>
module attributes {stable_mosaic.version = 11 : i64} {
  func.func @_conv_block_kernel(%arg0: i32, %arg1: memref<1x2x324xf32, #tpu.memory_space<vmem>>, %arg2: memref<1x324xf32, #tpu.memory_space<vmem>>, %arg3: memref<9x32x2xf32, #tpu.memory_space<vmem>>, %arg4: memref<32x1xf32, #tpu.memory_space<vmem>>, %arg5: memref<3x9x32x32xf32, #tpu.memory_space<vmem>>, %arg6: memref<3x32x1xf32, #tpu.memory_space<vmem>>, %arg7: memref<9x2x32xf32, #tpu.memory_space<vmem>>, %arg8: memref<2x1xf32, #tpu.memory_space<vmem>>, %arg9: memref<1x2x324xf32, #tpu.memory_space<vmem>>, %arg10: memref<2x32x324xf32, #tpu.memory_space<vmem>>) attributes {dimension_semantics = [#tpu.dimension_semantics<parallel>], iteration_bounds = array<i64: 2>, scalar_prefetch = 0 : i64, scratch_operands = 1 : i64, tpu.core_type = #tpu.core_type<tc>, window_params = [{transform_indices = @transform_0, window_bounds = array<i64: 1, 2, 324>}, {pipeline_mode = #tpu.pipeline_mode<synchronous>, transform_indices = @transform_1, window_bounds = array<i64: 1, 324>}, {pipeline_mode = #tpu.pipeline_mode<synchronous>, transform_indices = @transform_2, window_bounds = array<i64: 9, 32, 2>}, {pipeline_mode = #tpu.pipeline_mode<synchronous>, transform_indices = @transform_3, window_bounds = array<i64: 32, 1>}, {pipeline_mode = #tpu.pipeline_mode<synchronous>, transform_indices = @transform_4, window_bounds = array<i64: 3, 9, 32, 32>}, {pipeline_mode = #tpu.pipeline_mode<synchronous>, transform_indices = @transform_5, window_bounds = array<i64: 3, 32, 1>}, {pipeline_mode = #tpu.pipeline_mode<synchronous>, transform_indices = @transform_6, window_bounds = array<i64: 9, 2, 32>}, {pipeline_mode = #tpu.pipeline_mode<synchronous>, transform_indices = @transform_7, window_bounds = array<i64: 2, 1>}, {transform_indices = @transform_8, window_bounds = array<i64: 1, 2, 324>}]} {
    %c0 = arith.constant 0 : index
    %c0_0 = arith.constant 0 : index
    %0 = vector.load %arg2[%c0, %c0_0] : memref<1x324xf32, #tpu.memory_space<vmem>>, vector<1x324xf32>
    %c0_1 = arith.constant 0 : index
    %c0_2 = arith.constant 0 : index
    %c0_3 = arith.constant 0 : index
    %1 = vector.load %arg1[%c0_1, %c0_2, %c0_3] : memref<1x2x324xf32, #tpu.memory_space<vmem>>, vector<1x2x324xf32>
    %2 = vector.shape_cast %1 : vector<1x2x324xf32> to vector<2x324xf32>
    %c0_4 = arith.constant 0 : index
    %c0_5 = arith.constant 0 : index
    %3 = vector.load %arg4[%c0_4, %c0_5] : memref<32x1xf32, #tpu.memory_space<vmem>>, vector<32x1xf32>
    %c0_6 = arith.constant 0 : index
    %c0_7 = arith.constant 0 : index
    %c0_8 = arith.constant 0 : index
    %4 = vector.load %arg3[%c0_6, %c0_7, %c0_8] : memref<9x32x2xf32, #tpu.memory_space<vmem>>, vector<1x32x2xf32>
    %5 = vector.shape_cast %4 : vector<1x32x2xf32> to vector<32x2xf32>
    %cst = arith.constant 0.000000e+00 : f32
    %6 = vector.broadcast %cst : f32 to vector<2x19xf32>
    %7 = vector.extract_strided_slice %2 {offsets = [0, 0], sizes = [2, 305], strides = [1, 1]} : vector<2x324xf32> to vector<2x305xf32>
    %8 = tpu.concatenate %6, %7 in 1 : vector<2x19xf32>, vector<2x305xf32> -> vector<2x324xf32>
    %cst_9 = arith.constant dense<0.000000e+00> : vector<32x324xf32>
    %9 = tpu.matmul %5, %8, %cst_9 {dimension_numbers = #tpu.dot_dimension_numbers<[1], [0], [0], [1], [0, 0, 1, 1], [], []>} : vector<32x2xf32>, vector<2x324xf32>, vector<32x324xf32> -> vector<32x324xf32>
    %c1 = arith.constant 1 : index
    %c0_10 = arith.constant 0 : index
    %c0_11 = arith.constant 0 : index
    %10 = vector.load %arg3[%c1, %c0_10, %c0_11] : memref<9x32x2xf32, #tpu.memory_space<vmem>>, vector<1x32x2xf32>
    %11 = vector.shape_cast %10 : vector<1x32x2xf32> to vector<32x2xf32>
    %cst_12 = arith.constant 0.000000e+00 : f32
    %12 = vector.broadcast %cst_12 : f32 to vector<2x18xf32>
    %13 = vector.extract_strided_slice %2 {offsets = [0, 0], sizes = [2, 306], strides = [1, 1]} : vector<2x324xf32> to vector<2x306xf32>
    %14 = tpu.concatenate %12, %13 in 1 : vector<2x18xf32>, vector<2x306xf32> -> vector<2x324xf32>
    %cst_13 = arith.constant dense<0.000000e+00> : vector<32x324xf32>
    %15 = tpu.matmul %11, %14, %cst_13 {dimension_numbers = #tpu.dot_dimension_numbers<[1], [0], [0], [1], [0, 0, 1, 1], [], []>} : vector<32x2xf32>, vector<2x324xf32>, vector<32x324xf32> -> vector<32x324xf32>
    %16 = arith.addf %9, %15 : vector<32x324xf32>
    %c2 = arith.constant 2 : index
    %c0_14 = arith.constant 0 : index
    %c0_15 = arith.constant 0 : index
    %17 = vector.load %arg3[%c2, %c0_14, %c0_15] : memref<9x32x2xf32, #tpu.memory_space<vmem>>, vector<1x32x2xf32>
    %18 = vector.shape_cast %17 : vector<1x32x2xf32> to vector<32x2xf32>
    %cst_16 = arith.constant 0.000000e+00 : f32
    %19 = vector.broadcast %cst_16 : f32 to vector<2x17xf32>
    %20 = vector.extract_strided_slice %2 {offsets = [0, 0], sizes = [2, 307], strides = [1, 1]} : vector<2x324xf32> to vector<2x307xf32>
    %21 = tpu.concatenate %19, %20 in 1 : vector<2x17xf32>, vector<2x307xf32> -> vector<2x324xf32>
    %cst_17 = arith.constant dense<0.000000e+00> : vector<32x324xf32>
    %22 = tpu.matmul %18, %21, %cst_17 {dimension_numbers = #tpu.dot_dimension_numbers<[1], [0], [0], [1], [0, 0, 1, 1], [], []>} : vector<32x2xf32>, vector<2x324xf32>, vector<32x324xf32> -> vector<32x324xf32>
    %23 = arith.addf %16, %22 : vector<32x324xf32>
    %c3 = arith.constant 3 : index
    %c0_18 = arith.constant 0 : index
    %c0_19 = arith.constant 0 : index
    %24 = vector.load %arg3[%c3, %c0_18, %c0_19] : memref<9x32x2xf32, #tpu.memory_space<vmem>>, vector<1x32x2xf32>
    %25 = vector.shape_cast %24 : vector<1x32x2xf32> to vector<32x2xf32>
    %cst_20 = arith.constant 0.000000e+00 : f32
    %26 = vector.broadcast %cst_20 : f32 to vector<2x1xf32>
    %27 = vector.extract_strided_slice %2 {offsets = [0, 0], sizes = [2, 323], strides = [1, 1]} : vector<2x324xf32> to vector<2x323xf32>
    %28 = tpu.concatenate %26, %27 in 1 : vector<2x1xf32>, vector<2x323xf32> -> vector<2x324xf32>
    %cst_21 = arith.constant dense<0.000000e+00> : vector<32x324xf32>
    %29 = tpu.matmul %25, %28, %cst_21 {dimension_numbers = #tpu.dot_dimension_numbers<[1], [0], [0], [1], [0, 0, 1, 1], [], []>} : vector<32x2xf32>, vector<2x324xf32>, vector<32x324xf32> -> vector<32x324xf32>
    %30 = arith.addf %23, %29 : vector<32x324xf32>
    %c4 = arith.constant 4 : index
    %c0_22 = arith.constant 0 : index
    %c0_23 = arith.constant 0 : index
    %31 = vector.load %arg3[%c4, %c0_22, %c0_23] : memref<9x32x2xf32, #tpu.memory_space<vmem>>, vector<1x32x2xf32>
    %32 = vector.shape_cast %31 : vector<1x32x2xf32> to vector<32x2xf32>
    %cst_24 = arith.constant dense<0.000000e+00> : vector<32x324xf32>
    %33 = tpu.matmul %32, %2, %cst_24 {dimension_numbers = #tpu.dot_dimension_numbers<[1], [0], [0], [1], [0, 0, 1, 1], [], []>} : vector<32x2xf32>, vector<2x324xf32>, vector<32x324xf32> -> vector<32x324xf32>
    %34 = arith.addf %30, %33 : vector<32x324xf32>
    %c5 = arith.constant 5 : index
    %c0_25 = arith.constant 0 : index
    %c0_26 = arith.constant 0 : index
    %35 = vector.load %arg3[%c5, %c0_25, %c0_26] : memref<9x32x2xf32, #tpu.memory_space<vmem>>, vector<1x32x2xf32>
    %36 = vector.shape_cast %35 : vector<1x32x2xf32> to vector<32x2xf32>
    %37 = vector.extract_strided_slice %2 {offsets = [0, 1], sizes = [2, 323], strides = [1, 1]} : vector<2x324xf32> to vector<2x323xf32>
    %cst_27 = arith.constant 0.000000e+00 : f32
    %38 = vector.broadcast %cst_27 : f32 to vector<2x1xf32>
    %39 = tpu.concatenate %37, %38 in 1 : vector<2x323xf32>, vector<2x1xf32> -> vector<2x324xf32>
    %cst_28 = arith.constant dense<0.000000e+00> : vector<32x324xf32>
    %40 = tpu.matmul %36, %39, %cst_28 {dimension_numbers = #tpu.dot_dimension_numbers<[1], [0], [0], [1], [0, 0, 1, 1], [], []>} : vector<32x2xf32>, vector<2x324xf32>, vector<32x324xf32> -> vector<32x324xf32>
    %41 = arith.addf %34, %40 : vector<32x324xf32>
    %c6 = arith.constant 6 : index
    %c0_29 = arith.constant 0 : index
    %c0_30 = arith.constant 0 : index
    %42 = vector.load %arg3[%c6, %c0_29, %c0_30] : memref<9x32x2xf32, #tpu.memory_space<vmem>>, vector<1x32x2xf32>
    %43 = vector.shape_cast %42 : vector<1x32x2xf32> to vector<32x2xf32>
    %44 = vector.extract_strided_slice %2 {offsets = [0, 17], sizes = [2, 307], strides = [1, 1]} : vector<2x324xf32> to vector<2x307xf32>
    %cst_31 = arith.constant 0.000000e+00 : f32
    %45 = vector.broadcast %cst_31 : f32 to vector<2x17xf32>
    %46 = tpu.concatenate %44, %45 in 1 : vector<2x307xf32>, vector<2x17xf32> -> vector<2x324xf32>
    %cst_32 = arith.constant dense<0.000000e+00> : vector<32x324xf32>
    %47 = tpu.matmul %43, %46, %cst_32 {dimension_numbers = #tpu.dot_dimension_numbers<[1], [0], [0], [1], [0, 0, 1, 1], [], []>} : vector<32x2xf32>, vector<2x324xf32>, vector<32x324xf32> -> vector<32x324xf32>
    %48 = arith.addf %41, %47 : vector<32x324xf32>
    %c7 = arith.constant 7 : index
    %c0_33 = arith.constant 0 : index
    %c0_34 = arith.constant 0 : index
    %49 = vector.load %arg3[%c7, %c0_33, %c0_34] : memref<9x32x2xf32, #tpu.memory_space<vmem>>, vector<1x32x2xf32>
    %50 = vector.shape_cast %49 : vector<1x32x2xf32> to vector<32x2xf32>
    %51 = vector.extract_strided_slice %2 {offsets = [0, 18], sizes = [2, 306], strides = [1, 1]} : vector<2x324xf32> to vector<2x306xf32>
    %cst_35 = arith.constant 0.000000e+00 : f32
    %52 = vector.broadcast %cst_35 : f32 to vector<2x18xf32>
    %53 = tpu.concatenate %51, %52 in 1 : vector<2x306xf32>, vector<2x18xf32> -> vector<2x324xf32>
    %cst_36 = arith.constant dense<0.000000e+00> : vector<32x324xf32>
    %54 = tpu.matmul %50, %53, %cst_36 {dimension_numbers = #tpu.dot_dimension_numbers<[1], [0], [0], [1], [0, 0, 1, 1], [], []>} : vector<32x2xf32>, vector<2x324xf32>, vector<32x324xf32> -> vector<32x324xf32>
    %55 = arith.addf %48, %54 : vector<32x324xf32>
    %c8 = arith.constant 8 : index
    %c0_37 = arith.constant 0 : index
    %c0_38 = arith.constant 0 : index
    %56 = vector.load %arg3[%c8, %c0_37, %c0_38] : memref<9x32x2xf32, #tpu.memory_space<vmem>>, vector<1x32x2xf32>
    %57 = vector.shape_cast %56 : vector<1x32x2xf32> to vector<32x2xf32>
    %58 = vector.extract_strided_slice %2 {offsets = [0, 19], sizes = [2, 305], strides = [1, 1]} : vector<2x324xf32> to vector<2x305xf32>
    %cst_39 = arith.constant 0.000000e+00 : f32
    %59 = vector.broadcast %cst_39 : f32 to vector<2x19xf32>
    %60 = tpu.concatenate %58, %59 in 1 : vector<2x305xf32>, vector<2x19xf32> -> vector<2x324xf32>
    %cst_40 = arith.constant dense<0.000000e+00> : vector<32x324xf32>
    %61 = tpu.matmul %57, %60, %cst_40 {dimension_numbers = #tpu.dot_dimension_numbers<[1], [0], [0], [1], [0, 0, 1, 1], [], []>} : vector<32x2xf32>, vector<2x324xf32>, vector<32x324xf32> -> vector<32x324xf32>
    %62 = arith.addf %55, %61 : vector<32x324xf32>
    %63 = vector.broadcast %3 : vector<32x1xf32> to vector<32x324xf32>
    %64 = arith.addf %62, %63 : vector<32x324xf32>
    %cst_41 = arith.constant 0.000000e+00 : f32
    %65 = vector.broadcast %cst_41 : f32 to vector<32x324xf32>
    %66 = arith.maximumf %64, %65 : vector<32x324xf32>
    %67 = vector.broadcast %0 : vector<1x324xf32> to vector<32x324xf32>
    %68 = arith.mulf %66, %67 : vector<32x324xf32>
    %c0_42 = arith.constant 0 : index
    %c0_43 = arith.constant 0 : index
    %c0_44 = arith.constant 0 : index
    %69 = vector.load %arg10[%c0_42, %c0_43, %c0_44] : memref<2x32x324xf32, #tpu.memory_space<vmem>>, vector<1x32x324xf32>
    %70 = vector.shape_cast %69 : vector<1x32x324xf32> to vector<32x324xf32>
    %71 = vector.shape_cast %68 : vector<32x324xf32> to vector<1x32x324xf32>
    tpu.vector_store %arg10[%c0_42, %c0_43, %c0_44], %71 {strides = array<i32>} : memref<2x32x324xf32, #tpu.memory_space<vmem>>, vector<1x32x324xf32>,
    %c0_45 = arith.constant 0 : index
    %c0_46 = arith.constant 0 : index
    %c0_47 = arith.constant 0 : index
    %72 = vector.load %arg10[%c0_45, %c0_46, %c0_47] : memref<2x32x324xf32, #tpu.memory_space<vmem>>, vector<1x32x324xf32>
    %73 = vector.shape_cast %72 : vector<1x32x324xf32> to vector<32x324xf32>
    %c0_48 = arith.constant 0 : index
    %c0_49 = arith.constant 0 : index
    %c0_50 = arith.constant 0 : index
    %74 = vector.load %arg6[%c0_48, %c0_49, %c0_50] : memref<3x32x1xf32, #tpu.memory_space<vmem>>, vector<1x32x1xf32>
    %75 = vector.shape_cast %74 : vector<1x32x1xf32> to vector<32x1xf32>
    %c0_51 = arith.constant 0 : index
    %c0_52 = arith.constant 0 : index
    %c0_53 = arith.constant 0 : index
    %c0_54 = arith.constant 0 : index
    %76 = vector.load %arg5[%c0_51, %c0_52, %c0_53, %c0_54] : memref<3x9x32x32xf32, #tpu.memory_space<vmem>>, vector<1x1x32x32xf32>
    %77 = vector.shape_cast %76 : vector<1x1x32x32xf32> to vector<32x32xf32>
    %cst_55 = arith.constant 0.000000e+00 : f32
    %78 = vector.broadcast %cst_55 : f32 to vector<32x19xf32>
    %79 = vector.extract_strided_slice %73 {offsets = [0, 0], sizes = [32, 305], strides = [1, 1]} : vector<32x324xf32> to vector<32x305xf32>
    %80 = tpu.concatenate %78, %79 in 1 : vector<32x19xf32>, vector<32x305xf32> -> vector<32x324xf32>
    %cst_56 = arith.constant dense<0.000000e+00> : vector<32x324xf32>
    %81 = tpu.matmul %77, %80, %cst_56 {dimension_numbers = #tpu.dot_dimension_numbers<[1], [0], [0], [1], [0, 0, 1, 1], [], []>} : vector<32x32xf32>, vector<32x324xf32>, vector<32x324xf32> -> vector<32x324xf32>
    %c0_57 = arith.constant 0 : index
    %c1_58 = arith.constant 1 : index
    %c0_59 = arith.constant 0 : index
    %c0_60 = arith.constant 0 : index
    %82 = vector.load %arg5[%c0_57, %c1_58, %c0_59, %c0_60] : memref<3x9x32x32xf32, #tpu.memory_space<vmem>>, vector<1x1x32x32xf32>
    %83 = vector.shape_cast %82 : vector<1x1x32x32xf32> to vector<32x32xf32>
    %cst_61 = arith.constant 0.000000e+00 : f32
    %84 = vector.broadcast %cst_61 : f32 to vector<32x18xf32>
    %85 = vector.extract_strided_slice %73 {offsets = [0, 0], sizes = [32, 306], strides = [1, 1]} : vector<32x324xf32> to vector<32x306xf32>
    %86 = tpu.concatenate %84, %85 in 1 : vector<32x18xf32>, vector<32x306xf32> -> vector<32x324xf32>
    %cst_62 = arith.constant dense<0.000000e+00> : vector<32x324xf32>
    %87 = tpu.matmul %83, %86, %cst_62 {dimension_numbers = #tpu.dot_dimension_numbers<[1], [0], [0], [1], [0, 0, 1, 1], [], []>} : vector<32x32xf32>, vector<32x324xf32>, vector<32x324xf32> -> vector<32x324xf32>
    %88 = arith.addf %81, %87 : vector<32x324xf32>
    %c0_63 = arith.constant 0 : index
    %c2_64 = arith.constant 2 : index
    %c0_65 = arith.constant 0 : index
    %c0_66 = arith.constant 0 : index
    %89 = vector.load %arg5[%c0_63, %c2_64, %c0_65, %c0_66] : memref<3x9x32x32xf32, #tpu.memory_space<vmem>>, vector<1x1x32x32xf32>
    %90 = vector.shape_cast %89 : vector<1x1x32x32xf32> to vector<32x32xf32>
    %cst_67 = arith.constant 0.000000e+00 : f32
    %91 = vector.broadcast %cst_67 : f32 to vector<32x17xf32>
    %92 = vector.extract_strided_slice %73 {offsets = [0, 0], sizes = [32, 307], strides = [1, 1]} : vector<32x324xf32> to vector<32x307xf32>
    %93 = tpu.concatenate %91, %92 in 1 : vector<32x17xf32>, vector<32x307xf32> -> vector<32x324xf32>
    %cst_68 = arith.constant dense<0.000000e+00> : vector<32x324xf32>
    %94 = tpu.matmul %90, %93, %cst_68 {dimension_numbers = #tpu.dot_dimension_numbers<[1], [0], [0], [1], [0, 0, 1, 1], [], []>} : vector<32x32xf32>, vector<32x324xf32>, vector<32x324xf32> -> vector<32x324xf32>
    %95 = arith.addf %88, %94 : vector<32x324xf32>
    %c0_69 = arith.constant 0 : index
    %c3_70 = arith.constant 3 : index
    %c0_71 = arith.constant 0 : index
    %c0_72 = arith.constant 0 : index
    %96 = vector.load %arg5[%c0_69, %c3_70, %c0_71, %c0_72] : memref<3x9x32x32xf32, #tpu.memory_space<vmem>>, vector<1x1x32x32xf32>
    %97 = vector.shape_cast %96 : vector<1x1x32x32xf32> to vector<32x32xf32>
    %cst_73 = arith.constant 0.000000e+00 : f32
    %98 = vector.broadcast %cst_73 : f32 to vector<32x1xf32>
    %99 = vector.extract_strided_slice %73 {offsets = [0, 0], sizes = [32, 323], strides = [1, 1]} : vector<32x324xf32> to vector<32x323xf32>
    %100 = tpu.concatenate %98, %99 in 1 : vector<32x1xf32>, vector<32x323xf32> -> vector<32x324xf32>
    %cst_74 = arith.constant dense<0.000000e+00> : vector<32x324xf32>
    %101 = tpu.matmul %97, %100, %cst_74 {dimension_numbers = #tpu.dot_dimension_numbers<[1], [0], [0], [1], [0, 0, 1, 1], [], []>} : vector<32x32xf32>, vector<32x324xf32>, vector<32x324xf32> -> vector<32x324xf32>
    %102 = arith.addf %95, %101 : vector<32x324xf32>
    %c0_75 = arith.constant 0 : index
    %c4_76 = arith.constant 4 : index
    %c0_77 = arith.constant 0 : index
    %c0_78 = arith.constant 0 : index
    %103 = vector.load %arg5[%c0_75, %c4_76, %c0_77, %c0_78] : memref<3x9x32x32xf32, #tpu.memory_space<vmem>>, vector<1x1x32x32xf32>
    %104 = vector.shape_cast %103 : vector<1x1x32x32xf32> to vector<32x32xf32>
    %cst_79 = arith.constant dense<0.000000e+00> : vector<32x324xf32>
    %105 = tpu.matmul %104, %73, %cst_79 {dimension_numbers = #tpu.dot_dimension_numbers<[1], [0], [0], [1], [0, 0, 1, 1], [], []>} : vector<32x32xf32>, vector<32x324xf32>, vector<32x324xf32> -> vector<32x324xf32>
    %106 = arith.addf %102, %105 : vector<32x324xf32>
    %c0_80 = arith.constant 0 : index
    %c5_81 = arith.constant 5 : index
    %c0_82 = arith.constant 0 : index
    %c0_83 = arith.constant 0 : index
    %107 = vector.load %arg5[%c0_80, %c5_81, %c0_82, %c0_83] : memref<3x9x32x32xf32, #tpu.memory_space<vmem>>, vector<1x1x32x32xf32>
    %108 = vector.shape_cast %107 : vector<1x1x32x32xf32> to vector<32x32xf32>
    %109 = vector.extract_strided_slice %73 {offsets = [0, 1], sizes = [32, 323], strides = [1, 1]} : vector<32x324xf32> to vector<32x323xf32>
    %cst_84 = arith.constant 0.000000e+00 : f32
    %110 = vector.broadcast %cst_84 : f32 to vector<32x1xf32>
    %111 = tpu.concatenate %109, %110 in 1 : vector<32x323xf32>, vector<32x1xf32> -> vector<32x324xf32>
    %cst_85 = arith.constant dense<0.000000e+00> : vector<32x324xf32>
    %112 = tpu.matmul %108, %111, %cst_85 {dimension_numbers = #tpu.dot_dimension_numbers<[1], [0], [0], [1], [0, 0, 1, 1], [], []>} : vector<32x32xf32>, vector<32x324xf32>, vector<32x324xf32> -> vector<32x324xf32>
    %113 = arith.addf %106, %112 : vector<32x324xf32>
    %c0_86 = arith.constant 0 : index
    %c6_87 = arith.constant 6 : index
    %c0_88 = arith.constant 0 : index
    %c0_89 = arith.constant 0 : index
    %114 = vector.load %arg5[%c0_86, %c6_87, %c0_88, %c0_89] : memref<3x9x32x32xf32, #tpu.memory_space<vmem>>, vector<1x1x32x32xf32>
    %115 = vector.shape_cast %114 : vector<1x1x32x32xf32> to vector<32x32xf32>
    %116 = vector.extract_strided_slice %73 {offsets = [0, 17], sizes = [32, 307], strides = [1, 1]} : vector<32x324xf32> to vector<32x307xf32>
    %cst_90 = arith.constant 0.000000e+00 : f32
    %117 = vector.broadcast %cst_90 : f32 to vector<32x17xf32>
    %118 = tpu.concatenate %116, %117 in 1 : vector<32x307xf32>, vector<32x17xf32> -> vector<32x324xf32>
    %cst_91 = arith.constant dense<0.000000e+00> : vector<32x324xf32>
    %119 = tpu.matmul %115, %118, %cst_91 {dimension_numbers = #tpu.dot_dimension_numbers<[1], [0], [0], [1], [0, 0, 1, 1], [], []>} : vector<32x32xf32>, vector<32x324xf32>, vector<32x324xf32> -> vector<32x324xf32>
    %120 = arith.addf %113, %119 : vector<32x324xf32>
    %c0_92 = arith.constant 0 : index
    %c7_93 = arith.constant 7 : index
    %c0_94 = arith.constant 0 : index
    %c0_95 = arith.constant 0 : index
    %121 = vector.load %arg5[%c0_92, %c7_93, %c0_94, %c0_95] : memref<3x9x32x32xf32, #tpu.memory_space<vmem>>, vector<1x1x32x32xf32>
    %122 = vector.shape_cast %121 : vector<1x1x32x32xf32> to vector<32x32xf32>
    %123 = vector.extract_strided_slice %73 {offsets = [0, 18], sizes = [32, 306], strides = [1, 1]} : vector<32x324xf32> to vector<32x306xf32>
    %cst_96 = arith.constant 0.000000e+00 : f32
    %124 = vector.broadcast %cst_96 : f32 to vector<32x18xf32>
    %125 = tpu.concatenate %123, %124 in 1 : vector<32x306xf32>, vector<32x18xf32> -> vector<32x324xf32>
    %cst_97 = arith.constant dense<0.000000e+00> : vector<32x324xf32>
    %126 = tpu.matmul %122, %125, %cst_97 {dimension_numbers = #tpu.dot_dimension_numbers<[1], [0], [0], [1], [0, 0, 1, 1], [], []>} : vector<32x32xf32>, vector<32x324xf32>, vector<32x324xf32> -> vector<32x324xf32>
    %127 = arith.addf %120, %126 : vector<32x324xf32>
    %c0_98 = arith.constant 0 : index
    %c8_99 = arith.constant 8 : index
    %c0_100 = arith.constant 0 : index
    %c0_101 = arith.constant 0 : index
    %128 = vector.load %arg5[%c0_98, %c8_99, %c0_100, %c0_101] : memref<3x9x32x32xf32, #tpu.memory_space<vmem>>, vector<1x1x32x32xf32>
    %129 = vector.shape_cast %128 : vector<1x1x32x32xf32> to vector<32x32xf32>
    %130 = vector.extract_strided_slice %73 {offsets = [0, 19], sizes = [32, 305], strides = [1, 1]} : vector<32x324xf32> to vector<32x305xf32>
    %cst_102 = arith.constant 0.000000e+00 : f32
    %131 = vector.broadcast %cst_102 : f32 to vector<32x19xf32>
    %132 = tpu.concatenate %130, %131 in 1 : vector<32x305xf32>, vector<32x19xf32> -> vector<32x324xf32>
    %cst_103 = arith.constant dense<0.000000e+00> : vector<32x324xf32>
    %133 = tpu.matmul %129, %132, %cst_103 {dimension_numbers = #tpu.dot_dimension_numbers<[1], [0], [0], [1], [0, 0, 1, 1], [], []>} : vector<32x32xf32>, vector<32x324xf32>, vector<32x324xf32> -> vector<32x324xf32>
    %134 = arith.addf %127, %133 : vector<32x324xf32>
    %135 = vector.broadcast %75 : vector<32x1xf32> to vector<32x324xf32>
    %136 = arith.addf %134, %135 : vector<32x324xf32>
    %cst_104 = arith.constant 0.000000e+00 : f32
    %137 = vector.broadcast %cst_104 : f32 to vector<32x324xf32>
    %138 = arith.maximumf %136, %137 : vector<32x324xf32>
    %139 = vector.broadcast %0 : vector<1x324xf32> to vector<32x324xf32>
    %140 = arith.mulf %138, %139 : vector<32x324xf32>
    %c1_105 = arith.constant 1 : index
    %c0_106 = arith.constant 0 : index
    %c0_107 = arith.constant 0 : index
    %141 = vector.load %arg10[%c1_105, %c0_106, %c0_107] : memref<2x32x324xf32, #tpu.memory_space<vmem>>, vector<1x32x324xf32>
    %142 = vector.shape_cast %141 : vector<1x32x324xf32> to vector<32x324xf32>
    %143 = vector.shape_cast %140 : vector<32x324xf32> to vector<1x32x324xf32>
    tpu.vector_store %arg10[%c1_105, %c0_106, %c0_107], %143 {strides = array<i32>} : memref<2x32x324xf32, #tpu.memory_space<vmem>>, vector<1x32x324xf32>,
    %c1_108 = arith.constant 1 : index
    %c0_109 = arith.constant 0 : index
    %c0_110 = arith.constant 0 : index
    %144 = vector.load %arg10[%c1_108, %c0_109, %c0_110] : memref<2x32x324xf32, #tpu.memory_space<vmem>>, vector<1x32x324xf32>
    %145 = vector.shape_cast %144 : vector<1x32x324xf32> to vector<32x324xf32>
    %c1_111 = arith.constant 1 : index
    %c0_112 = arith.constant 0 : index
    %c0_113 = arith.constant 0 : index
    %146 = vector.load %arg6[%c1_111, %c0_112, %c0_113] : memref<3x32x1xf32, #tpu.memory_space<vmem>>, vector<1x32x1xf32>
    %147 = vector.shape_cast %146 : vector<1x32x1xf32> to vector<32x1xf32>
    %c1_114 = arith.constant 1 : index
    %c0_115 = arith.constant 0 : index
    %c0_116 = arith.constant 0 : index
    %c0_117 = arith.constant 0 : index
    %148 = vector.load %arg5[%c1_114, %c0_115, %c0_116, %c0_117] : memref<3x9x32x32xf32, #tpu.memory_space<vmem>>, vector<1x1x32x32xf32>
    %149 = vector.shape_cast %148 : vector<1x1x32x32xf32> to vector<32x32xf32>
    %cst_118 = arith.constant 0.000000e+00 : f32
    %150 = vector.broadcast %cst_118 : f32 to vector<32x19xf32>
    %151 = vector.extract_strided_slice %145 {offsets = [0, 0], sizes = [32, 305], strides = [1, 1]} : vector<32x324xf32> to vector<32x305xf32>
    %152 = tpu.concatenate %150, %151 in 1 : vector<32x19xf32>, vector<32x305xf32> -> vector<32x324xf32>
    %cst_119 = arith.constant dense<0.000000e+00> : vector<32x324xf32>
    %153 = tpu.matmul %149, %152, %cst_119 {dimension_numbers = #tpu.dot_dimension_numbers<[1], [0], [0], [1], [0, 0, 1, 1], [], []>} : vector<32x32xf32>, vector<32x324xf32>, vector<32x324xf32> -> vector<32x324xf32>
    %c1_120 = arith.constant 1 : index
    %c1_121 = arith.constant 1 : index
    %c0_122 = arith.constant 0 : index
    %c0_123 = arith.constant 0 : index
    %154 = vector.load %arg5[%c1_120, %c1_121, %c0_122, %c0_123] : memref<3x9x32x32xf32, #tpu.memory_space<vmem>>, vector<1x1x32x32xf32>
    %155 = vector.shape_cast %154 : vector<1x1x32x32xf32> to vector<32x32xf32>
    %cst_124 = arith.constant 0.000000e+00 : f32
    %156 = vector.broadcast %cst_124 : f32 to vector<32x18xf32>
    %157 = vector.extract_strided_slice %145 {offsets = [0, 0], sizes = [32, 306], strides = [1, 1]} : vector<32x324xf32> to vector<32x306xf32>
    %158 = tpu.concatenate %156, %157 in 1 : vector<32x18xf32>, vector<32x306xf32> -> vector<32x324xf32>
    %cst_125 = arith.constant dense<0.000000e+00> : vector<32x324xf32>
    %159 = tpu.matmul %155, %158, %cst_125 {dimension_numbers = #tpu.dot_dimension_numbers<[1], [0], [0], [1], [0, 0, 1, 1], [], []>} : vector<32x32xf32>, vector<32x324xf32>, vector<32x324xf32> -> vector<32x324xf32>
    %160 = arith.addf %153, %159 : vector<32x324xf32>
    %c1_126 = arith.constant 1 : index
    %c2_127 = arith.constant 2 : index
    %c0_128 = arith.constant 0 : index
    %c0_129 = arith.constant 0 : index
    %161 = vector.load %arg5[%c1_126, %c2_127, %c0_128, %c0_129] : memref<3x9x32x32xf32, #tpu.memory_space<vmem>>, vector<1x1x32x32xf32>
    %162 = vector.shape_cast %161 : vector<1x1x32x32xf32> to vector<32x32xf32>
    %cst_130 = arith.constant 0.000000e+00 : f32
    %163 = vector.broadcast %cst_130 : f32 to vector<32x17xf32>
    %164 = vector.extract_strided_slice %145 {offsets = [0, 0], sizes = [32, 307], strides = [1, 1]} : vector<32x324xf32> to vector<32x307xf32>
    %165 = tpu.concatenate %163, %164 in 1 : vector<32x17xf32>, vector<32x307xf32> -> vector<32x324xf32>
    %cst_131 = arith.constant dense<0.000000e+00> : vector<32x324xf32>
    %166 = tpu.matmul %162, %165, %cst_131 {dimension_numbers = #tpu.dot_dimension_numbers<[1], [0], [0], [1], [0, 0, 1, 1], [], []>} : vector<32x32xf32>, vector<32x324xf32>, vector<32x324xf32> -> vector<32x324xf32>
    %167 = arith.addf %160, %166 : vector<32x324xf32>
    %c1_132 = arith.constant 1 : index
    %c3_133 = arith.constant 3 : index
    %c0_134 = arith.constant 0 : index
    %c0_135 = arith.constant 0 : index
    %168 = vector.load %arg5[%c1_132, %c3_133, %c0_134, %c0_135] : memref<3x9x32x32xf32, #tpu.memory_space<vmem>>, vector<1x1x32x32xf32>
    %169 = vector.shape_cast %168 : vector<1x1x32x32xf32> to vector<32x32xf32>
    %cst_136 = arith.constant 0.000000e+00 : f32
    %170 = vector.broadcast %cst_136 : f32 to vector<32x1xf32>
    %171 = vector.extract_strided_slice %145 {offsets = [0, 0], sizes = [32, 323], strides = [1, 1]} : vector<32x324xf32> to vector<32x323xf32>
    %172 = tpu.concatenate %170, %171 in 1 : vector<32x1xf32>, vector<32x323xf32> -> vector<32x324xf32>
    %cst_137 = arith.constant dense<0.000000e+00> : vector<32x324xf32>
    %173 = tpu.matmul %169, %172, %cst_137 {dimension_numbers = #tpu.dot_dimension_numbers<[1], [0], [0], [1], [0, 0, 1, 1], [], []>} : vector<32x32xf32>, vector<32x324xf32>, vector<32x324xf32> -> vector<32x324xf32>
    %174 = arith.addf %167, %173 : vector<32x324xf32>
    %c1_138 = arith.constant 1 : index
    %c4_139 = arith.constant 4 : index
    %c0_140 = arith.constant 0 : index
    %c0_141 = arith.constant 0 : index
    %175 = vector.load %arg5[%c1_138, %c4_139, %c0_140, %c0_141] : memref<3x9x32x32xf32, #tpu.memory_space<vmem>>, vector<1x1x32x32xf32>
    %176 = vector.shape_cast %175 : vector<1x1x32x32xf32> to vector<32x32xf32>
    %cst_142 = arith.constant dense<0.000000e+00> : vector<32x324xf32>
    %177 = tpu.matmul %176, %145, %cst_142 {dimension_numbers = #tpu.dot_dimension_numbers<[1], [0], [0], [1], [0, 0, 1, 1], [], []>} : vector<32x32xf32>, vector<32x324xf32>, vector<32x324xf32> -> vector<32x324xf32>
    %178 = arith.addf %174, %177 : vector<32x324xf32>
    %c1_143 = arith.constant 1 : index
    %c5_144 = arith.constant 5 : index
    %c0_145 = arith.constant 0 : index
    %c0_146 = arith.constant 0 : index
    %179 = vector.load %arg5[%c1_143, %c5_144, %c0_145, %c0_146] : memref<3x9x32x32xf32, #tpu.memory_space<vmem>>, vector<1x1x32x32xf32>
    %180 = vector.shape_cast %179 : vector<1x1x32x32xf32> to vector<32x32xf32>
    %181 = vector.extract_strided_slice %145 {offsets = [0, 1], sizes = [32, 323], strides = [1, 1]} : vector<32x324xf32> to vector<32x323xf32>
    %cst_147 = arith.constant 0.000000e+00 : f32
    %182 = vector.broadcast %cst_147 : f32 to vector<32x1xf32>
    %183 = tpu.concatenate %181, %182 in 1 : vector<32x323xf32>, vector<32x1xf32> -> vector<32x324xf32>
    %cst_148 = arith.constant dense<0.000000e+00> : vector<32x324xf32>
    %184 = tpu.matmul %180, %183, %cst_148 {dimension_numbers = #tpu.dot_dimension_numbers<[1], [0], [0], [1], [0, 0, 1, 1], [], []>} : vector<32x32xf32>, vector<32x324xf32>, vector<32x324xf32> -> vector<32x324xf32>
    %185 = arith.addf %178, %184 : vector<32x324xf32>
    %c1_149 = arith.constant 1 : index
    %c6_150 = arith.constant 6 : index
    %c0_151 = arith.constant 0 : index
    %c0_152 = arith.constant 0 : index
    %186 = vector.load %arg5[%c1_149, %c6_150, %c0_151, %c0_152] : memref<3x9x32x32xf32, #tpu.memory_space<vmem>>, vector<1x1x32x32xf32>
    %187 = vector.shape_cast %186 : vector<1x1x32x32xf32> to vector<32x32xf32>
    %188 = vector.extract_strided_slice %145 {offsets = [0, 17], sizes = [32, 307], strides = [1, 1]} : vector<32x324xf32> to vector<32x307xf32>
    %cst_153 = arith.constant 0.000000e+00 : f32
    %189 = vector.broadcast %cst_153 : f32 to vector<32x17xf32>
    %190 = tpu.concatenate %188, %189 in 1 : vector<32x307xf32>, vector<32x17xf32> -> vector<32x324xf32>
    %cst_154 = arith.constant dense<0.000000e+00> : vector<32x324xf32>
    %191 = tpu.matmul %187, %190, %cst_154 {dimension_numbers = #tpu.dot_dimension_numbers<[1], [0], [0], [1], [0, 0, 1, 1], [], []>} : vector<32x32xf32>, vector<32x324xf32>, vector<32x324xf32> -> vector<32x324xf32>
    %192 = arith.addf %185, %191 : vector<32x324xf32>
    %c1_155 = arith.constant 1 : index
    %c7_156 = arith.constant 7 : index
    %c0_157 = arith.constant 0 : index
    %c0_158 = arith.constant 0 : index
    %193 = vector.load %arg5[%c1_155, %c7_156, %c0_157, %c0_158] : memref<3x9x32x32xf32, #tpu.memory_space<vmem>>, vector<1x1x32x32xf32>
    %194 = vector.shape_cast %193 : vector<1x1x32x32xf32> to vector<32x32xf32>
    %195 = vector.extract_strided_slice %145 {offsets = [0, 18], sizes = [32, 306], strides = [1, 1]} : vector<32x324xf32> to vector<32x306xf32>
    %cst_159 = arith.constant 0.000000e+00 : f32
    %196 = vector.broadcast %cst_159 : f32 to vector<32x18xf32>
    %197 = tpu.concatenate %195, %196 in 1 : vector<32x306xf32>, vector<32x18xf32> -> vector<32x324xf32>
    %cst_160 = arith.constant dense<0.000000e+00> : vector<32x324xf32>
    %198 = tpu.matmul %194, %197, %cst_160 {dimension_numbers = #tpu.dot_dimension_numbers<[1], [0], [0], [1], [0, 0, 1, 1], [], []>} : vector<32x32xf32>, vector<32x324xf32>, vector<32x324xf32> -> vector<32x324xf32>
    %199 = arith.addf %192, %198 : vector<32x324xf32>
    %c1_161 = arith.constant 1 : index
    %c8_162 = arith.constant 8 : index
    %c0_163 = arith.constant 0 : index
    %c0_164 = arith.constant 0 : index
    %200 = vector.load %arg5[%c1_161, %c8_162, %c0_163, %c0_164] : memref<3x9x32x32xf32, #tpu.memory_space<vmem>>, vector<1x1x32x32xf32>
    %201 = vector.shape_cast %200 : vector<1x1x32x32xf32> to vector<32x32xf32>
    %202 = vector.extract_strided_slice %145 {offsets = [0, 19], sizes = [32, 305], strides = [1, 1]} : vector<32x324xf32> to vector<32x305xf32>
    %cst_165 = arith.constant 0.000000e+00 : f32
    %203 = vector.broadcast %cst_165 : f32 to vector<32x19xf32>
    %204 = tpu.concatenate %202, %203 in 1 : vector<32x305xf32>, vector<32x19xf32> -> vector<32x324xf32>
    %cst_166 = arith.constant dense<0.000000e+00> : vector<32x324xf32>
    %205 = tpu.matmul %201, %204, %cst_166 {dimension_numbers = #tpu.dot_dimension_numbers<[1], [0], [0], [1], [0, 0, 1, 1], [], []>} : vector<32x32xf32>, vector<32x324xf32>, vector<32x324xf32> -> vector<32x324xf32>
    %206 = arith.addf %199, %205 : vector<32x324xf32>
    %207 = vector.broadcast %147 : vector<32x1xf32> to vector<32x324xf32>
    %208 = arith.addf %206, %207 : vector<32x324xf32>
    %cst_167 = arith.constant 0.000000e+00 : f32
    %209 = vector.broadcast %cst_167 : f32 to vector<32x324xf32>
    %210 = arith.maximumf %208, %209 : vector<32x324xf32>
    %211 = vector.broadcast %0 : vector<1x324xf32> to vector<32x324xf32>
    %212 = arith.mulf %210, %211 : vector<32x324xf32>
    %c0_168 = arith.constant 0 : index
    %c0_169 = arith.constant 0 : index
    %c0_170 = arith.constant 0 : index
    %213 = vector.load %arg10[%c0_168, %c0_169, %c0_170] : memref<2x32x324xf32, #tpu.memory_space<vmem>>, vector<1x32x324xf32>
    %214 = vector.shape_cast %213 : vector<1x32x324xf32> to vector<32x324xf32>
    %215 = vector.shape_cast %212 : vector<32x324xf32> to vector<1x32x324xf32>
    tpu.vector_store %arg10[%c0_168, %c0_169, %c0_170], %215 {strides = array<i32>} : memref<2x32x324xf32, #tpu.memory_space<vmem>>, vector<1x32x324xf32>,
    %c0_171 = arith.constant 0 : index
    %c0_172 = arith.constant 0 : index
    %c0_173 = arith.constant 0 : index
    %216 = vector.load %arg10[%c0_171, %c0_172, %c0_173] : memref<2x32x324xf32, #tpu.memory_space<vmem>>, vector<1x32x324xf32>
    %217 = vector.shape_cast %216 : vector<1x32x324xf32> to vector<32x324xf32>
    %c2_174 = arith.constant 2 : index
    %c0_175 = arith.constant 0 : index
    %c0_176 = arith.constant 0 : index
    %218 = vector.load %arg6[%c2_174, %c0_175, %c0_176] : memref<3x32x1xf32, #tpu.memory_space<vmem>>, vector<1x32x1xf32>
    %219 = vector.shape_cast %218 : vector<1x32x1xf32> to vector<32x1xf32>
    %c2_177 = arith.constant 2 : index
    %c0_178 = arith.constant 0 : index
    %c0_179 = arith.constant 0 : index
    %c0_180 = arith.constant 0 : index
    %220 = vector.load %arg5[%c2_177, %c0_178, %c0_179, %c0_180] : memref<3x9x32x32xf32, #tpu.memory_space<vmem>>, vector<1x1x32x32xf32>
    %221 = vector.shape_cast %220 : vector<1x1x32x32xf32> to vector<32x32xf32>
    %cst_181 = arith.constant 0.000000e+00 : f32
    %222 = vector.broadcast %cst_181 : f32 to vector<32x19xf32>
    %223 = vector.extract_strided_slice %217 {offsets = [0, 0], sizes = [32, 305], strides = [1, 1]} : vector<32x324xf32> to vector<32x305xf32>
    %224 = tpu.concatenate %222, %223 in 1 : vector<32x19xf32>, vector<32x305xf32> -> vector<32x324xf32>
    %cst_182 = arith.constant dense<0.000000e+00> : vector<32x324xf32>
    %225 = tpu.matmul %221, %224, %cst_182 {dimension_numbers = #tpu.dot_dimension_numbers<[1], [0], [0], [1], [0, 0, 1, 1], [], []>} : vector<32x32xf32>, vector<32x324xf32>, vector<32x324xf32> -> vector<32x324xf32>
    %c2_183 = arith.constant 2 : index
    %c1_184 = arith.constant 1 : index
    %c0_185 = arith.constant 0 : index
    %c0_186 = arith.constant 0 : index
    %226 = vector.load %arg5[%c2_183, %c1_184, %c0_185, %c0_186] : memref<3x9x32x32xf32, #tpu.memory_space<vmem>>, vector<1x1x32x32xf32>
    %227 = vector.shape_cast %226 : vector<1x1x32x32xf32> to vector<32x32xf32>
    %cst_187 = arith.constant 0.000000e+00 : f32
    %228 = vector.broadcast %cst_187 : f32 to vector<32x18xf32>
    %229 = vector.extract_strided_slice %217 {offsets = [0, 0], sizes = [32, 306], strides = [1, 1]} : vector<32x324xf32> to vector<32x306xf32>
    %230 = tpu.concatenate %228, %229 in 1 : vector<32x18xf32>, vector<32x306xf32> -> vector<32x324xf32>
    %cst_188 = arith.constant dense<0.000000e+00> : vector<32x324xf32>
    %231 = tpu.matmul %227, %230, %cst_188 {dimension_numbers = #tpu.dot_dimension_numbers<[1], [0], [0], [1], [0, 0, 1, 1], [], []>} : vector<32x32xf32>, vector<32x324xf32>, vector<32x324xf32> -> vector<32x324xf32>
    %232 = arith.addf %225, %231 : vector<32x324xf32>
    %c2_189 = arith.constant 2 : index
    %c2_190 = arith.constant 2 : index
    %c0_191 = arith.constant 0 : index
    %c0_192 = arith.constant 0 : index
    %233 = vector.load %arg5[%c2_189, %c2_190, %c0_191, %c0_192] : memref<3x9x32x32xf32, #tpu.memory_space<vmem>>, vector<1x1x32x32xf32>
    %234 = vector.shape_cast %233 : vector<1x1x32x32xf32> to vector<32x32xf32>
    %cst_193 = arith.constant 0.000000e+00 : f32
    %235 = vector.broadcast %cst_193 : f32 to vector<32x17xf32>
    %236 = vector.extract_strided_slice %217 {offsets = [0, 0], sizes = [32, 307], strides = [1, 1]} : vector<32x324xf32> to vector<32x307xf32>
    %237 = tpu.concatenate %235, %236 in 1 : vector<32x17xf32>, vector<32x307xf32> -> vector<32x324xf32>
    %cst_194 = arith.constant dense<0.000000e+00> : vector<32x324xf32>
    %238 = tpu.matmul %234, %237, %cst_194 {dimension_numbers = #tpu.dot_dimension_numbers<[1], [0], [0], [1], [0, 0, 1, 1], [], []>} : vector<32x32xf32>, vector<32x324xf32>, vector<32x324xf32> -> vector<32x324xf32>
    %239 = arith.addf %232, %238 : vector<32x324xf32>
    %c2_195 = arith.constant 2 : index
    %c3_196 = arith.constant 3 : index
    %c0_197 = arith.constant 0 : index
    %c0_198 = arith.constant 0 : index
    %240 = vector.load %arg5[%c2_195, %c3_196, %c0_197, %c0_198] : memref<3x9x32x32xf32, #tpu.memory_space<vmem>>, vector<1x1x32x32xf32>
    %241 = vector.shape_cast %240 : vector<1x1x32x32xf32> to vector<32x32xf32>
    %cst_199 = arith.constant 0.000000e+00 : f32
    %242 = vector.broadcast %cst_199 : f32 to vector<32x1xf32>
    %243 = vector.extract_strided_slice %217 {offsets = [0, 0], sizes = [32, 323], strides = [1, 1]} : vector<32x324xf32> to vector<32x323xf32>
    %244 = tpu.concatenate %242, %243 in 1 : vector<32x1xf32>, vector<32x323xf32> -> vector<32x324xf32>
    %cst_200 = arith.constant dense<0.000000e+00> : vector<32x324xf32>
    %245 = tpu.matmul %241, %244, %cst_200 {dimension_numbers = #tpu.dot_dimension_numbers<[1], [0], [0], [1], [0, 0, 1, 1], [], []>} : vector<32x32xf32>, vector<32x324xf32>, vector<32x324xf32> -> vector<32x324xf32>
    %246 = arith.addf %239, %245 : vector<32x324xf32>
    %c2_201 = arith.constant 2 : index
    %c4_202 = arith.constant 4 : index
    %c0_203 = arith.constant 0 : index
    %c0_204 = arith.constant 0 : index
    %247 = vector.load %arg5[%c2_201, %c4_202, %c0_203, %c0_204] : memref<3x9x32x32xf32, #tpu.memory_space<vmem>>, vector<1x1x32x32xf32>
    %248 = vector.shape_cast %247 : vector<1x1x32x32xf32> to vector<32x32xf32>
    %cst_205 = arith.constant dense<0.000000e+00> : vector<32x324xf32>
    %249 = tpu.matmul %248, %217, %cst_205 {dimension_numbers = #tpu.dot_dimension_numbers<[1], [0], [0], [1], [0, 0, 1, 1], [], []>} : vector<32x32xf32>, vector<32x324xf32>, vector<32x324xf32> -> vector<32x324xf32>
    %250 = arith.addf %246, %249 : vector<32x324xf32>
    %c2_206 = arith.constant 2 : index
    %c5_207 = arith.constant 5 : index
    %c0_208 = arith.constant 0 : index
    %c0_209 = arith.constant 0 : index
    %251 = vector.load %arg5[%c2_206, %c5_207, %c0_208, %c0_209] : memref<3x9x32x32xf32, #tpu.memory_space<vmem>>, vector<1x1x32x32xf32>
    %252 = vector.shape_cast %251 : vector<1x1x32x32xf32> to vector<32x32xf32>
    %253 = vector.extract_strided_slice %217 {offsets = [0, 1], sizes = [32, 323], strides = [1, 1]} : vector<32x324xf32> to vector<32x323xf32>
    %cst_210 = arith.constant 0.000000e+00 : f32
    %254 = vector.broadcast %cst_210 : f32 to vector<32x1xf32>
    %255 = tpu.concatenate %253, %254 in 1 : vector<32x323xf32>, vector<32x1xf32> -> vector<32x324xf32>
    %cst_211 = arith.constant dense<0.000000e+00> : vector<32x324xf32>
    %256 = tpu.matmul %252, %255, %cst_211 {dimension_numbers = #tpu.dot_dimension_numbers<[1], [0], [0], [1], [0, 0, 1, 1], [], []>} : vector<32x32xf32>, vector<32x324xf32>, vector<32x324xf32> -> vector<32x324xf32>
    %257 = arith.addf %250, %256 : vector<32x324xf32>
    %c2_212 = arith.constant 2 : index
    %c6_213 = arith.constant 6 : index
    %c0_214 = arith.constant 0 : index
    %c0_215 = arith.constant 0 : index
    %258 = vector.load %arg5[%c2_212, %c6_213, %c0_214, %c0_215] : memref<3x9x32x32xf32, #tpu.memory_space<vmem>>, vector<1x1x32x32xf32>
    %259 = vector.shape_cast %258 : vector<1x1x32x32xf32> to vector<32x32xf32>
    %260 = vector.extract_strided_slice %217 {offsets = [0, 17], sizes = [32, 307], strides = [1, 1]} : vector<32x324xf32> to vector<32x307xf32>
    %cst_216 = arith.constant 0.000000e+00 : f32
    %261 = vector.broadcast %cst_216 : f32 to vector<32x17xf32>
    %262 = tpu.concatenate %260, %261 in 1 : vector<32x307xf32>, vector<32x17xf32> -> vector<32x324xf32>
    %cst_217 = arith.constant dense<0.000000e+00> : vector<32x324xf32>
    %263 = tpu.matmul %259, %262, %cst_217 {dimension_numbers = #tpu.dot_dimension_numbers<[1], [0], [0], [1], [0, 0, 1, 1], [], []>} : vector<32x32xf32>, vector<32x324xf32>, vector<32x324xf32> -> vector<32x324xf32>
    %264 = arith.addf %257, %263 : vector<32x324xf32>
    %c2_218 = arith.constant 2 : index
    %c7_219 = arith.constant 7 : index
    %c0_220 = arith.constant 0 : index
    %c0_221 = arith.constant 0 : index
    %265 = vector.load %arg5[%c2_218, %c7_219, %c0_220, %c0_221] : memref<3x9x32x32xf32, #tpu.memory_space<vmem>>, vector<1x1x32x32xf32>
    %266 = vector.shape_cast %265 : vector<1x1x32x32xf32> to vector<32x32xf32>
    %267 = vector.extract_strided_slice %217 {offsets = [0, 18], sizes = [32, 306], strides = [1, 1]} : vector<32x324xf32> to vector<32x306xf32>
    %cst_222 = arith.constant 0.000000e+00 : f32
    %268 = vector.broadcast %cst_222 : f32 to vector<32x18xf32>
    %269 = tpu.concatenate %267, %268 in 1 : vector<32x306xf32>, vector<32x18xf32> -> vector<32x324xf32>
    %cst_223 = arith.constant dense<0.000000e+00> : vector<32x324xf32>
    %270 = tpu.matmul %266, %269, %cst_223 {dimension_numbers = #tpu.dot_dimension_numbers<[1], [0], [0], [1], [0, 0, 1, 1], [], []>} : vector<32x32xf32>, vector<32x324xf32>, vector<32x324xf32> -> vector<32x324xf32>
    %271 = arith.addf %264, %270 : vector<32x324xf32>
    %c2_224 = arith.constant 2 : index
    %c8_225 = arith.constant 8 : index
    %c0_226 = arith.constant 0 : index
    %c0_227 = arith.constant 0 : index
    %272 = vector.load %arg5[%c2_224, %c8_225, %c0_226, %c0_227] : memref<3x9x32x32xf32, #tpu.memory_space<vmem>>, vector<1x1x32x32xf32>
    %273 = vector.shape_cast %272 : vector<1x1x32x32xf32> to vector<32x32xf32>
    %274 = vector.extract_strided_slice %217 {offsets = [0, 19], sizes = [32, 305], strides = [1, 1]} : vector<32x324xf32> to vector<32x305xf32>
    %cst_228 = arith.constant 0.000000e+00 : f32
    %275 = vector.broadcast %cst_228 : f32 to vector<32x19xf32>
    %276 = tpu.concatenate %274, %275 in 1 : vector<32x305xf32>, vector<32x19xf32> -> vector<32x324xf32>
    %cst_229 = arith.constant dense<0.000000e+00> : vector<32x324xf32>
    %277 = tpu.matmul %273, %276, %cst_229 {dimension_numbers = #tpu.dot_dimension_numbers<[1], [0], [0], [1], [0, 0, 1, 1], [], []>} : vector<32x32xf32>, vector<32x324xf32>, vector<32x324xf32> -> vector<32x324xf32>
    %278 = arith.addf %271, %277 : vector<32x324xf32>
    %279 = vector.broadcast %219 : vector<32x1xf32> to vector<32x324xf32>
    %280 = arith.addf %278, %279 : vector<32x324xf32>
    %cst_230 = arith.constant 0.000000e+00 : f32
    %281 = vector.broadcast %cst_230 : f32 to vector<32x324xf32>
    %282 = arith.maximumf %280, %281 : vector<32x324xf32>
    %283 = vector.broadcast %0 : vector<1x324xf32> to vector<32x324xf32>
    %284 = arith.mulf %282, %283 : vector<32x324xf32>
    %c1_231 = arith.constant 1 : index
    %c0_232 = arith.constant 0 : index
    %c0_233 = arith.constant 0 : index
    %285 = vector.load %arg10[%c1_231, %c0_232, %c0_233] : memref<2x32x324xf32, #tpu.memory_space<vmem>>, vector<1x32x324xf32>
    %286 = vector.shape_cast %285 : vector<1x32x324xf32> to vector<32x324xf32>
    %287 = vector.shape_cast %284 : vector<32x324xf32> to vector<1x32x324xf32>
    tpu.vector_store %arg10[%c1_231, %c0_232, %c0_233], %287 {strides = array<i32>} : memref<2x32x324xf32, #tpu.memory_space<vmem>>, vector<1x32x324xf32>,
    %c1_234 = arith.constant 1 : index
    %c0_235 = arith.constant 0 : index
    %c0_236 = arith.constant 0 : index
    %288 = vector.load %arg10[%c1_234, %c0_235, %c0_236] : memref<2x32x324xf32, #tpu.memory_space<vmem>>, vector<1x32x324xf32>
    %289 = vector.shape_cast %288 : vector<1x32x324xf32> to vector<32x324xf32>
    %c0_237 = arith.constant 0 : index
    %c0_238 = arith.constant 0 : index
    %290 = vector.load %arg8[%c0_237, %c0_238] : memref<2x1xf32, #tpu.memory_space<vmem>>, vector<2x1xf32>
    %c0_239 = arith.constant 0 : index
    %c0_240 = arith.constant 0 : index
    %c0_241 = arith.constant 0 : index
    %291 = vector.load %arg7[%c0_239, %c0_240, %c0_241] : memref<9x2x32xf32, #tpu.memory_space<vmem>>, vector<1x2x32xf32>
    %292 = vector.shape_cast %291 : vector<1x2x32xf32> to vector<2x32xf32>
    %cst_242 = arith.constant 0.000000e+00 : f32
    %293 = vector.broadcast %cst_242 : f32 to vector<32x19xf32>
    %294 = vector.extract_strided_slice %289 {offsets = [0, 0], sizes = [32, 305], strides = [1, 1]} : vector<32x324xf32> to vector<32x305xf32>
    %295 = tpu.concatenate %293, %294 in 1 : vector<32x19xf32>, vector<32x305xf32> -> vector<32x324xf32>
    %cst_243 = arith.constant dense<0.000000e+00> : vector<2x324xf32>
    %296 = tpu.matmul %292, %295, %cst_243 {dimension_numbers = #tpu.dot_dimension_numbers<[1], [0], [0], [1], [0, 0, 1, 1], [], []>} : vector<2x32xf32>, vector<32x324xf32>, vector<2x324xf32> -> vector<2x324xf32>
    %c1_244 = arith.constant 1 : index
    %c0_245 = arith.constant 0 : index
    %c0_246 = arith.constant 0 : index
    %297 = vector.load %arg7[%c1_244, %c0_245, %c0_246] : memref<9x2x32xf32, #tpu.memory_space<vmem>>, vector<1x2x32xf32>
    %298 = vector.shape_cast %297 : vector<1x2x32xf32> to vector<2x32xf32>
    %cst_247 = arith.constant 0.000000e+00 : f32
    %299 = vector.broadcast %cst_247 : f32 to vector<32x18xf32>
    %300 = vector.extract_strided_slice %289 {offsets = [0, 0], sizes = [32, 306], strides = [1, 1]} : vector<32x324xf32> to vector<32x306xf32>
    %301 = tpu.concatenate %299, %300 in 1 : vector<32x18xf32>, vector<32x306xf32> -> vector<32x324xf32>
    %cst_248 = arith.constant dense<0.000000e+00> : vector<2x324xf32>
    %302 = tpu.matmul %298, %301, %cst_248 {dimension_numbers = #tpu.dot_dimension_numbers<[1], [0], [0], [1], [0, 0, 1, 1], [], []>} : vector<2x32xf32>, vector<32x324xf32>, vector<2x324xf32> -> vector<2x324xf32>
    %303 = arith.addf %296, %302 : vector<2x324xf32>
    %c2_249 = arith.constant 2 : index
    %c0_250 = arith.constant 0 : index
    %c0_251 = arith.constant 0 : index
    %304 = vector.load %arg7[%c2_249, %c0_250, %c0_251] : memref<9x2x32xf32, #tpu.memory_space<vmem>>, vector<1x2x32xf32>
    %305 = vector.shape_cast %304 : vector<1x2x32xf32> to vector<2x32xf32>
    %cst_252 = arith.constant 0.000000e+00 : f32
    %306 = vector.broadcast %cst_252 : f32 to vector<32x17xf32>
    %307 = vector.extract_strided_slice %289 {offsets = [0, 0], sizes = [32, 307], strides = [1, 1]} : vector<32x324xf32> to vector<32x307xf32>
    %308 = tpu.concatenate %306, %307 in 1 : vector<32x17xf32>, vector<32x307xf32> -> vector<32x324xf32>
    %cst_253 = arith.constant dense<0.000000e+00> : vector<2x324xf32>
    %309 = tpu.matmul %305, %308, %cst_253 {dimension_numbers = #tpu.dot_dimension_numbers<[1], [0], [0], [1], [0, 0, 1, 1], [], []>} : vector<2x32xf32>, vector<32x324xf32>, vector<2x324xf32> -> vector<2x324xf32>
    %310 = arith.addf %303, %309 : vector<2x324xf32>
    %c3_254 = arith.constant 3 : index
    %c0_255 = arith.constant 0 : index
    %c0_256 = arith.constant 0 : index
    %311 = vector.load %arg7[%c3_254, %c0_255, %c0_256] : memref<9x2x32xf32, #tpu.memory_space<vmem>>, vector<1x2x32xf32>
    %312 = vector.shape_cast %311 : vector<1x2x32xf32> to vector<2x32xf32>
    %cst_257 = arith.constant 0.000000e+00 : f32
    %313 = vector.broadcast %cst_257 : f32 to vector<32x1xf32>
    %314 = vector.extract_strided_slice %289 {offsets = [0, 0], sizes = [32, 323], strides = [1, 1]} : vector<32x324xf32> to vector<32x323xf32>
    %315 = tpu.concatenate %313, %314 in 1 : vector<32x1xf32>, vector<32x323xf32> -> vector<32x324xf32>
    %cst_258 = arith.constant dense<0.000000e+00> : vector<2x324xf32>
    %316 = tpu.matmul %312, %315, %cst_258 {dimension_numbers = #tpu.dot_dimension_numbers<[1], [0], [0], [1], [0, 0, 1, 1], [], []>} : vector<2x32xf32>, vector<32x324xf32>, vector<2x324xf32> -> vector<2x324xf32>
    %317 = arith.addf %310, %316 : vector<2x324xf32>
    %c4_259 = arith.constant 4 : index
    %c0_260 = arith.constant 0 : index
    %c0_261 = arith.constant 0 : index
    %318 = vector.load %arg7[%c4_259, %c0_260, %c0_261] : memref<9x2x32xf32, #tpu.memory_space<vmem>>, vector<1x2x32xf32>
    %319 = vector.shape_cast %318 : vector<1x2x32xf32> to vector<2x32xf32>
    %cst_262 = arith.constant dense<0.000000e+00> : vector<2x324xf32>
    %320 = tpu.matmul %319, %289, %cst_262 {dimension_numbers = #tpu.dot_dimension_numbers<[1], [0], [0], [1], [0, 0, 1, 1], [], []>} : vector<2x32xf32>, vector<32x324xf32>, vector<2x324xf32> -> vector<2x324xf32>
    %321 = arith.addf %317, %320 : vector<2x324xf32>
    %c5_263 = arith.constant 5 : index
    %c0_264 = arith.constant 0 : index
    %c0_265 = arith.constant 0 : index
    %322 = vector.load %arg7[%c5_263, %c0_264, %c0_265] : memref<9x2x32xf32, #tpu.memory_space<vmem>>, vector<1x2x32xf32>
    %323 = vector.shape_cast %322 : vector<1x2x32xf32> to vector<2x32xf32>
    %324 = vector.extract_strided_slice %289 {offsets = [0, 1], sizes = [32, 323], strides = [1, 1]} : vector<32x324xf32> to vector<32x323xf32>
    %cst_266 = arith.constant 0.000000e+00 : f32
    %325 = vector.broadcast %cst_266 : f32 to vector<32x1xf32>
    %326 = tpu.concatenate %324, %325 in 1 : vector<32x323xf32>, vector<32x1xf32> -> vector<32x324xf32>
    %cst_267 = arith.constant dense<0.000000e+00> : vector<2x324xf32>
    %327 = tpu.matmul %323, %326, %cst_267 {dimension_numbers = #tpu.dot_dimension_numbers<[1], [0], [0], [1], [0, 0, 1, 1], [], []>} : vector<2x32xf32>, vector<32x324xf32>, vector<2x324xf32> -> vector<2x324xf32>
    %328 = arith.addf %321, %327 : vector<2x324xf32>
    %c6_268 = arith.constant 6 : index
    %c0_269 = arith.constant 0 : index
    %c0_270 = arith.constant 0 : index
    %329 = vector.load %arg7[%c6_268, %c0_269, %c0_270] : memref<9x2x32xf32, #tpu.memory_space<vmem>>, vector<1x2x32xf32>
    %330 = vector.shape_cast %329 : vector<1x2x32xf32> to vector<2x32xf32>
    %331 = vector.extract_strided_slice %289 {offsets = [0, 17], sizes = [32, 307], strides = [1, 1]} : vector<32x324xf32> to vector<32x307xf32>
    %cst_271 = arith.constant 0.000000e+00 : f32
    %332 = vector.broadcast %cst_271 : f32 to vector<32x17xf32>
    %333 = tpu.concatenate %331, %332 in 1 : vector<32x307xf32>, vector<32x17xf32> -> vector<32x324xf32>
    %cst_272 = arith.constant dense<0.000000e+00> : vector<2x324xf32>
    %334 = tpu.matmul %330, %333, %cst_272 {dimension_numbers = #tpu.dot_dimension_numbers<[1], [0], [0], [1], [0, 0, 1, 1], [], []>} : vector<2x32xf32>, vector<32x324xf32>, vector<2x324xf32> -> vector<2x324xf32>
    %335 = arith.addf %328, %334 : vector<2x324xf32>
    %c7_273 = arith.constant 7 : index
    %c0_274 = arith.constant 0 : index
    %c0_275 = arith.constant 0 : index
    %336 = vector.load %arg7[%c7_273, %c0_274, %c0_275] : memref<9x2x32xf32, #tpu.memory_space<vmem>>, vector<1x2x32xf32>
    %337 = vector.shape_cast %336 : vector<1x2x32xf32> to vector<2x32xf32>
    %338 = vector.extract_strided_slice %289 {offsets = [0, 18], sizes = [32, 306], strides = [1, 1]} : vector<32x324xf32> to vector<32x306xf32>
    %cst_276 = arith.constant 0.000000e+00 : f32
    %339 = vector.broadcast %cst_276 : f32 to vector<32x18xf32>
    %340 = tpu.concatenate %338, %339 in 1 : vector<32x306xf32>, vector<32x18xf32> -> vector<32x324xf32>
    %cst_277 = arith.constant dense<0.000000e+00> : vector<2x324xf32>
    %341 = tpu.matmul %337, %340, %cst_277 {dimension_numbers = #tpu.dot_dimension_numbers<[1], [0], [0], [1], [0, 0, 1, 1], [], []>} : vector<2x32xf32>, vector<32x324xf32>, vector<2x324xf32> -> vector<2x324xf32>
    %342 = arith.addf %335, %341 : vector<2x324xf32>
    %c8_278 = arith.constant 8 : index
    %c0_279 = arith.constant 0 : index
    %c0_280 = arith.constant 0 : index
    %343 = vector.load %arg7[%c8_278, %c0_279, %c0_280] : memref<9x2x32xf32, #tpu.memory_space<vmem>>, vector<1x2x32xf32>
    %344 = vector.shape_cast %343 : vector<1x2x32xf32> to vector<2x32xf32>
    %345 = vector.extract_strided_slice %289 {offsets = [0, 19], sizes = [32, 305], strides = [1, 1]} : vector<32x324xf32> to vector<32x305xf32>
    %cst_281 = arith.constant 0.000000e+00 : f32
    %346 = vector.broadcast %cst_281 : f32 to vector<32x19xf32>
    %347 = tpu.concatenate %345, %346 in 1 : vector<32x305xf32>, vector<32x19xf32> -> vector<32x324xf32>
    %cst_282 = arith.constant dense<0.000000e+00> : vector<2x324xf32>
    %348 = tpu.matmul %344, %347, %cst_282 {dimension_numbers = #tpu.dot_dimension_numbers<[1], [0], [0], [1], [0, 0, 1, 1], [], []>} : vector<2x32xf32>, vector<32x324xf32>, vector<2x324xf32> -> vector<2x324xf32>
    %349 = arith.addf %342, %348 : vector<2x324xf32>
    %350 = vector.broadcast %290 : vector<2x1xf32> to vector<2x324xf32>
    %351 = arith.addf %349, %350 : vector<2x324xf32>
    %c0_283 = arith.constant 0 : index
    %c0_284 = arith.constant 0 : index
    %c0_285 = arith.constant 0 : index
    %352 = vector.load %arg1[%c0_283, %c0_284, %c0_285] : memref<1x2x324xf32, #tpu.memory_space<vmem>>, vector<1x2x324xf32>
    %353 = vector.shape_cast %352 : vector<1x2x324xf32> to vector<2x324xf32>
    %354 = arith.addf %351, %353 : vector<2x324xf32>
    %c0_286 = arith.constant 0 : index
    %c0_287 = arith.constant 0 : index
    %c0_288 = arith.constant 0 : index
    %355 = vector.load %arg9[%c0_286, %c0_287, %c0_288] : memref<1x2x324xf32, #tpu.memory_space<vmem>>, vector<1x2x324xf32>
    %356 = vector.shape_cast %355 : vector<1x2x324xf32> to vector<2x324xf32>
    %357 = vector.shape_cast %354 : vector<2x324xf32> to vector<1x2x324xf32>
    tpu.vector_store %arg9[%c0_286, %c0_287, %c0_288], %357 {strides = array<i32>} : memref<1x2x324xf32, #tpu.memory_space<vmem>>, vector<1x2x324xf32>,
    return
  }
  func.func @transform_0(%arg0: i32) -> (i32, i32, i32) {
    %c0_i32 = arith.constant 0 : i32
    %c0_i32_0 = arith.constant 0 : i32
    %c0_i32_1 = arith.constant 0 : i32
    return %arg0, %c0_i32, %c0_i32_0 : i32, i32, i32
  }
  func.func @transform_1(%arg0: i32) -> (i32, i32) {
    %c0_i32 = arith.constant 0 : i32
    %c0_i32_0 = arith.constant 0 : i32
    %c0_i32_1 = arith.constant 0 : i32
    return %c0_i32, %c0_i32_0 : i32, i32
  }
  func.func @transform_2(%arg0: i32) -> (i32, i32, i32) {
    %c0_i32 = arith.constant 0 : i32
    %c0_i32_0 = arith.constant 0 : i32
    %c0_i32_1 = arith.constant 0 : i32
    %c0_i32_2 = arith.constant 0 : i32
    return %c0_i32, %c0_i32_0, %c0_i32_1 : i32, i32, i32
  }
  func.func @transform_3(%arg0: i32) -> (i32, i32) {
    %c0_i32 = arith.constant 0 : i32
    %c0_i32_0 = arith.constant 0 : i32
    %c0_i32_1 = arith.constant 0 : i32
    return %c0_i32, %c0_i32_0 : i32, i32
  }
  func.func @transform_4(%arg0: i32) -> (i32, i32, i32, i32) {
    %c0_i32 = arith.constant 0 : i32
    %c0_i32_0 = arith.constant 0 : i32
    %c0_i32_1 = arith.constant 0 : i32
    %c0_i32_2 = arith.constant 0 : i32
    %c0_i32_3 = arith.constant 0 : i32
    return %c0_i32, %c0_i32_0, %c0_i32_1, %c0_i32_2 : i32, i32, i32, i32
  }
  func.func @transform_5(%arg0: i32) -> (i32, i32, i32) {
    %c0_i32 = arith.constant 0 : i32
    %c0_i32_0 = arith.constant 0 : i32
    %c0_i32_1 = arith.constant 0 : i32
    %c0_i32_2 = arith.constant 0 : i32
    return %c0_i32, %c0_i32_0, %c0_i32_1 : i32, i32, i32
  }
  func.func @transform_6(%arg0: i32) -> (i32, i32, i32) {
    %c0_i32 = arith.constant 0 : i32
    %c0_i32_0 = arith.constant 0 : i32
    %c0_i32_1 = arith.constant 0 : i32
    %c0_i32_2 = arith.constant 0 : i32
    return %c0_i32, %c0_i32_0, %c0_i32_1 : i32, i32, i32
  }
  func.func @transform_7(%arg0: i32) -> (i32, i32) {
    %c0_i32 = arith.constant 0 : i32
    %c0_i32_0 = arith.constant 0 : i32
    %c0_i32_1 = arith.constant 0 : i32
    return %c0_i32, %c0_i32_0 : i32, i32
  }
  func.func @transform_8(%arg0: i32) -> (i32, i32, i32) {
    %c0_i32 = arith.constant 0 : i32
    %c0_i32_0 = arith.constant 0 : i32
    %c0_i32_1 = arith.constant 0 : i32
    return %arg0, %c0_i32, %c0_i32_0 : i32, i32, i32
  }
}

</mosaic_0001>

<bundles_post_ra>
// kernel: tpu_custom_call.1
= control target key start
LH: loop header
LB: loop body
LE: loop exit
PB: predicated region body
PF: predicated region fallthrough
CT: control target
= control target key end

     0   :  { %s16952_s0 = inlined_call_operand.vmem [shape: f32[2,2,324], index: 0, kind: input, shape index: {}]   ;;  %s16953_s1 = inlined_call_operand.vmem [shape: f32[1,324], index: 1, kind: input, shape index: {}]   ;;  %s16954_s2 = inlined_call_operand.vmem [shape: f32[9,32,2], index: 2, kind: input, shape index: {}]   ;;  %s16955_s3 = inlined_call_operand.vmem [shape: f32[32,1], index: 3, kind: input, shape index: {}]   ;;  %s16956_s4 = inlined_call_operand.hbm [shape: f32[3,9,32,32], index: 4, kind: input, shape index: {}]   ;;  %s16957_s5 = inlined_call_operand.vmem [shape: f32[3,32,1], index: 5, kind: input, shape index: {}]   ;;  %s16958_s6 = inlined_call_operand.vmem [shape: f32[9,2,32], index: 6, kind: input, shape index: {}]   ;;  %s16959_s7 = inlined_call_operand.vmem [shape: f32[2,1], index: 7, kind: input, shape index: {}]   ;;  %s16960_s8 = inlined_call_operand.hbm [shape: f32[2,2,324], index: 8, kind: output, shape index: {}]  }
   0x1   :  { %16989 = sst [smem:[#allocation9_spill]] %s16952_s0 }
   0x2   :  { %16990 = sst [smem:[#allocation10_spill]] %s16953_s1 }
   0x3   :  { %16991 = sst [smem:[#allocation11_spill]] %s16954_s2 }
   0x4   :  { %16992 = sst [smem:[#allocation12_spill]] %s16955_s3 }
   0x5   :  { %13 = vsyncpa [#allocation4], 0 }
   0x6   :  { %14 = vsyncpa [#allocation5], 0 }
   0x7   :  { %16 = vsyncpa [#allocation5 + $0x1], 0  ;;  %s14797_s27 = smov 0   ;;  %s14799_s28 = smov 0  }
   0x8   :  { %s14801_s29 = smov 0   ;;  %s14803_s30 = smov 0  }
   0x9 LB: > { %s14818_s9 = sadd.s32 4294967295, %s14733_s30   ;;  %s11123_s10 = sadd.s32 4294967294, %s14733_s30   ;;  %s14733_s30 = sphi %s14803_s30, %s17186_s30   ;;  %s14729_s29 = sphi %s14801_s29, %s17185_s29   ;;  %s14725_s28 = sphi %s14799_s28, %s17184_s28   ;;  %s14721_s27 = sphi %s14797_s27, %s17183_s27  }
   0xa   : > { %s14822_s11 = sadd.s32 1, %s14733_s30   ;;  %s202_s12 = sadd.s32 1, %s14729_s29 }
   0xb   : > { %s199_s13 = ssub.s32 %s14733_s30, %s14822_s11  ;;  %p212_p0 = scmp.ne.s32.totalorder %s14729_s29, %s14725_s28 }
   0xc   : > { %p200_p1 = scmp.eq.s32.totalorder %s199_s13, 0  ;;  %p213_p2 = scmp.eq.s32.totalorder %s14818_s9, 1 }
   0xd   : > { %p218_p3 = scmp.ne.s32.totalorder %s14725_s28, %s14721_s27  ;;  %p219_p4 = scmp.eq.s32.totalorder %s11123_s10, 1 }
   0xe   : > { %s14833_s14 = scalar_select %p200_p1, %s14729_s29, %s202_s12  }
   0xf   : > { %p14835_p5 = por %p213_p2, %p212_p0  ;;  %p14839_p6 = por %p219_p4, %p218_p3 }
  0x10   : > { %p11124_p7 = scmp.ge.s32.totalorder %s14733_s30, 1  ;;  %p226_p8 = scmp.lt.s32.totalorder %s14733_s30, 3 }
  0x11   : > { %s16993_s15 = scalar_select %p14835_p5, 1, 0 }
  0x12   : > { %s16994_s16 = scalar_select %p14839_p6, 1, 0 }
  0x13   : > { %p16961_p9 = scmp.eq.s32.totalorder %s14818_s9, 0  ;;  %p14846_p10 = pnand %p11124_p7, %p226_p8 }
  0x14   : > { %s14735_s18 = smov [#allocation3]   ;;  %s14639_s23 = scalar_lea.hbm %s16956_s4, 13824 }
  0x15   : > { %s16995_s17 = scalar_select %p14846_p10, 1, 0 }
  0x16   : > { %s247_s19 = sshll.u32 %s14735_s18, 4  ;;  %p13616_p11 = pneg %p14846_p10  ;;  %s248_s19 = int_to_ptr.vmem [resolvable:$true] %s247_s19 }
  0x17   : > { %p14640_p13 = scmp.ne.s32.totalorder %s16956_s4, %s14639_s23  ;;  %p14646_p3 = scmp.lt.u32.totalorder %s14639_s23, %s16956_s4 }
  0x18   : > { %p14854_p12 = pnand %p16961_p9, %p13616_p11 }
  0x1a   : > { %p14641_p0 = pneg %p14854_p12 }
  0x1c   : > { %p14642_p1 = pnand %p14641_p0, %p14640_p13 }
  0x1e   : > { %p14643_p2 = pneg %p14642_p1 }
  0x20   : > { %p14648_p4 = pnand %p14646_p3, %p14643_p2 }
  0x22   : > { %14651 = shalt.err (!%p14648_p4)
}
  0x23   : > { %s14652_s12 = scalar_lea.vmem %s248_s19, 13824  ;;  %p14660_p9 = scmp.lt.s32.totalorder %s248_s19, %s248_s19 }
  0x24   : > { %p14653_p7 = scmp.ne.s32.totalorder %s248_s19, %s14652_s12  ;;  %p14661_p6 = scmp.lt.s32.totalorder %s14652_s12, %s14652_s12 }
  0x26   : > { %p14655_p8 = pnand %p14653_p7, %p14641_p0  ;;  %p14662_p5 = por %p14661_p6, %p14660_p9 }
  0x28   : > { %p14656_p11 = pneg %p14655_p8 }
  0x2a   : > { %p14663_p10 = pnand %p14662_p5, %p14656_p11 }
  0x2c   : > { %14666 = shalt.err (!%p14663_p10)
}
  0x2d   : > { %s14736_s13 = smov 128   ;;  %s14737_s18 = smov 8  }
  0x2e   : > { %13619 = dma.hbm_to_vmem [thread:$0]  (!%p14854_p12), %s16956_s4, 13824, %s248_s19, [#allocation4], %s14736_s13, %s14736_s13, %s14737_s18  }
  0x2f   : > { %p16997_p13 = scmp.ne.s32.totalorder %s16995_s17, 0 }
  0x30   : > { %p16998_p1 = scmp.eq.s32.totalorder (!%p16997_p13), %s14818_s9, 0 }
  0x31   : > { %280 = sbr.rel (%p16997_p13) target bundleno = 2701 (0xa8d), region = 52 }
  0x38   : > { %14712 = dma.done.wait (%p16998_p1), [#allocation4], 13824   ;;  %p16999_p0 = pmov %p16998_p1 }
  0x39   : > { %p314_p5 = scmp.lt.s32.totalorder %s14818_s9, 1  ;;  %v334_v0 = vlaneseq  ;;  %v14738_v1 = vmov 1983009808   ;;  %v14739_v5 = vmov 0.0   ;;  %s17000_s0 = sld [smem:[#allocation9_spill]]  ;;  %vm373_vm0 = vcmask 15360  }
  0x3a   : > { %14714 = vsyncadd (%p16999_p0), [#allocation4], 4294953472  ;;  %v332_v2 = vunpack.c.l.s4 %v14738_v1  ;;  %458 = vmatprep.mubr.f32.mxu0 %v14739_v5  ;;  %s17001_s2 = sld [smem:[#allocation11_spill]]  ;;  %s16980_s10 = smov 19   ;;  %vm16978_vm1 = vcmask 154624   ;;  %vm16977_vm2 = vcmask 146432  }
  0x3b   : > { %s315_s20 = scalar_select %p314_p5, %s14818_s9, 1  ;;  %v14882_v3 = vshrl.u32 %v334_v0, 7  ;;  %vm16976_vm3 = vcmask 1041408   ;;  %vm16979_vm4 = vcmask 138240   ;;  %v14748_v36 = vmov 0   ;;  %vm11261_vm15 = vmneg %vm16977_vm2 }
  0x3c   : > { %v333_v4 = vunpack.c.0.s8 %v332_v2  ;;  %s16982_s12 = smov 18   ;;  %s16974_s13 = smov 17   ;;  %13676 = vset.pattern.permute.xlu1 %v14748_v36  ;;  %13675 = vset.pattern.permute.xlu0 %v14748_v36  ;;  %vm993_vm5 = vcmask 7168   ;;  %vm1427_vm6 = vcmask 547840   ;;  %vm16988_vm7 = vcmask 1039360  }
  0x3d   : > { %s13608_s17 = smul.u32 6, %s315_s20  ;;  %s16972_s18 = smov 1   ;;  %vm1649_vm8 = vcmask 416768   ;;  %vm1871_vm9 = vcmask 408576   ;;  %vm16987_vm10 = vcmask 908288   ;;  %vm2093_vm11 = vcmask 400384  }
  0x3e   : > { %v14886_v6 = vsub.s32 %v333_v4, %v14882_v3  ;;  %s16970_s21 = smov 127   ;;  %s16968_s22 = smov 111   ;;  %vm16986_vm12 = vcmask 900096   ;;  %vm16985_vm13 = vcmask 891904   ;;  %vm16984_vm14 = vcmask 556032  }
  0x3f   : > { %s14891_s24 = scalar_lea.vmem %s17000_s0, %s13608_s17  ;;  %s16966_s20 = smov 110  }
  0x40   : > { %v320_v7 = vld [vmem:[%s14891_s24] sm:$0x3f]  ;;  %s16964_s17 = smov 109   ;;  %v11131_v23 = vld [vmem:[%s17001_s2 + $0x28] sm:$0xff]  ;;  %v11132_v27 = vld [vmem:[%s17001_s2 + $0x30] sm:$0xff]  ;;  %s17002_s3 = sld [smem:[#allocation12_spill]] }
  0x41   : > { %v11130_v8 = vld [vmem:[%s17001_s2 + $0x20] sm:$0xff]  ;;  %v14898_v9 = vrot.slane %v320_v7, %v14886_v6  ;;  %v330_v11 = vcombine.high %v320_v7, %v320_v7  ;;  %v11133_v30 = vld [vmem:[%s17001_s2 + $0x38] sm:$0xff]  ;;  %v326_v42 = vld [vmem:[%s17001_s2 + $0x8] sm:$0xff]  ;;  %s17003_s1 = sld [smem:[#allocation10_spill]]  ;;  %s17004_s25 = smov 110  }
  0x42   : > { %12014 = vmatprep.mubr.msk.f32.mxu1 %vm373_vm0, %v11130_v8  ;;  %v325_v35 = vld [vmem:[%s17001_s2] sm:$0xff]  ;;  %v327_v47 = vld [vmem:[%s17001_s2 + $0x10] sm:$0xff]  ;;  %v328_v52 = vld [vmem:[%s17001_s2 + $0x18] sm:$0xff]  ;;  %s17005_s26 = smov 109   ;;  %s17062_s0 = smov 18  }
  0x43   : > { %346 = vrot.lane.b32.xlu1 %v14898_v9, %s16980_s10  ;;  %362 = vrot.lane.b32.xlu0 %v14898_v9, %s16982_s12  ;;  %v14907_v10 = vcombine.high %v14898_v9, %v14898_v9  ;;  %v14922_v12 = vrot.slane %v330_v11, %v14886_v6  ;;  %v11156_v53 = vld [vmem:[%s17001_s2 + $0x40] sm:$0xff]  ;;  %v11157_v55 = vld [vmem:[%s17001_s2 + $0x48] sm:$0xff]  ;;  %p17181_p9 = scmp.ne.s32.totalorder %s16993_s15, 0 }
  0x44   : > { %v11158_v57 = vld [vmem:[%s17001_s2 + $0x50] sm:$0xff]  ;;  %v11159_v58 = vld [vmem:[%s17001_s2 + $0x58] sm:$0xff]  ;;  %v11171_v59 = vld [vmem:[%s17001_s2 + $0x60] sm:$0xff] }
  0x45   : > { %v11172_v60 = vld [vmem:[%s17001_s2 + $0x68] sm:$0xff]  ;;  %v11173_v61 = vld [vmem:[%s17001_s2 + $0x70] sm:$0xff]  ;;  %v11174_v63 = vld [vmem:[%s17001_s2 + $0x78] sm:$0xff] }
  0x46   : > { %v321_v33 = vld [vmem:[%s17002_s3] sm:$0xff]  ;;  %v322_v43 = vld [vmem:[%s17002_s3 + $0x8] sm:$0xff]  ;;  %v324_v44 = vld [vmem:[%s17002_s3 + $0x18] sm:$0xff] }
  0x47   : > { %348 = vrot.lane.b32.xlu1 %v14907_v10, %s16980_s10  ;;  %364 = vrot.lane.b32.xlu0 %v14907_v10, %s16982_s12  ;;  %v323_v48 = vld [vmem:[%s17002_s3 + $0x10] sm:$0xff]  ;;  %v11186_v0 = vld [vmem:[%s17001_s2 + $0x80] sm:$0xff] }
  0x48   : > { %v11187_v1 = vld [vmem:[%s17001_s2 + $0x88] sm:$0xff]  ;;  %v11188_v2 = vld [vmem:[%s17001_s2 + $0x90] sm:$0xff]  ;;  %v15143_v11 = vld [vmem:[%s17001_s2 + $0xa0] sm:$0xff] }
  0x4b   : > { %768 = vrot.lane.b32.xlu1 %v14907_v10, %s16974_s13  ;;  %766 = vrot.lane.b32.xlu0 %v14898_v9, %s16974_s13 }
  0x4f   : > { %989 = vrot.lane.b32.xlu1 %v14907_v10, %s16972_s18  ;;  %987 = vrot.lane.b32.xlu0 %v14898_v9, %s16972_s18 }
  0x53   : > { %1419 = vrot.lane.b32.xlu0 %v14907_v10, %s16970_s21  ;;  %1421 = vrot.lane.b32.xlu1 %v14922_v12, %s16970_s21 }
  0x57   : > { %1417 = vrot.lane.b32.xlu0 %v14898_v9, %s16970_s21  ;;  %366 = vrot.lane.b32.xlu1 %v14922_v12, %s16982_s12 }
  0x5b   : > { %350 = vrot.lane.b32.xlu0 %v14922_v12, %s16980_s10  ;;  %1641 = vrot.lane.b32.xlu1 %v14907_v10, %s16968_s22 }
  0x5f   : > { %1643 = vrot.lane.b32.xlu0 %v14922_v12, %s16968_s22  ;;  %1639 = vrot.lane.b32.xlu1 %v14898_v9, %s16968_s22 }
  0x63   : > { %770 = vrot.lane.b32.xlu0 %v14922_v12, %s16974_s13  ;;  %991 = vrot.lane.b32.xlu1 %v14922_v12, %s16972_s18 }
  0x67   : > { %1863 = vrot.lane.b32.xlu0 %v14907_v10, %s16966_s20  ;;  %1865 = vrot.lane.b32.xlu1 %v14922_v12, %s16966_s20 }
  0x6b   : > { %1861 = vrot.lane.b32.xlu0 %v14898_v9, %s16966_s20  ;;  %2085 = vrot.lane.b32.xlu1 %v14907_v10, %s16964_s17  ;;  %s14751_s20 = smov [#allocation6]  }
  0x6f   : > { %2087 = vrot.lane.b32.xlu0 %v14922_v12, %s16964_s17  ;;  %2083 = vrot.lane.b32.xlu1 %v14898_v9, %s16964_s17  ;;  %s14671_s17 = sshll.u32 %s14751_s20, 4  ;;  %s14672_s17 = int_to_ptr.vmem [resolvable:$false] %s14671_s17 }
  0x70   : > { %s14673_s19 = scalar_lea.vmem %s14672_s17, 192 }
  0x73   : > { %2302 = vperm.xlu0 %13675, %v321_v33   ;;  %2307 = vperm.xlu1 %13676, %v322_v43   ;;  %v319_v43 = vld [vmem:[%s17003_s1] sm:$0x7]  ;;  %s17067_s1 = smov 19  }
  0x77   : > { %2317 = vperm.xlu0 %13675, %v324_v44   ;;  %2312 = vperm.xlu1 %13676, %v323_v48  }
  0xb5   : > { %v347_v13 = vpop.permute.xlu1 %346  ;;  %v363_v14 = vpop.permute.xlu0 %362 }
  0xb6   : > { %v356_v19 = vsel %vm16978_vm1, 0.0, %v347_v13  ;;  %v372_v20 = vsel %vm16977_vm2, 0.0, %v363_v14 }
  0xb9   : > { %v349_v15 = vpop.permute.xlu1 %348  ;;  %v365_v16 = vpop.permute.xlu0 %364 }
  0xba   : > { %v369_v17 = vsel %vm16977_vm2, %v363_v14, %v365_v16  ;;  %v353_v18 = vsel %vm16978_vm1, %v347_v13, %v349_v15  ;;  %v15160_v13 = vld [vmem:[%s17001_s2 + $0xb0] sm:$0xff] }
  0xbb   : > { %11134 = vmatprep.subr.msk.mxu0 %vm16976_vm3, %v369_v17  ;;  %v15178_v17 = vld [vmem:[%s17001_s2 + $0xc0] sm:$0xff] }
  0xbc   : > { %11135 = vmatpush1.msk.msra.mxu0 %vm16976_vm3, %v372_v20 }
  0xbd   : > { %v14962_v21 = vpop.permute.xlu1 %768  ;;  %11136 = vmatmul.mubr.msk.f32.vlgmr.msra.gmra.mrb[0].mxu0 %vm373_vm0, %v11130_v8  ;;  %11145 = vmatprep.subr.msk.mxu0 %vm16976_vm3, %v353_v18  ;;  %v767_v22 = vpop.permute.xlu0 %766  ;;  %v11189_v8 = vld [vmem:[%s17001_s2 + $0x98] sm:$0xff]  ;;  %v11217_v18 = vld [vmem:[%s17001_s2 + $0xc8] sm:$0xff] }
  0xbe   : > { %11146 = vmatpush1.msk.msra.mxu0 %vm16976_vm3, %v356_v19  ;;  %464 = vmatprep.mubr.f32.mxu0 %v14739_v5  ;;  %v773_v24 = vsel %vm16979_vm4, %v767_v22, %v14962_v21  ;;  %v776_v37 = vsel %vm16979_vm4, 0.0, %v767_v22 }
  0xbf   : > { %11160 = vmatprep.subr.msk.mxu0 %vm16976_vm3, %v773_v24  ;;  %v11219_v24 = vld [vmem:[%s17001_s2 + $0xd8] sm:$0xff] }
  0xc1   : > { %v14974_v25 = vpop.permute.xlu1 %989  ;;  %11137 = vmatmul.mubr.msk.f32.gmra.mrb[2].mxu0 %vm373_vm0, %v11131_v23  ;;  %v14977_v26 = vpop.permute.xlu0 %987 }
  0xc2   : > { %470 = vmatprep.mubr.f32.mxu0 %v14739_v5  ;;  %v994_v40 = vsel %vm993_vm5, %v14977_v26, %v14974_v25  ;;  %v997_v56 = vsel %vm993_vm5, 0.0, %v14977_v26  ;;  %v11232_v26 = vld [vmem:[%s17001_s2 + $0xe8] sm:$0xff] }
  0xc5   : > { %11138 = vmatmul.mubr.msk.f32.gmra.mrb[4].mxu0 %vm373_vm0, %v11132_v27  ;;  %v14984_v28 = vpop.permute.xlu0 %1419  ;;  %v14986_v29 = vpop.permute.xlu1 %1421 }
  0xc6   : > { %476 = vmatprep.mubr.f32.mxu0 %v14739_v5  ;;  %v1428_v62 = vsel %vm1427_vm6, %v14986_v29, 0.0  ;;  %v1425_v4 = vsel %vm16988_vm7, %v14984_v28, %v14986_v29  ;;  %v11246_v29 = vld [vmem:[%s17001_s2 + $0x100] sm:$0xff] }
  0xc9   : > { %11139 = vmatmul.mubr.msk.f32.gmra.mrb[6].mxu0 %vm373_vm0, %v11133_v30  ;;  %v14993_v31 = vpop.permute.xlu0 %1417  ;;  %v367_v32 = vpop.permute.xlu1 %366 }
  0xca   : > { %v370_v34 = vsel %vm16977_vm2, %v365_v16, %v367_v32  ;;  %651 = vmatprep.mubr.f32.mxu0 %v14739_v5  ;;  %v11204_v16 = vld [vmem:[%s17001_s2 + $0xb8] sm:$0xff]  ;;  %v1424_v20 = vsel %vm16988_vm7, %v14993_v31, %v14984_v28  ;;  %v11248_v32 = vld [vmem:[%s17001_s2 + $0x110] sm:$0xff] }
  0xcb   : > { %12012 = vmatprep.subr.msk.mxu1 %vm16976_vm3, %v370_v34  ;;  %v11234_v28 = vld [vmem:[%s17001_s2 + $0xf8] sm:$0xff] }
  0xcc   : > { %12013 = vmatpush3.msk.msra.mxu1 %vm16976_vm3, %v370_v34  ;;  %v11249_v34 = vld [vmem:[%s17001_s2 + $0x118] sm:$0xff] }
  0xcd   : > { %11147 = vmatmul.mubr.msk.f32.vlgmr.msra.gmra.mrb[0].mxu0 %vm373_vm0, %v325_v35  ;;  %v351_v38 = vpop.permute.xlu0 %350  ;;  %12015 = vmatmul.mubr.msk.f32.vlgmr.msra.gmra.mrb[0].mxu1 %vm373_vm0, %v11131_v23  ;;  %v15008_v39 = vpop.permute.xlu1 %1641 }
  0xce   : > { %v354_v41 = vsel %vm16978_vm1, %v349_v15, %v351_v38  ;;  %657 = vmatprep.mubr.f32.mxu0 %v14739_v5  ;;  %11161 = vmatpush1.msk.msra.mxu0 %vm16976_vm3, %v776_v37 }
  0xcf   : > { %12020 = vmatprep.subr.msk.mxu1 %vm16976_vm3, %v354_v41  ;;  %12017 = vmatprep.mubr.msk.f32.mxu1 %vm373_vm0, %v11132_v27  ;;  %v11233_v27 = vld [vmem:[%s17001_s2 + $0xf0] sm:$0xff] }
  0xd0   : > { %12021 = vmatpush3.msk.msra.mxu1 %vm16976_vm3, %v354_v41  ;;  %11175 = vmatprep.subr.msk.mxu0 %vm16976_vm3, %v994_v40  ;;  %v2355_v41 = vsub.s32 2, %v14882_v3 }
  0xd1   : > { %11148 = vmatmul.mubr.msk.f32.gmra.mrb[2].mxu0 %vm373_vm0, %v326_v42  ;;  %v15030_v45 = vpop.permute.xlu0 %1643  ;;  %12018 = vmatmul.mubr.msk.f32.gmra.mrb[2].mxu1 %vm373_vm0, %v11133_v30  ;;  %v15033_v46 = vpop.permute.xlu1 %1639  ;;  %v11247_v30 = vld [vmem:[%s17001_s2 + $0x108] sm:$0xff] }
  0xd2   : > { %663 = vmatprep.mubr.f32.mxu0 %v14739_v5  ;;  %12022 = vmatprep.mubr.msk.f32.mxu1 %vm373_vm0, %v325_v35  ;;  %v1650_v7 = vsel %vm1649_vm8, %v15030_v45, 0.0  ;;  %v1647_v22 = vsel %vm16987_vm10, %v15008_v39, %v15030_v45  ;;  %v1646_v31 = vsel %vm16987_vm10, %v15033_v46, %v15008_v39  ;;  %v15306_v45 = vrot.slane %v319_v43, %v2355_v41 }
  0xd5   : > { %11149 = vmatmul.mubr.msk.f32.gmra.mrb[4].mxu0 %vm373_vm0, %v327_v47  ;;  %v771_v49 = vpop.permute.xlu0 %770  ;;  %12023 = vmatmul.mubr.msk.f32.vlgmr.msra.gmra.mrb[0].mxu1 %vm373_vm0, %v326_v42  ;;  %v992_v50 = vpop.permute.xlu1 %991 }
  0xd6   : > { %v774_v51 = vsel %vm16979_vm4, %v14962_v21, %v771_v49  ;;  %669 = vmatprep.mubr.f32.mxu0 %v14739_v5  ;;  %12025 = vmatprep.mubr.msk.f32.mxu1 %vm373_vm0, %v327_v47  ;;  %v995_v54 = vsel %vm993_vm5, %v14974_v25, %v992_v50  ;;  %v11218_v21 = vld [vmem:[%s17001_s2 + $0xd0] sm:$0xff]  ;;  %v11231_v25 = vld [vmem:[%s17001_s2 + $0xe0] sm:$0xff] }
  0xd7   : > { %12028 = vmatprep.subr.msk.mxu1 %vm16976_vm3, %v774_v51 }
  0xd8   : > { %12029 = vmatpush3.msk.msra.mxu1 %vm16976_vm3, %v774_v51 }
  0xd9   : > { %11150 = vmatmul.mubr.msk.f32.gmra.mrb[6].mxu0 %vm373_vm0, %v328_v52  ;;  %12026 = vmatmul.mubr.msk.f32.gmra.mrb[2].mxu1 %vm373_vm0, %v328_v52 }
  0xda   : > { %860 = vmatprep.mubr.f32.mxu0 %v14739_v5  ;;  %12030 = vmatprep.mubr.msk.f32.mxu1 %vm373_vm0, %v11156_v53 }
  0xdb   : > { %12036 = vmatprep.subr.msk.mxu1 %vm16976_vm3, %v995_v54 }
  0xdd   : > { %11162 = vmatmul.mubr.msk.f32.vlgmr.msra.gmra.mrb[0].mxu0 %vm373_vm0, %v11156_v53  ;;  %12031 = vmatmul.mubr.msk.f32.vlgmr.msra.gmra.mrb[0].mxu1 %vm373_vm0, %v11157_v55 }
  0xde   : > { %866 = vmatprep.mubr.f32.mxu0 %v14739_v5  ;;  %11176 = vmatpush1.msk.msra.mxu0 %vm16976_vm3, %v997_v56 }
  0xdf   : > { %12037 = vmatpush3.msk.msra.mxu1 %vm16976_vm3, %v995_v54  ;;  %12033 = vmatprep.mubr.msk.f32.mxu1 %vm373_vm0, %v11158_v57 }
  0xe0   : > { %12044 = vmatprep.subr.msk.mxu1 %vm16976_vm3, %v14922_v12  ;;  %11190 = vmatprep.subr.msk.mxu0 %vm16976_vm3, %v14907_v10  ;;  %v15136_v10 = vpop.permute.xlu0 %1863 }
  0xe1   : > { %11163 = vmatmul.mubr.msk.f32.gmra.mrb[2].mxu0 %vm373_vm0, %v11157_v55  ;;  %12034 = vmatmul.mubr.msk.f32.gmra.mrb[2].mxu1 %vm373_vm0, %v11159_v58 }
  0xe2   : > { %872 = vmatprep.mubr.f32.mxu0 %v14739_v5  ;;  %12038 = vmatprep.mubr.msk.f32.mxu1 %vm373_vm0, %v11171_v59 }
  0xe4   : > { %v15162_v14 = vpop.permute.xlu0 %1861 }
  0xe5   : > { %11164 = vmatmul.mubr.msk.f32.gmra.mrb[4].mxu0 %vm373_vm0, %v11158_v57  ;;  %12039 = vmatmul.mubr.msk.f32.vlgmr.msra.gmra.mrb[0].mxu1 %vm373_vm0, %v11172_v60  ;;  %v1868_v35 = vsel %vm16986_vm12, %v15162_v14, %v15136_v10 }
  0xe6   : > { %878 = vmatprep.mubr.f32.mxu0 %v14739_v5  ;;  %12041 = vmatprep.mubr.msk.f32.mxu1 %vm373_vm0, %v11173_v61 }
  0xe7   : > { %12045 = vmatpush3.msk.msra.mxu1 %vm16976_vm3, %v14922_v12  ;;  %v1866_v12 = vpop.permute.xlu1 %1865 }
  0xe8   : > { %12052 = vmatprep.subr.msk.mxu1 %vm16976_vm3, %v1428_v62  ;;  %v1872_v15 = vsel %vm1871_vm9, %v1866_v12, 0.0  ;;  %v2088_v19 = vpop.permute.xlu0 %2087  ;;  %v1869_v33 = vsel %vm16986_vm12, %v15136_v10, %v1866_v12 }
  0xe9   : > { %11165 = vmatmul.mubr.msk.f32.gmra.mrb[6].mxu0 %vm373_vm0, %v11159_v58  ;;  %12042 = vmatmul.mubr.msk.f32.gmra.mrb[2].mxu1 %vm373_vm0, %v11174_v63  ;;  %v2094_v23 = vsel %vm2093_vm11, %v2088_v19, 0.0 }
  0xea   : > { %1081 = vmatprep.mubr.f32.mxu0 %v14739_v5  ;;  %12046 = vmatprep.mubr.msk.f32.mxu1 %vm373_vm0, %v11186_v0 }
  0xeb   : > { %v2086_v36 = vpop.permute.xlu1 %2085 }
  0xec   : > { %v2091_v37 = vsel %vm16985_vm13, %v2086_v36, %v2088_v19 }
  0xed   : > { %11177 = vmatmul.mubr.msk.f32.vlgmr.msra.gmra.mrb[0].mxu0 %vm373_vm0, %v11171_v59  ;;  %12047 = vmatmul.mubr.msk.f32.vlgmr.msra.gmra.mrb[0].mxu1 %vm373_vm0, %v11187_v1 }
  0xee   : > { %1087 = vmatprep.mubr.f32.mxu0 %v14739_v5  ;;  %11191 = vmatpush1.msk.msra.mxu0 %vm16976_vm3, %v14898_v9  ;;  %v15155_v9 = vld [vmem:[%s17001_s2 + $0xa8] sm:$0xff] }
  0xef   : > { %12049 = vmatprep.mubr.msk.f32.mxu1 %vm373_vm0, %v11188_v2  ;;  %12053 = vmatpush3.msk.msra.mxu1 %vm16976_vm3, %v1428_v62  ;;  %v2084_v38 = vpop.permute.xlu1 %2083 }
  0xf0   : > { %11205 = vmatprep.subr.msk.mxu0 %vm16976_vm3, %v1425_v4  ;;  %12060 = vmatprep.subr.msk.mxu1 %vm16976_vm3, %v1650_v7  ;;  %v2090_v39 = vsel %vm16985_vm13, %v2084_v38, %v2086_v36 }
  0xf1   : > { %11178 = vmatmul.mubr.msk.f32.gmra.mrb[2].mxu0 %vm373_vm0, %v11172_v60  ;;  %12050 = vmatmul.mubr.msk.f32.gmra.mrb[2].mxu1 %vm373_vm0, %v11189_v8 }
  0xf2   : > { %1093 = vmatprep.mubr.f32.mxu0 %v14739_v5  ;;  %12054 = vmatprep.mubr.msk.f32.mxu1 %vm373_vm0, %v15143_v11  ;;  %v2303_v40 = vpop.permute.xlu0 %2302 }
  0xf3   : > { %v2308_v42 = vpop.permute.xlu1 %2307 }
  0xf5   : > { %11179 = vmatmul.mubr.msk.f32.gmra.mrb[4].mxu0 %vm373_vm0, %v11173_v61  ;;  %12055 = vmatmul.mubr.msk.f32.vlgmr.msra.gmra.mrb[0].mxu1 %vm373_vm0, %v15155_v9 }
  0xf6   : > { %1099 = vmatprep.mubr.f32.mxu0 %v14739_v5  ;;  %12057 = vmatprep.mubr.msk.f32.mxu1 %vm373_vm0, %v15160_v13  ;;  %v2318_v49 = vpop.permute.xlu0 %2317 }
  0xf7   : > { %12061 = vmatpush3.msk.msra.mxu1 %vm16976_vm3, %v1650_v7  ;;  %v2313_v51 = vpop.permute.xlu1 %2312 }
  0xf8   : > { %12068 = vmatprep.subr.msk.mxu1 %vm16976_vm3, %v1872_v15 }
  0xf9   : > { %11180 = vmatmul.mubr.msk.f32.gmra.mrb[6].mxu0 %vm373_vm0, %v11174_v63  ;;  %12058 = vmatmul.mubr.msk.f32.gmra.mrb[2].mxu1 %vm373_vm0, %v11204_v16  ;;  %v2347_v63 = vsub.s32 0, %v14882_v3 }
  0xfa   : > { %1290 = vmatprep.mubr.f32.mxu0 %v14739_v5  ;;  %12062 = vmatprep.mubr.msk.f32.mxu1 %vm373_vm0, %v15178_v17 }
  0xfd   : > { %11192 = vmatmul.mubr.msk.f32.vlgmr.msra.gmra.mrb[0].mxu0 %vm373_vm0, %v11186_v0  ;;  %12063 = vmatmul.mubr.msk.f32.vlgmr.msra.gmra.mrb[0].mxu1 %vm373_vm0, %v11217_v18  ;;  %v2351_v0 = vsub.s32 1, %v14882_v3 }
  0xfe   : > { %11206 = vmatpush1.msk.msra.mxu0 %vm16976_vm3, %v1424_v20  ;;  %1296 = vmatprep.mubr.f32.mxu0 %v14739_v5 }
  0xff   : > { %12065 = vmatprep.mubr.msk.f32.mxu1 %vm373_vm0, %v11218_v21  ;;  %12069 = vmatpush3.msk.msra.mxu1 %vm16976_vm3, %v1872_v15 }
 0x100   : > { %11220 = vmatprep.subr.msk.mxu0 %vm16976_vm3, %v1647_v22  ;;  %12076 = vmatprep.subr.msk.mxu1 %vm16976_vm3, %v2094_v23 }
 0x101   : > { %11193 = vmatmul.mubr.msk.f32.gmra.mrb[2].mxu0 %vm373_vm0, %v11187_v1  ;;  %12066 = vmatmul.mubr.msk.f32.gmra.mrb[2].mxu1 %vm373_vm0, %v11219_v24 }
 0x102   : > { %1302 = vmatprep.mubr.f32.mxu0 %v14739_v5  ;;  %12070 = vmatprep.mubr.msk.f32.mxu1 %vm373_vm0, %v11231_v25 }
 0x105   : > { %11194 = vmatmul.mubr.msk.f32.gmra.mrb[4].mxu0 %vm373_vm0, %v11188_v2  ;;  %12071 = vmatmul.mubr.msk.f32.vlgmr.msra.gmra.mrb[0].mxu1 %vm373_vm0, %v11232_v26  ;;  %v15318_v2 = vrot.slane %v319_v43, %v2347_v63 }
 0x106   : > { %1308 = vmatprep.mubr.f32.mxu0 %v14739_v5  ;;  %12073 = vmatprep.mubr.msk.f32.mxu1 %vm373_vm0, %v11233_v27 }
 0x107   : > { %12077 = vmatpush3.msk.msra.mxu1 %vm16976_vm3, %v2094_v23 }
 0x109   : > { %11195 = vmatmul.mubr.msk.f32.gmra.mrb[6].mxu0 %vm373_vm0, %v11189_v8  ;;  %12074 = vmatmul.mubr.msk.f32.gmra.mrb[2].mxu1 %vm373_vm0, %v11234_v28  ;;  %v15320_v8 = vrot.slane %v319_v43, %v2351_v0 }
 0x10a   : > { %1512 = vmatprep.mubr.f32.mxu0 %v14739_v5  ;;  %12078 = vmatprep.mubr.msk.f32.mxu1 %vm373_vm0, %v11246_v29 }
 0x10d   : > { %11207 = vmatmul.mubr.msk.f32.vlgmr.msra.gmra.mrb[0].mxu0 %vm373_vm0, %v15143_v11  ;;  %12079 = vmatmul.mubr.msk.f32.vlgmr.msra.gmra.mrb[0].mxu1 %vm373_vm0, %v11247_v30 }
 0x10e   : > { %11221 = vmatpush1.msk.msra.mxu0 %vm16976_vm3, %v1646_v31  ;;  %1518 = vmatprep.mubr.f32.mxu0 %v14739_v5 }
 0x10f   : > { %12081 = vmatprep.mubr.msk.f32.mxu1 %vm373_vm0, %v11248_v32  ;;  %11235 = vmatprep.subr.msk.mxu0 %vm16976_vm3, %v1869_v33 }
 0x111   : > { %11208 = vmatmul.mubr.msk.f32.gmra.mrb[2].mxu0 %vm373_vm0, %v15155_v9  ;;  %12082 = vmatmul.mubr.msk.f32.gmra.mrb[2].mxu1 %vm373_vm0, %v11249_v34 }
 0x112   : > { %1524 = vmatprep.mubr.f32.mxu0 %v14739_v5  ;;  %2595 = vmatprep.mubr.f32.mxu1 %v14739_v5 }
 0x115   : > { %11209 = vmatmul.mubr.msk.f32.gmra.mrb[4].mxu0 %vm373_vm0, %v15160_v13 }
 0x116   : > { %1530 = vmatprep.mubr.f32.mxu0 %v14739_v5 }
 0x119   : > { %11210 = vmatmul.mubr.msk.f32.gmra.mrb[6].mxu0 %vm373_vm0, %v11204_v16 }
 0x11a   : > { %1734 = vmatprep.mubr.f32.mxu0 %v14739_v5 }
 0x11d   : > { %11222 = vmatmul.mubr.msk.f32.vlgmr.msra.gmra.mrb[0].mxu0 %vm373_vm0, %v15178_v17 }
 0x11e   : > { %11236 = vmatpush1.msk.msra.mxu0 %vm16976_vm3, %v1868_v35  ;;  %1740 = vmatprep.mubr.f32.mxu0 %v14739_v5 }
 0x11f   : > { %11250 = vmatprep.subr.msk.mxu0 %vm16976_vm3, %v2091_v37 }
 0x121   : > { %11223 = vmatmul.mubr.msk.f32.gmra.mrb[2].mxu0 %vm373_vm0, %v11217_v18 }
 0x122   : > { %1746 = vmatprep.mubr.f32.mxu0 %v14739_v5 }
 0x125   : > { %11224 = vmatmul.mubr.msk.f32.gmra.mrb[4].mxu0 %vm373_vm0, %v11218_v21 }
 0x126   : > { %1752 = vmatprep.mubr.f32.mxu0 %v14739_v5 }
 0x129   : > { %11225 = vmatmul.mubr.msk.f32.gmra.mrb[6].mxu0 %vm373_vm0, %v11219_v24 }
 0x12a   : > { %1956 = vmatprep.mubr.f32.mxu0 %v14739_v5 }
 0x12d   : > { %11237 = vmatmul.mubr.msk.f32.vlgmr.msra.gmra.mrb[0].mxu0 %vm373_vm0, %v11231_v25 }
 0x12e   : > { %11251 = vmatpush1.msk.msra.mxu0 %vm16976_vm3, %v2090_v39  ;;  %1962 = vmatprep.mubr.f32.mxu0 %v14739_v5  ;;  %vm11277_vm3 = vmneg %vm16978_vm1 }
 0x131   : > { %11238 = vmatmul.mubr.msk.f32.gmra.mrb[2].mxu0 %vm373_vm0, %v11232_v26 }
 0x132   : > { %1968 = vmatprep.mubr.f32.mxu0 %v14739_v5 }
 0x135   : > { %11239 = vmatmul.mubr.msk.f32.gmra.mrb[4].mxu0 %vm373_vm0, %v11233_v27 }
 0x136   : > { %1974 = vmatprep.mubr.f32.mxu0 %v14739_v5 }
 0x139   : > { %11240 = vmatmul.mubr.msk.f32.gmra.mrb[6].mxu0 %vm373_vm0, %v11234_v28 }
 0x13a   : > { %2178 = vmatprep.mubr.f32.mxu0 %v14739_v5 }
 0x13d   : > { %11252 = vmatmul.mubr.msk.f32.vlgmr.msra.gmra.mrb[0].mxu0 %vm373_vm0, %v11246_v29 }
 0x13e   : > { %2184 = vmatprep.mubr.f32.mxu0 %v14739_v5 }
 0x141   : > { %11253 = vmatmul.mubr.msk.f32.gmra.mrb[2].mxu0 %vm373_vm0, %v11247_v30 }
 0x142   : > { %2190 = vmatprep.mubr.f32.mxu0 %v14739_v5 }
 0x145   : > { %11254 = vmatmul.mubr.msk.f32.gmra.mrb[4].mxu0 %vm373_vm0, %v11248_v32 }
 0x146   : > { %2196 = vmatprep.mubr.f32.mxu0 %v14739_v5 }
 0x149   : > { %11255 = vmatmul.mubr.msk.f32.gmra.mrb[6].mxu0 %vm373_vm0, %v11249_v34  ;;  %vm15455_vm0 = vmpackc.low %vm11261_vm15, %vm11261_vm15  ;;  %vm2518_vm15 = vcmask 261120  }
 0x14a   : > { %4880 = vmatprep.mubr.f32.mxu0 %v14739_v5 }
 0x1e0   : > { %v12080_v44 = vpop.f32.mrb[0].mxu1 }
 0x1e1   : > { %v2269_v46 = vpop.f32.mrb[1].mxu1  ;;  %v2325_v47 = vadd.f32 %v12080_v44, %v2308_v42 }
 0x1e2   : > { %v2322_v48 = vadd.f32 %v2303_v40, %v2269_v46 }
 0x1e3   : > { %v2337_v50 = vmax.f32 %v2325_v47, 0.0 }
 0x1e4   : > { %v2334_v52 = vmax.f32 %v2322_v48, 0.0  ;;  %v12083_v53 = vpop.f32.mrb[2].mxu1 }
 0x1e5   : > { %v2365_v54 = vmul.f32 %v15306_v45, %v2337_v50  ;;  %v2331_v55 = vadd.f32 %v12083_v53, %v2318_v49  ;;  %v2279_v56 = vpop.f32.mrb[3].mxu1 }
 0x1e6   : > { %v2362_v57 = vmul.f32 %v15306_v45, %v2334_v52  ;;  %v2328_v58 = vadd.f32 %v2313_v51, %v2279_v56 }
 0x1e7   : > { %2378 = vst.msk [vmem:[#allocation2 + $0x28] sm:$0xff] %vm16984_vm14, %v2365_v54  ;;  %v2343_v59 = vmax.f32 %v2331_v55, 0.0 }
 0x1e8   : > { %2375 = vst.msk [vmem:[#allocation2 + $0x10] sm:$0xff] %vm16984_vm14, %v2362_v57  ;;  %v2340_v60 = vmax.f32 %v2328_v58, 0.0  ;;  %v2397_v58 = vld [vmem:[%s16957_s5] sm:$0xff] }
 0x1e9   : > { %v2371_v61 = vmul.f32 %v15306_v45, %v2343_v59  ;;  %v2398_v59 = vld [vmem:[%s16957_s5 + $0x8] sm:$0xff] }
 0x1ea   : > { %v2368_v62 = vmul.f32 %v15306_v45, %v2340_v60  ;;  %v2399_v60 = vld [vmem:[%s16957_s5 + $0x10] sm:$0xff] }
 0x1eb   : > { %2384 = vst.msk [vmem:[#allocation2 + $0x58] sm:$0xff] %vm16984_vm14, %v2371_v61  ;;  %v2400_v61 = vld [vmem:[%s16957_s5 + $0x18] sm:$0xff] }
 0x1ec   : > { %2381 = vst.msk [vmem:[#allocation2 + $0x40] sm:$0xff] %vm16984_vm14, %v2368_v62 }
 0x1ee   : > { %v15361_v43 = vld [vmem:[#allocation2 + $0x28] sm:$0xff] }
 0x1f2   : > { %v15379_v52 = vld [vmem:[#allocation2 + $0x58] sm:$0xff] }
 0x210   : > { %v2180_v1 = vpop.f32.mrb[0].mxu0 }
 0x211   : > { %v2320_v4 = vadd.f32 %v2303_v40, %v2180_v1  ;;  %v2182_v7 = vpop.f32.mrb[1].mxu0 }
 0x212   : > { %v2321_v10 = vadd.f32 %v2303_v40, %v2182_v7 }
 0x213   : > { %v2332_v11 = vmax.f32 %v2320_v4, 0.0 }
 0x214   : > { %v2333_v9 = vmax.f32 %v2321_v10, 0.0  ;;  %v2186_v12 = vpop.f32.mrb[2].mxu0 }
 0x215   : > { %v15323_v13 = vmul.f32 %v15318_v2, %v2332_v11  ;;  %v2323_v14 = vadd.f32 %v2308_v42, %v2186_v12  ;;  %v2188_v15 = vpop.f32.mrb[3].mxu0 }
 0x216   : > { %v15326_v16 = vmul.f32 %v15320_v8, %v2333_v9  ;;  %v2324_v3 = vadd.f32 %v2308_v42, %v2188_v15  ;;  %v15359_v42 = vld [vmem:[#allocation2 + $0x10] sm:$0xff] }
 0x217   : > { %v2335_v17 = vmax.f32 %v2323_v14, 0.0 }
 0x218   : > { %v2336_v18 = vmax.f32 %v2324_v3, 0.0  ;;  %v2192_v19 = vpop.f32.mrb[4].mxu0  ;;  %v13677_v20 = vpack.i.bf16 %v15326_v16, %v15323_v13  ;;  %v13797_v54 = vpack.i.bf16 %v15359_v42, %v15326_v16 }
 0x219   : > { %v15331_v21 = vmul.f32 %v15318_v2, %v2335_v17  ;;  %v2326_v22 = vadd.f32 %v2313_v51, %v2192_v19  ;;  %v2194_v23 = vpop.f32.mrb[5].mxu0 }
 0x21a   : > { %v15334_v24 = vmul.f32 %v15320_v8, %v2336_v18  ;;  %v2327_v25 = vadd.f32 %v2313_v51, %v2194_v23  ;;  %13678 = vrot.lane.b32.xlu1 %v13677_v20, %s16982_s12  ;;  %v15377_v51 = vld [vmem:[#allocation2 + $0x40] sm:$0xff] }
 0x21b   : > { %v2338_v26 = vmax.f32 %v2326_v22, 0.0  ;;  %v15339_v27 = vpack.i.bf16 %v15331_v21, %v15323_v13  ;;  %v12635_v28 = vpack.c.bf16 %v15331_v21, %v15323_v13  ;;  %v13702_v53 = vpack.i.bf16 %v15379_v52, %v15377_v51  ;;  %v3394_v13 = vld [vmem:[#allocation3 + $0x80] sm:$0xff] }
 0x21c   : > { %v2339_v29 = vmax.f32 %v2327_v25, 0.0  ;;  %v2198_v30 = vpop.f32.mrb[6].mxu0  ;;  %v13682_v31 = vpack.i.bf16 %v15334_v24, %v15331_v21  ;;  %v12633_v32 = vpack.c.bf16 %v15334_v24, %v15326_v16  ;;  %v13802_v55 = vpack.i.bf16 %v15361_v43, %v15334_v24 }
 0x21d   : > { %v15348_v33 = vmul.f32 %v15318_v2, %v2338_v26  ;;  %v2329_v34 = vadd.f32 %v2318_v49, %v2198_v30  ;;  %v2200_v35 = vpop.f32.mrb[7].mxu0  ;;  %v12641_v24 = vpack.c.bf16 %v15361_v43, %v15359_v42 }
 0x21e   : > { %v15351_v36 = vmul.f32 %v15320_v8, %v2339_v29  ;;  %v2330_v37 = vadd.f32 %v2318_v49, %v2200_v35  ;;  %13683 = vrot.lane.b32.xlu0 %v13682_v31, %s16982_s12  ;;  %v13697_v49 = vpack.i.bf16 %v15361_v43, %v15359_v42  ;;  %v3395_v42 = vld [vmem:[#allocation3 + $0x88] sm:$0xff] }
 0x21f   : > { %v2341_v38 = vmax.f32 %v2329_v34, 0.0 }
 0x220   : > { %v2342_v39 = vmax.f32 %v2330_v37, 0.0  ;;  %v13687_v40 = vpack.i.bf16 %v15351_v36, %v15348_v33  ;;  %v13812_v56 = vpack.i.bf16 %v15377_v51, %v15351_v36 }
 0x221   : > { %v15357_v41 = vmul.f32 %v15318_v2, %v2341_v38 }
 0x222   : > { %v15364_v44 = vmul.f32 %v15320_v8, %v2342_v39  ;;  %13688 = vrot.lane.b32.xlu1 %v13687_v40, %s16982_s12 }
 0x223   : > { %v13822_v46 = vpack.i.bf16 %v15357_v41, %v15348_v33  ;;  %v12639_v47 = vpack.c.bf16 %v15357_v41, %v15348_v33 }
 0x224   : > { %v13692_v48 = vpack.i.bf16 %v15364_v44, %v15357_v41  ;;  %v12637_v50 = vpack.c.bf16 %v15364_v44, %v15351_v36  ;;  %v13817_v57 = vpack.i.bf16 %v15379_v52, %v15364_v44  ;;  %v12645_v36 = vpack.c.bf16 %v15379_v52, %v15377_v51 }
 0x226   : > { %13693 = vrot.lane.b32.xlu0 %v13692_v48, %s16982_s12  ;;  %13698 = vrot.lane.b32.xlu1 %v13697_v49, %s16982_s12 }
 0x22a   : > { %13703 = vrot.lane.b32.xlu0 %v13702_v53, %s16982_s12  ;;  %13708 = vrot.lane.b32.xlu1 %v13677_v20, %s16980_s10 }
 0x22e   : > { %13713 = vrot.lane.b32.xlu0 %v13682_v31, %s16980_s10  ;;  %13718 = vrot.lane.b32.xlu1 %v13687_v40, %s16980_s10 }
 0x232   : > { %13723 = vrot.lane.b32.xlu0 %v13692_v48, %s16980_s10  ;;  %13728 = vrot.lane.b32.xlu1 %v13697_v49, %s16980_s10 }
 0x236   : > { %13733 = vrot.lane.b32.xlu0 %v13702_v53, %s16980_s10  ;;  %13738 = vrot.lane.b32.xlu1 %v13677_v20, %s16974_s13 }
 0x23a   : > { %13743 = vrot.lane.b32.xlu0 %v13682_v31, %s16974_s13  ;;  %13748 = vrot.lane.b32.xlu1 %v13687_v40, %s16974_s13 }
 0x23e   : > { %13753 = vrot.lane.b32.xlu0 %v13692_v48, %s16974_s13  ;;  %13758 = vrot.lane.b32.xlu1 %v13697_v49, %s16974_s13 }
 0x242   : > { %13763 = vrot.lane.b32.xlu0 %v13702_v53, %s16974_s13  ;;  %13768 = vrot.lane.b32.xlu1 %v13677_v20, %s16972_s18  ;;  %s17022_s13 = smov 17  }
 0x246   : > { %13773 = vrot.lane.b32.xlu0 %v13682_v31, %s16972_s18  ;;  %13778 = vrot.lane.b32.xlu1 %v13687_v40, %s16972_s18 }
 0x24a   : > { %13783 = vrot.lane.b32.xlu0 %v13692_v48, %s16972_s18  ;;  %13788 = vrot.lane.b32.xlu1 %v13697_v49, %s16972_s18 }
 0x24e   : > { %13793 = vrot.lane.b32.xlu0 %v13702_v53, %s16972_s18  ;;  %13798 = vrot.lane.b32.xlu1 %v13797_v54, %s16970_s21  ;;  %s17023_s18 = smov 1  }
 0x252   : > { %13803 = vrot.lane.b32.xlu0 %v13802_v55, %s16970_s21  ;;  %13808 = vrot.lane.b32.xlu1 %v15339_v27, %s16970_s21 }
 0x256   : > { %13813 = vrot.lane.b32.xlu0 %v13812_v56, %s16970_s21  ;;  %13818 = vrot.lane.b32.xlu1 %v13817_v57, %s16970_s21 }
 0x25a   : > { %13823 = vrot.lane.b32.xlu0 %v13822_v46, %s16970_s21  ;;  %13828 = vrot.lane.b32.xlu1 %v13797_v54, %s16968_s22  ;;  %s17024_s21 = smov 127  }
 0x25e   : > { %13833 = vrot.lane.b32.xlu0 %v13802_v55, %s16968_s22  ;;  %13838 = vrot.lane.b32.xlu1 %v15339_v27, %s16968_s22 }
 0x262   : > { %13843 = vrot.lane.b32.xlu0 %v13812_v56, %s16968_s22  ;;  %13848 = vrot.lane.b32.xlu1 %v13817_v57, %s16968_s22 }
 0x266   : > { %13853 = vrot.lane.b32.xlu0 %v13822_v46, %s16968_s22  ;;  %13858 = vrot.lane.b32.xlu1 %v13797_v54, %s17004_s25  ;;  %s17025_s22 = smov 111  }
 0x26a   : > { %13863 = vrot.lane.b32.xlu0 %v13802_v55, %s17004_s25  ;;  %13868 = vrot.lane.b32.xlu1 %v15339_v27, %s17004_s25 }
 0x26e   : > { %13873 = vrot.lane.b32.xlu0 %v13812_v56, %s17004_s25  ;;  %13878 = vrot.lane.b32.xlu1 %v13817_v57, %s17004_s25 }
 0x272   : > { %13883 = vrot.lane.b32.xlu0 %v13822_v46, %s17004_s25  ;;  %13888 = vrot.lane.b32.xlu1 %v13797_v54, %s17005_s26 }
 0x276   : > { %13893 = vrot.lane.b32.xlu0 %v13802_v55, %s17005_s26  ;;  %13898 = vrot.lane.b32.xlu1 %v15339_v27, %s17005_s26 }
 0x27a   : > { %13903 = vrot.lane.b32.xlu0 %v13812_v56, %s17005_s26  ;;  %13908 = vrot.lane.b32.xlu1 %v13817_v57, %s17005_s26 }
 0x27e   : > { %13913 = vrot.lane.b32.xlu0 %v13822_v46, %s17005_s26  ;;  %4602 = vperm.xlu1 %13676, %v2397_v58   ;;  %v2466_v46 = vld [vmem:[#allocation3 + $0x20] sm:$0xff] }
 0x282   : > { %4607 = vperm.xlu0 %13675, %v2398_v59   ;;  %4612 = vperm.xlu1 %13676, %v2399_v60   ;;  %v2467_v59 = vld [vmem:[#allocation3 + $0x28] sm:$0xff] }
 0x286   : > { %4617 = vperm.xlu0 %13675, %v2400_v61  }
 0x28c   : > { %v13679_v62 = vpop.permute.xlu1 %13678 }
 0x28d   : > { %v13681_v63 = vunpack.i.h.bf16 %v13679_v62  ;;  %v13680_v0 = vunpack.i.l.bf16 %v13679_v62 }
 0x28f   : > { %v2494_v10 = vsel %vm16977_vm2, %v13680_v0, %v13681_v63 }
 0x290   : > { %v13684_v1 = vpop.permute.xlu0 %13683 }
 0x291   : > { %v13686_v4 = vunpack.i.h.bf16 %v13684_v1  ;;  %v13685_v7 = vunpack.i.l.bf16 %v13684_v1 }
 0x293   : > { %v2496_v11 = vsel %vm16977_vm2, %v13685_v7, %v13686_v4  ;;  %v12563_v15 = vpack.c.bf16 %v13685_v7, %v13680_v0  ;;  %v2468_v0 = vld [vmem:[#allocation3 + $0x30] sm:$0xff] }
 0x294   : > { %v13689_v9 = vpop.permute.xlu1 %13688  ;;  %v12561_v12 = vpack.c.bf16 %v2496_v11, %v2494_v10  ;;  %v2469_v10 = vld [vmem:[#allocation3 + $0x38] sm:$0xff] }
 0x295   : > { %v13691_v3 = vunpack.i.h.bf16 %v13689_v9  ;;  %v13690_v17 = vunpack.i.l.bf16 %v13689_v9 }
 0x296   : > { %12562 = vmatprep.subr.bf16.mxu1 %v12561_v12 }
 0x297   : > { %12565 = vmatpush1.bf16.msk.msra.mxu1 %vm15455_vm0, %v12563_v15  ;;  %v2498_v26 = vsel %vm16977_vm2, %v13690_v17, %v13691_v3 }
 0x298   : > { %v13694_v18 = vpop.permute.xlu0 %13693  ;;  %v13699_v19 = vpop.permute.xlu1 %13698 }
 0x299   : > { %v13696_v20 = vunpack.i.h.bf16 %v13694_v18  ;;  %v13695_v22 = vunpack.i.l.bf16 %v13694_v18  ;;  %v13701_v23 = vunpack.i.h.bf16 %v13699_v19  ;;  %v13700_v25 = vunpack.i.l.bf16 %v13699_v19 }
 0x29b   : > { %v2500_v27 = vsel %vm16977_vm2, %v13695_v22, %v13696_v20  ;;  %v2495_v29 = vsel %vm16977_vm2, %v13681_v63, %v13700_v25  ;;  %v2497_v30 = vsel %vm16977_vm2, %v13686_v4, %v13701_v23  ;;  %v12568_v35 = vpack.c.bf16 %v13695_v22, %v13690_v17 }
 0x29c   : > { %v13704_v31 = vpop.permute.xlu0 %13703  ;;  %v12566_v34 = vpack.c.bf16 %v2500_v27, %v2498_v26  ;;  %v13709_v39 = vpop.permute.xlu1 %13708  ;;  %v12571_v40 = vpack.c.bf16 %v2497_v30, %v2495_v29 }
 0x29d   : > { %v13706_v37 = vunpack.i.h.bf16 %v13704_v31  ;;  %v13705_v38 = vunpack.i.l.bf16 %v13704_v31  ;;  %v13711_v54 = vunpack.i.h.bf16 %v13709_v39  ;;  %v13710_v55 = vunpack.i.l.bf16 %v13709_v39  ;;  %v2401_v39 = vld [vmem:[#allocation3] sm:$0xff] }
 0x29e   : > { %12567 = vmatprep.subr.bf16.mxu1 %v12566_v34 }
 0x29f   : > { %12570 = vmatpush1.bf16.msk.msra.mxu1 %vm15455_vm0, %v12568_v35  ;;  %v2499_v48 = vsel %vm16977_vm2, %v13691_v3, %v13705_v38  ;;  %v2501_v49 = vsel %vm16977_vm2, %v13696_v20, %v13706_v37  ;;  %v2441_v61 = vsel %vm16978_vm1, %v13710_v55, %v13711_v54  ;;  %vm15481_vm2 = vmpackc.low %vm11277_vm3, %vm11277_vm3 }
 0x2a0   : > { %v13714_v53 = vpop.permute.xlu0 %13713  ;;  %12572 = vmatprep.subr.bf16.mxu1 %v12571_v40  ;;  %v12575_v58 = vpack.c.bf16 %v2501_v49, %v2499_v48  ;;  %v13719_v62 = vpop.permute.xlu1 %13718  ;;  %vm11293_vm3 = vmneg %vm16979_vm4 }
 0x2a1   : > { %v13716_v56 = vunpack.i.h.bf16 %v13714_v53  ;;  %v13715_v57 = vunpack.i.l.bf16 %v13714_v53  ;;  %v13721_v9 = vunpack.i.h.bf16 %v13719_v62  ;;  %v13720_v12 = vunpack.i.l.bf16 %v13719_v62 }
 0x2a2   : > { %11269 = vmatmul.mubr.msk.f32.vlgmr.msra.gmra.mrb[4].mxu1 %vm2518_vm15, %v2466_v46 }
 0x2a3   : > { %12574 = vmatpush3.bf16.msra.mxu1 %v12571_v40  ;;  %2601 = vmatprep.mubr.f32.mxu1 %v14739_v5  ;;  %v2443_v60 = vsel %vm16978_vm1, %v13715_v57, %v13716_v56  ;;  %v12581_v20 = vpack.c.bf16 %v13715_v57, %v13710_v55  ;;  %v2445_v22 = vsel %vm16978_vm1, %v13720_v12, %v13721_v9 }
 0x2a4   : > { %12576 = vmatprep.subr.bf16.mxu1 %v12575_v58  ;;  %v12579_v63 = vpack.c.bf16 %v2443_v60, %v2441_v61  ;;  %v13724_v1 = vpop.permute.xlu0 %13723  ;;  %v13729_v11 = vpop.permute.xlu1 %13728 }
 0x2a5   : > { %v13726_v4 = vunpack.i.h.bf16 %v13724_v1  ;;  %v13725_v7 = vunpack.i.l.bf16 %v13724_v1  ;;  %v13731_v3 = vunpack.i.h.bf16 %v13729_v11  ;;  %v13730_v17 = vunpack.i.l.bf16 %v13729_v11 }
 0x2a6   : > { %11270 = vmatmul.mubr.msk.f32.gmra.mrb[6].mxu1 %vm2518_vm15, %v2467_v59 }
 0x2a7   : > { %12578 = vmatpush3.bf16.msra.mxu1 %v12575_v58  ;;  %2607 = vmatprep.mubr.f32.mxu1 %v14739_v5  ;;  %v2447_v18 = vsel %vm16978_vm1, %v13725_v7, %v13726_v4  ;;  %v2442_v27 = vsel %vm16978_vm1, %v13711_v54, %v13730_v17  ;;  %v2444_v29 = vsel %vm16978_vm1, %v13716_v56, %v13731_v3  ;;  %v2402_v54 = vld [vmem:[#allocation3 + $0x8] sm:$0xff] }
 0x2a8   : > { %12580 = vmatprep.subr.bf16.mxu1 %v12579_v63  ;;  %v13734_v15 = vpop.permute.xlu0 %13733  ;;  %v12584_v23 = vpack.c.bf16 %v2447_v18, %v2445_v22  ;;  %v12586_v31 = vpack.c.bf16 %v13725_v7, %v13720_v12  ;;  %v13739_v34 = vpop.permute.xlu1 %13738  ;;  %v12589_v35 = vpack.c.bf16 %v2444_v29, %v2442_v27  ;;  %v2404_v63 = vld [vmem:[#allocation3 + $0x18] sm:$0xff] }
 0x2a9   : > { %v13736_v25 = vunpack.i.h.bf16 %v13734_v15  ;;  %v13735_v26 = vunpack.i.l.bf16 %v13734_v15  ;;  %v13741_v48 = vunpack.i.h.bf16 %v13739_v34  ;;  %v13740_v49 = vunpack.i.l.bf16 %v13739_v34  ;;  %v2892_v34 = vld [vmem:[#allocation3 + $0x40] sm:$0xff] }
 0x2aa   : > { %11271 = vmatmul.mubr.msk.f32.gmra.mrb[8].mxu1 %vm2518_vm15, %v2468_v0 }
 0x2ab   : > { %2613 = vmatprep.mubr.f32.mxu1 %v14739_v5  ;;  %v2446_v40 = vsel %vm16978_vm1, %v13721_v9, %v13735_v26  ;;  %v2920_v56 = vsel %vm16979_vm4, %v13740_v49, %v13741_v48 }
 0x2ac   : > { %v13744_v30 = vpop.permute.xlu0 %13743  ;;  %v13749_v57 = vpop.permute.xlu1 %13748 }
 0x2ad   : > { %v13746_v37 = vunpack.i.h.bf16 %v13744_v30  ;;  %v13745_v38 = vunpack.i.l.bf16 %v13744_v30  ;;  %v13751_v1 = vunpack.i.h.bf16 %v13749_v57 }
 0x2ae   : > { %11272 = vmatmul.mubr.msk.f32.gmra.mrb[10].mxu1 %vm2518_vm15, %v2469_v10 }
 0x2af   : > { %12092 = vmatprep.mubr.msk.f32.mxu1 %vm2518_vm15, %v2466_v46  ;;  %v2448_v46 = vsel %vm16978_vm1, %v13726_v4, %v13736_v25  ;;  %v2922_v55 = vsel %vm16979_vm4, %v13745_v38, %v13746_v37  ;;  %v13750_v4 = vunpack.i.l.bf16 %v13749_v57  ;;  %vm15510_vm1 = vmpackc.low %vm11293_vm3, %vm11293_vm3  ;;  %v12599_v15 = vpack.c.bf16 %v13745_v38, %v13740_v49 }
 0x2b0   : > { %v12593_v53 = vpack.c.bf16 %v2448_v46, %v2446_v40  ;;  %v12597_v58 = vpack.c.bf16 %v2922_v55, %v2920_v56  ;;  %v13754_v60 = vpop.permute.xlu0 %13753  ;;  %v2893_v46 = vld [vmem:[#allocation3 + $0x48] sm:$0xff]  ;;  %v2894_v55 = vld [vmem:[#allocation3 + $0x50] sm:$0xff]  ;;  %vm11309_vm3 = vmneg %vm993_vm5 }
 0x2b1   : > { %v13756_v61 = vunpack.i.h.bf16 %v13754_v60  ;;  %v13755_v62 = vunpack.i.l.bf16 %v13754_v60  ;;  %v2924_v3 = vsel %vm16979_vm4, %v13750_v4, %v13751_v1 }
 0x2b2   : > { %12093 = vmatmul.mubr.msk.f32.vlgmr.msra.gmra.mrb[12].mxu1 %vm2518_vm15, %v2467_v59  ;;  %v2403_v59 = vld [vmem:[#allocation3 + $0x10] sm:$0xff] }
 0x2b3   : > { %12583 = vmatpush1.bf16.msk.msra.mxu1 %vm15481_vm2, %v12581_v20  ;;  %12095 = vmatprep.mubr.msk.f32.mxu1 %vm2518_vm15, %v2468_v0  ;;  %v13759_v0 = vpop.permute.xlu1 %13758  ;;  %v2926_v9 = vsel %vm16979_vm4, %v13755_v62, %v13756_v61  ;;  %v12604_v26 = vpack.c.bf16 %v13755_v62, %v13750_v4 }
 0x2b4   : > { %12585 = vmatprep.subr.bf16.mxu1 %v12584_v23  ;;  %v13764_v7 = vpop.permute.xlu0 %13763  ;;  %v13760_v11 = vunpack.i.l.bf16 %v13759_v0  ;;  %v12602_v17 = vpack.c.bf16 %v2926_v9, %v2924_v3 }
 0x2b5   : > { %v13766_v18 = vunpack.i.h.bf16 %v13764_v7  ;;  %v13765_v20 = vunpack.i.l.bf16 %v13764_v7 }
 0x2b6   : > { %12096 = vmatmul.mubr.msk.f32.gmra.mrb[14].mxu1 %vm2518_vm15, %v2469_v10  ;;  %v13761_v10 = vunpack.i.h.bf16 %v13759_v0  ;;  %v2921_v22 = vsel %vm16979_vm4, %v13741_v48, %v13760_v11 }
 0x2b7   : > { %12588 = vmatpush1.bf16.msk.msra.mxu1 %vm15481_vm2, %v12586_v31  ;;  %2781 = vmatprep.mubr.f32.mxu1 %v14739_v5  ;;  %v13769_v27 = vpop.permute.xlu1 %13768  ;;  %v2927_v38 = vsel %vm16979_vm4, %v13756_v61, %v13766_v18 }
 0x2b8   : > { %12590 = vmatprep.subr.bf16.mxu1 %v12589_v35  ;;  %v2923_v23 = vsel %vm16979_vm4, %v13746_v37, %v13761_v10  ;;  %v13774_v25 = vpop.permute.xlu0 %13773  ;;  %v13771_v37 = vunpack.i.h.bf16 %v13769_v27 }
 0x2b9   : > { %v12607_v29 = vpack.c.bf16 %v2923_v23, %v2921_v22  ;;  %v13776_v30 = vunpack.i.h.bf16 %v13774_v25  ;;  %v13775_v31 = vunpack.i.l.bf16 %v13774_v25  ;;  %v3143_v23 = vld [vmem:[#allocation3 + $0x60] sm:$0xff] }
 0x2ba   : > { %11285 = vmatmul.mubr.msk.f32.vlgmr.msra.gmra.mrb[4].mxu1 %vm2518_vm15, %v2401_v39 }
 0x2bb   : > { %12592 = vmatpush3.bf16.msra.mxu1 %v12589_v35  ;;  %2787 = vmatprep.mubr.f32.mxu1 %v14739_v5  ;;  %v2925_v35 = vsel %vm16979_vm4, %v13751_v1, %v13765_v20  ;;  %v3173_v48 = vsel %vm993_vm5, %v13775_v31, %v13776_v30  ;;  %vm15539_vm4 = vmpackc.low %vm11309_vm3, %vm11309_vm3 }
 0x2bc   : > { %12594 = vmatprep.subr.bf16.mxu1 %v12593_v53  ;;  %v12611_v40 = vpack.c.bf16 %v2927_v38, %v2925_v35  ;;  %v13784_v56 = vpop.permute.xlu0 %13783  ;;  %vm15606_vm3 = vmpackc.low %vm1427_vm6, %vm1427_vm6 }
 0x2bd   : > { %v13786_v57 = vunpack.i.h.bf16 %v13784_v56  ;;  %vm15644_vm6 = vmpackc.low %vm1649_vm8, %vm1649_vm8 }
 0x2be   : > { %11286 = vmatmul.mubr.msk.f32.gmra.mrb[6].mxu1 %vm2518_vm15, %v2402_v54  ;;  %vm15680_vm8 = vmpackc.low %vm1871_vm9, %vm1871_vm9 }
 0x2bf   : > { %12596 = vmatpush3.bf16.msra.mxu1 %v12593_v53  ;;  %2793 = vmatprep.mubr.f32.mxu1 %v14739_v5  ;;  %v13779_v53 = vpop.permute.xlu1 %13778  ;;  %vm15714_vm9 = vmpackc.low %vm2093_vm11, %vm2093_vm11  ;;  %vm17026_vm11 = vcmask 146432  }
 0x2c0   : > { %12598 = vmatprep.subr.bf16.mxu1 %v12597_v58  ;;  %v13785_v58 = vunpack.i.l.bf16 %v13784_v56  ;;  %v13781_v61 = vunpack.i.h.bf16 %v13779_v53  ;;  %v13780_v62 = vunpack.i.l.bf16 %v13779_v53  ;;  %v13794_v4 = vpop.permute.xlu0 %13793 }
 0x2c1   : > { %v13795_v3 = vunpack.i.l.bf16 %v13794_v4 }
 0x2c2   : > { %11287 = vmatmul.mubr.msk.f32.gmra.mrb[8].mxu1 %vm2518_vm15, %v2403_v59  ;;  %v3177_v1 = vsel %vm993_vm5, %v13785_v58, %v13786_v57  ;;  %v3175_v11 = vsel %vm993_vm5, %v13780_v62, %v13781_v61  ;;  %v12622_v20 = vpack.c.bf16 %v13785_v58, %v13780_v62 }
 0x2c3   : > { %2799 = vmatprep.mubr.f32.mxu1 %v14739_v5  ;;  %v13789_v60 = vpop.permute.xlu1 %13788  ;;  %v12620_v9 = vpack.c.bf16 %v3177_v1, %v3175_v11  ;;  %v3176_v25 = vsel %vm993_vm5, %v13781_v61, %v13795_v3 }
 0x2c4   : > { %v13790_v0 = vunpack.i.l.bf16 %v13789_v60  ;;  %v13804_v16 = vpop.permute.xlu0 %13803 }
 0x2c5   : > { %v13805_v35 = vunpack.i.l.bf16 %v13804_v16 }
 0x2c6   : > { %11288 = vmatmul.mubr.msk.f32.gmra.mrb[10].mxu1 %vm2518_vm15, %v2404_v63 }
 0x2c7   : > { %12106 = vmatprep.mubr.msk.f32.mxu1 %vm2518_vm15, %v2401_v39  ;;  %v13770_v39 = vunpack.i.l.bf16 %v13769_v27 }
 0x2c8   : > { %v13814_v33 = vpop.permute.xlu0 %13813 }
 0x2c9   : > { %v3171_v49 = vsel %vm993_vm5, %v13770_v39, %v13771_v37  ;;  %v12617_v10 = vpack.c.bf16 %v13775_v31, %v13770_v39  ;;  %v3146_v31 = vld [vmem:[#allocation3 + $0x78] sm:$0xff]  ;;  %v13815_v39 = vunpack.i.l.bf16 %v13814_v33 }
 0x2ca   : > { %12107 = vmatmul.mubr.msk.f32.vlgmr.msra.gmra.mrb[12].mxu1 %vm2518_vm15, %v2402_v54  ;;  %v12615_v54 = vpack.c.bf16 %v3173_v48, %v3171_v49  ;;  %v3397_v49 = vld [vmem:[#allocation3 + $0x98] sm:$0xff] }
 0x2cb   : > { %12601 = vmatpush1.bf16.msk.msra.mxu1 %vm15510_vm1, %v12599_v15  ;;  %12109 = vmatprep.mubr.msk.f32.mxu1 %vm2518_vm15, %v2403_v59  ;;  %v2895_v59 = vld [vmem:[#allocation3 + $0x58] sm:$0xff]  ;;  %v13796_v15 = vunpack.i.h.bf16 %v13794_v4 }
 0x2cc   : > { %12603 = vmatprep.subr.bf16.mxu1 %v12602_v17  ;;  %v3172_v17 = vsel %vm993_vm5, %v13771_v37, %v13790_v0  ;;  %v13816_v37 = vunpack.i.h.bf16 %v13814_v33  ;;  %v13824_v48 = vpop.permute.xlu0 %13823 }
 0x2cd   : > { %v13825_v56 = vunpack.i.l.bf16 %v13824_v48 }
 0x2ce   : > { %12110 = vmatmul.mubr.msk.f32.gmra.mrb[14].mxu1 %vm2518_vm15, %v2404_v63  ;;  %v13791_v63 = vunpack.i.h.bf16 %v13789_v60 }
 0x2cf   : > { %12606 = vmatpush1.bf16.msk.msra.mxu1 %vm15510_vm1, %v12604_v26  ;;  %3020 = vmatprep.mubr.f32.mxu1 %v14739_v5  ;;  %v3178_v26 = vsel %vm993_vm5, %v13786_v57, %v13796_v15  ;;  %v3630_v57 = vsel %vm16988_vm7, %v13815_v39, %v13816_v37  ;;  %v3629_v60 = vsel %vm16988_vm7, %v13825_v56, %v13815_v39  ;;  %v3597_v15 = vld [vmem:[#allocation3 + $0xa0] sm:$0xff] }
 0x2d0   : > { %12608 = vmatprep.subr.bf16.mxu1 %v12607_v29  ;;  %v3174_v18 = vsel %vm993_vm5, %v13776_v30, %v13791_v63  ;;  %v12629_v27 = vpack.c.bf16 %v3178_v26, %v3176_v25  ;;  %v3145_v30 = vld [vmem:[#allocation3 + $0x70] sm:$0xff]  ;;  %v13834_v0 = vpop.permute.xlu0 %13833 }
 0x2d1   : > { %v12625_v22 = vpack.c.bf16 %v3174_v18, %v3172_v17  ;;  %v13836_v11 = vunpack.i.h.bf16 %v13834_v0 }
 0x2d2   : > { %11301 = vmatmul.mubr.msk.f32.vlgmr.msra.gmra.mrb[4].mxu1 %vm2518_vm15, %v2892_v34 }
 0x2d3   : > { %12610 = vmatpush3.bf16.msra.mxu1 %v12607_v29  ;;  %3026 = vmatprep.mubr.f32.mxu1 %v14739_v5  ;;  %v3144_v29 = vld [vmem:[#allocation3 + $0x68] sm:$0xff] }
 0x2d4   : > { %12612 = vmatprep.subr.bf16.mxu1 %v12611_v40  ;;  %v13844_v25 = vpop.permute.xlu0 %13843 }
 0x2d6   : > { %11302 = vmatmul.mubr.msk.f32.gmra.mrb[6].mxu1 %vm2518_vm15, %v2893_v46 }
 0x2d7   : > { %12614 = vmatpush3.bf16.msra.mxu1 %v12611_v40  ;;  %3032 = vmatprep.mubr.f32.mxu1 %v14739_v5 }
 0x2d8   : > { %12616 = vmatprep.subr.bf16.mxu1 %v12615_v54 }
 0x2da   : > { %11303 = vmatmul.mubr.msk.f32.gmra.mrb[8].mxu1 %vm2518_vm15, %v2894_v55 }
 0x2db   : > { %3038 = vmatprep.mubr.f32.mxu1 %v14739_v5 }
 0x2de   : > { %11304 = vmatmul.mubr.msk.f32.gmra.mrb[10].mxu1 %vm2518_vm15, %v2895_v59 }
 0x2df   : > { %12120 = vmatprep.mubr.msk.f32.mxu1 %vm2518_vm15, %v2892_v34  ;;  %v13799_v34 = vpop.permute.xlu1 %13798 }
 0x2e0   : > { %v13801_v21 = vunpack.i.h.bf16 %v13799_v34 }
 0x2e2   : > { %12121 = vmatmul.mubr.msk.f32.vlgmr.msra.gmra.mrb[12].mxu1 %vm2518_vm15, %v2893_v46 }
 0x2e3   : > { %12619 = vmatpush1.bf16.msk.msra.mxu1 %vm15539_vm4, %v12617_v10  ;;  %12123 = vmatprep.mubr.msk.f32.mxu1 %vm2518_vm15, %v2894_v55  ;;  %v13809_v38 = vpop.permute.xlu1 %13808  ;;  %v13826_v55 = vunpack.i.h.bf16 %v13824_v48 }
 0x2e4   : > { %12621 = vmatprep.subr.bf16.mxu1 %v12620_v9  ;;  %v13811_v51 = vunpack.i.h.bf16 %v13809_v38  ;;  %v13810_v52 = vunpack.i.l.bf16 %v13809_v38  ;;  %v13835_v9 = vunpack.i.l.bf16 %v13834_v0 }
 0x2e6   : > { %12124 = vmatmul.mubr.msk.f32.gmra.mrb[14].mxu1 %vm2518_vm15, %v2895_v59  ;;  %v3627_v53 = vsel %vm16988_vm7, %v13811_v51, %v13805_v35 }
 0x2e7   : > { %12624 = vmatpush1.bf16.msk.msra.mxu1 %vm15539_vm4, %v12622_v20  ;;  %3271 = vmatprep.mubr.f32.mxu1 %v14739_v5 }
 0x2e8   : > { %12626 = vmatprep.subr.bf16.mxu1 %v12625_v22 }
 0x2ea   : > { %11317 = vmatmul.mubr.msk.f32.vlgmr.msra.gmra.mrb[4].mxu1 %vm2518_vm15, %v3143_v23 }
 0x2eb   : > { %12628 = vmatpush3.bf16.msra.mxu1 %v12625_v22  ;;  %3277 = vmatprep.mubr.f32.mxu1 %v14739_v5  ;;  %v3598_v22 = vld [vmem:[#allocation3 + $0xa8] sm:$0xff] }
 0x2ec   : > { %12630 = vmatprep.subr.bf16.mxu1 %v12629_v27 }
 0x2ee   : > { %11318 = vmatmul.mubr.msk.f32.gmra.mrb[6].mxu1 %vm2518_vm15, %v3144_v29 }
 0x2ef   : > { %12632 = vmatpush3.bf16.msra.mxu1 %v12629_v27  ;;  %3283 = vmatprep.mubr.f32.mxu1 %v14739_v5 }
 0x2f0   : > { %12634 = vmatprep.subr.bf16.mxu1 %v12633_v32  ;;  %v13806_v32 = vunpack.i.h.bf16 %v13804_v16  ;;  %v13846_v16 = vunpack.i.h.bf16 %v13844_v25 }
 0x2f2   : > { %11319 = vmatmul.mubr.msk.f32.gmra.mrb[8].mxu1 %vm2518_vm15, %v3145_v30  ;;  %v3628_v43 = vsel %vm16988_vm7, %v13805_v35, %v13806_v32  ;;  %v12657_v10 = vpack.c.bf16 %v13806_v32, %v13801_v21 }
 0x2f3   : > { %3289 = vmatprep.mubr.f32.mxu1 %v14739_v5 }
 0x2f6   : > { %11320 = vmatmul.mubr.msk.f32.gmra.mrb[10].mxu1 %vm2518_vm15, %v3146_v31 }
 0x2f7   : > { %12134 = vmatprep.mubr.msk.f32.mxu1 %vm2518_vm15, %v3143_v23  ;;  %v3879_v23 = vsel %vm16987_vm10, %v13835_v9, %v13836_v11 }
 0x2fa   : > { %12135 = vmatmul.mubr.msk.f32.vlgmr.msra.gmra.mrb[12].mxu1 %vm2518_vm15, %v3144_v29  ;;  %v3599_v29 = vld [vmem:[#allocation3 + $0xb0] sm:$0xff] }
 0x2fb   : > { %12636 = vmatpush1.bf16.msra.mxu1 %v12635_v28  ;;  %12137 = vmatprep.mubr.msk.f32.mxu1 %vm2518_vm15, %v3145_v30  ;;  %v13800_v28 = vunpack.i.l.bf16 %v13799_v34 }
 0x2fc   : > { %12638 = vmatprep.subr.bf16.mxu1 %v12637_v50  ;;  %v13819_v50 = vpop.permute.xlu1 %13818 }
 0x2fd   : > { %v3626_v41 = vsel %vm16988_vm7, %v13800_v28, %v13801_v21  ;;  %v13821_v40 = vunpack.i.h.bf16 %v13819_v50  ;;  %v13820_v46 = vunpack.i.l.bf16 %v13819_v50  ;;  %v3625_v54 = vsel %vm16988_vm7, %v13810_v52, %v13800_v28  ;;  %v3600_v21 = vld [vmem:[#allocation3 + $0xb8] sm:$0xff] }
 0x2fe   : > { %12138 = vmatmul.mubr.msk.f32.gmra.mrb[14].mxu1 %vm2518_vm15, %v3146_v31  ;;  %v12649_v44 = vpack.c.bf16 %v3628_v43, %v3626_v41  ;;  %v12651_v59 = vpack.c.bf16 %v3627_v53, %v3625_v54 }
 0x2ff   : > { %12640 = vmatpush1.bf16.msra.mxu1 %v12639_v47  ;;  %3474 = vmatprep.mubr.f32.mxu1 %v14739_v5  ;;  %v3396_v47 = vld [vmem:[#allocation3 + $0x90] sm:$0xff]  ;;  %v3632_v58 = vsel %vm16988_vm7, %v13820_v46, %v13821_v40  ;;  %v3631_v61 = vsel %vm16988_vm7, %v13826_v55, %v13820_v46  ;;  %v12663_v18 = vpack.c.bf16 %v13821_v40, %v13816_v37 }
 0x300   : > { %12642 = vmatprep.subr.bf16.mxu1 %v12641_v24  ;;  %v12653_v62 = vpack.c.bf16 %v3632_v58, %v3630_v57  ;;  %v15602_v63 = vpop.permute.xlu1 %13828  ;;  %v12655_v4 = vpack.c.bf16 %v3631_v61, %v3629_v60  ;;  %v3849_v57 = vld [vmem:[#allocation3 + $0xc8] sm:$0xff] }
 0x301   : > { %v13831_v3 = vunpack.i.h.bf16 %v15602_v63  ;;  %v13830_v17 = vunpack.i.l.bf16 %v15602_v63 }
 0x302   : > { %11325 = vmatmul.mubr.msk.f32.vlgmr.msra.gmra.mrb[4].mxu1 %vm2518_vm15, %v3394_v13 }
 0x303   : > { %12644 = vmatpush3.bf16.msra.mxu1 %v12641_v24  ;;  %3480 = vmatprep.mubr.f32.mxu1 %v14739_v5  ;;  %v3877_v26 = vsel %vm16987_vm10, %v13830_v17, %v13831_v3  ;;  %v13845_v24 = vunpack.i.l.bf16 %v13844_v25  ;;  %v12677_v40 = vpack.c.bf16 %v13836_v11, %v13831_v3 }
 0x304   : > { %12646 = vmatprep.subr.bf16.mxu1 %v12645_v36  ;;  %v13839_v20 = vpop.permute.xlu1 %13838  ;;  %v12669_v27 = vpack.c.bf16 %v3879_v23, %v3877_v26 }
 0x305   : > { %v13841_v31 = vunpack.i.h.bf16 %v13839_v20  ;;  %v13840_v34 = vunpack.i.l.bf16 %v13839_v20  ;;  %v3881_v43 = vsel %vm16987_vm10, %v13845_v24, %v13846_v16 }
 0x306   : > { %11326 = vmatmul.mubr.msk.f32.gmra.mrb[6].mxu1 %vm2518_vm15, %v3395_v42 }
 0x307   : > { %12648 = vmatpush3.bf16.msra.mxu1 %v12645_v36  ;;  %3486 = vmatprep.mubr.f32.mxu1 %v14739_v5  ;;  %v3878_v28 = vsel %vm16987_vm10, %v13841_v31, %v13835_v9  ;;  %v3876_v38 = vsel %vm16987_vm10, %v13840_v34, %v13830_v17  ;;  %v3851_v17 = vld [vmem:[#allocation3 + $0xd8] sm:$0xff] }
 0x308   : > { %12650 = vmatprep.subr.bf16.mxu1 %v12649_v44  ;;  %v13849_v30 = vpop.permute.xlu1 %13848  ;;  %v12671_v41 = vpack.c.bf16 %v3878_v28, %v3876_v38  ;;  %v4099_v28 = vld [vmem:[#allocation3 + $0xe0] sm:$0xff] }
 0x309   : > { %v13851_v32 = vunpack.i.h.bf16 %v13849_v30  ;;  %v13850_v35 = vunpack.i.l.bf16 %v13849_v30 }
 0x30a   : > { %11327 = vmatmul.mubr.msk.f32.gmra.mrb[8].mxu1 %vm2518_vm15, %v3396_v47 }
 0x30b   : > { %3492 = vmatprep.mubr.f32.mxu1 %v14739_v5  ;;  %v3883_v33 = vsel %vm16987_vm10, %v13850_v35, %v13851_v32  ;;  %v12683_v55 = vpack.c.bf16 %v13851_v32, %v13846_v16 }
 0x30c   : > { %v12673_v50 = vpack.c.bf16 %v3883_v33, %v3881_v43  ;;  %v15640_v51 = vpop.permute.xlu1 %13858  ;;  %v4100_v33 = vld [vmem:[#allocation3 + $0xe8] sm:$0xff] }
 0x30d   : > { %v13861_v53 = vunpack.i.h.bf16 %v15640_v51  ;;  %v13860_v54 = vunpack.i.l.bf16 %v15640_v51  ;;  %v4101_v51 = vld [vmem:[#allocation3 + $0xf0] sm:$0xff] }
 0x30e   : > { %11328 = vmatmul.mubr.msk.f32.gmra.mrb[10].mxu1 %vm2518_vm15, %v3397_v49 }
 0x30f   : > { %12148 = vmatprep.mubr.msk.f32.mxu1 %vm2518_vm15, %v3394_v13  ;;  %v13854_v13 = vpop.permute.xlu0 %13853  ;;  %v4128_v60 = vsel %vm16986_vm12, %v13860_v54, %v13861_v53 }
 0x310   : > { %v13856_v36 = vunpack.i.h.bf16 %v13854_v13  ;;  %v13869_v56 = vpop.permute.xlu1 %13868 }
 0x311   : > { %v13871_v0 = vunpack.i.h.bf16 %v13869_v56 }
 0x312   : > { %12149 = vmatmul.mubr.msk.f32.vlgmr.msra.gmra.mrb[12].mxu1 %vm2518_vm15, %v3395_v42  ;;  %v13855_v42 = vunpack.i.l.bf16 %v13854_v13 }
 0x313   : > { %12652 = vmatpush1.bf16.msra.mxu1 %v12651_v59  ;;  %12151 = vmatprep.mubr.msk.f32.mxu1 %vm2518_vm15, %v3396_v47  ;;  %v3882_v47 = vsel %vm16987_vm10, %v13856_v36, %v13850_v35  ;;  %v13864_v52 = vpop.permute.xlu0 %13863 }
 0x314   : > { %12654 = vmatprep.subr.bf16.mxu1 %v12653_v62  ;;  %v3880_v44 = vsel %vm16987_vm10, %v13855_v42, %v13845_v24  ;;  %v13866_v46 = vunpack.i.h.bf16 %v13864_v52  ;;  %v13865_v48 = vunpack.i.l.bf16 %v13864_v52  ;;  %v3850_v62 = vld [vmem:[#allocation3 + $0xd0] sm:$0xff]  ;;  %v13879_v63 = vpop.permute.xlu1 %13878 }
 0x315   : > { %v12675_v39 = vpack.c.bf16 %v3882_v47, %v3880_v44  ;;  %v13881_v9 = vunpack.i.h.bf16 %v13879_v63  ;;  %v11696_v24 = vld [vmem:[%s16958_s6 + $0x10] sm:$0x3] }
 0x316   : > { %12152 = vmatmul.mubr.msk.f32.gmra.mrb[14].mxu1 %vm2518_vm15, %v3397_v49  ;;  %v3848_v49 = vld [vmem:[#allocation3 + $0xc0] sm:$0xff]  ;;  %v4130_v58 = vsel %vm16986_vm12, %v13865_v48, %v13866_v46  ;;  %v12697_v35 = vpack.c.bf16 %v13866_v46, %v13861_v53 }
 0x317   : > { %12656 = vmatpush1.bf16.msra.mxu1 %v12655_v4  ;;  %3725 = vmatprep.mubr.f32.mxu1 %v14739_v5  ;;  %v13874_v59 = vpop.permute.xlu0 %13873  ;;  %v12689_v61 = vpack.c.bf16 %v4130_v58, %v4128_v60  ;;  %v13870_v4 = vunpack.i.l.bf16 %v13869_v56 }
 0x318   : > { %12659 = vmatprep.subr.msk.bf16.mxu1 %vm15606_vm3, %v12657_v10  ;;  %v13875_v11 = vunpack.i.l.bf16 %v13874_v59  ;;  %v13889_v34 = vpop.permute.xlu1 %13888 }
 0x319   : > { %v4127_v20 = vsel %vm16986_vm12, %v13870_v4, %v13860_v54  ;;  %v13891_v38 = vunpack.i.h.bf16 %v13889_v34  ;;  %v13890_v36 = vunpack.i.l.bf16 %v13889_v34 }
 0x31a   : > { %11333 = vmatmul.mubr.msk.f32.vlgmr.msra.gmra.mrb[4].mxu1 %vm2518_vm15, %v3597_v15 }
 0x31b   : > { %12662 = vmatpush3.bf16.msk.msra.mxu1 %vm15606_vm3, %v12657_v10  ;;  %3731 = vmatprep.mubr.f32.mxu1 %v14739_v5  ;;  %v13876_v10 = vunpack.i.h.bf16 %v13874_v59  ;;  %v13884_v3 = vpop.permute.xlu0 %13883  ;;  %v4379_v47 = vsel %vm16985_vm13, %v13890_v36, %v13891_v38 }
 0x31c   : > { %12665 = vmatprep.subr.msk.bf16.mxu1 %vm15606_vm3, %v12663_v18  ;;  %v13885_v23 = vunpack.i.l.bf16 %v13884_v3  ;;  %v13899_v43 = vpop.permute.xlu1 %13898 }
 0x31d   : > { %v4132_v25 = vsel %vm16986_vm12, %v13875_v11, %v13876_v10  ;;  %v12703_v42 = vpack.c.bf16 %v13881_v9, %v13876_v10 }
 0x31e   : > { %11334 = vmatmul.mubr.msk.f32.gmra.mrb[6].mxu1 %vm2518_vm15, %v3598_v22 }
 0x31f   : > { %12668 = vmatpush3.bf16.msk.msra.mxu1 %vm15606_vm3, %v12663_v18  ;;  %3737 = vmatprep.mubr.f32.mxu1 %v14739_v5  ;;  %v4129_v18 = vsel %vm16986_vm12, %v13871_v0, %v13865_v48  ;;  %v13894_v16 = vpop.permute.xlu0 %13893 }
 0x320   : > { %12670 = vmatprep.subr.bf16.mxu1 %v12669_v27  ;;  %v12691_v27 = vpack.c.bf16 %v4129_v18, %v4127_v20  ;;  %v13896_v13 = vunpack.i.h.bf16 %v13894_v16  ;;  %v13909_v52 = vpop.permute.xlu1 %13908  ;;  %v4352_v18 = vld [vmem:[#allocation3 + $0x110] sm:$0xff]  ;;  %v4353_v20 = vld [vmem:[#allocation3 + $0x118] sm:$0xff] }
 0x321   : > { %v13910_v53 = vunpack.i.l.bf16 %v13909_v52 }
 0x322   : > { %11335 = vmatmul.mubr.msk.f32.gmra.mrb[8].mxu1 %vm2518_vm15, %v3599_v29 }
 0x323   : > { %3743 = vmatprep.mubr.f32.mxu1 %v14739_v5  ;;  %v13904_v44 = vpop.permute.xlu0 %13903 }
 0x324   : > { %v13906_v46 = vunpack.i.h.bf16 %v13904_v44  ;;  %v13905_v48 = vunpack.i.l.bf16 %v13904_v44 }
 0x326   : > { %11336 = vmatmul.mubr.msk.f32.gmra.mrb[10].mxu1 %vm2518_vm15, %v3600_v21  ;;  %v4383_v60 = vsel %vm16985_vm13, %v13905_v48, %v13906_v46 }
 0x327   : > { %12162 = vmatprep.mubr.msk.f32.mxu1 %vm2518_vm15, %v3597_v15  ;;  %v13880_v15 = vunpack.i.l.bf16 %v13879_v63  ;;  %v13914_v54 = vpop.permute.xlu0 %13913 }
 0x328   : > { %v13916_v58 = vunpack.i.h.bf16 %v13914_v54  ;;  %v13915_v59 = vunpack.i.l.bf16 %v13914_v54 }
 0x329   : > { %v4134_v26 = vsel %vm16986_vm12, %v13880_v15, %v13881_v9  ;;  %v12717_v9 = vpack.c.bf16 %v13896_v13, %v13891_v38 }
 0x32a   : > { %12163 = vmatmul.mubr.msk.f32.vlgmr.msra.gmra.mrb[12].mxu1 %vm2518_vm15, %v3598_v22  ;;  %v13886_v22 = vunpack.i.h.bf16 %v13884_v3  ;;  %v12693_v31 = vpack.c.bf16 %v4134_v26, %v4132_v25  ;;  %v4382_v63 = vsel %vm16985_vm13, %v13915_v59, %v13905_v48  ;;  %v4384_v0 = vsel %vm16985_vm13, %v13916_v58, %v13910_v53 }
 0x32b   : > { %12672 = vmatpush1.bf16.msra.mxu1 %v12671_v41  ;;  %12165 = vmatprep.mubr.msk.f32.mxu1 %vm2518_vm15, %v3599_v29  ;;  %v4131_v29 = vsel %vm16986_vm12, %v13885_v23, %v13875_v11  ;;  %v12715_v11 = vpack.c.bf16 %v4384_v0, %v4382_v63 }
 0x32c   : > { %12674 = vmatprep.subr.bf16.mxu1 %v12673_v50  ;;  %v4133_v30 = vsel %vm16986_vm12, %v13886_v22, %v13880_v15  ;;  %v4350_v15 = vld [vmem:[#allocation3 + $0x100] sm:$0xff]  ;;  %v4603_v22 = vpop.permute.xlu1 %4602  ;;  %vm17029_vm12 = vmmov %vm17026_vm11 }
 0x32d   : > { %v12695_v32 = vpack.c.bf16 %v4133_v30, %v4131_v29  ;;  %v4608_v30 = vpop.permute.xlu0 %4607 }
 0x32e   : > { %12166 = vmatmul.mubr.msk.f32.gmra.mrb[14].mxu1 %vm2518_vm15, %v3600_v21  ;;  %v13895_v21 = vunpack.i.l.bf16 %v13894_v16 }
 0x32f   : > { %12676 = vmatpush1.bf16.msra.mxu1 %v12675_v39  ;;  %3976 = vmatprep.mubr.f32.mxu1 %v14739_v5  ;;  %v13901_v39 = vunpack.i.h.bf16 %v13899_v43 }
 0x330   : > { %12679 = vmatprep.subr.msk.bf16.mxu1 %vm15644_vm6, %v12677_v40  ;;  %v4381_v41 = vsel %vm16985_vm13, %v13895_v21, %v13896_v13  ;;  %v4613_v38 = vpop.permute.xlu1 %4612 }
 0x331   : > { %v12709_v50 = vpack.c.bf16 %v4381_v41, %v4379_v47  ;;  %v4380_v56 = vsel %vm16985_vm13, %v13901_v39, %v13895_v21 }
 0x332   : > { %11345 = vmatmul.mubr.msk.f32.vlgmr.msra.gmra.mrb[4].mxu1 %vm2518_vm15, %v3848_v49 }
 0x333   : > { %12682 = vmatpush3.bf16.msk.msra.mxu1 %vm15644_vm6, %v12677_v40  ;;  %3982 = vmatprep.mubr.f32.mxu1 %v14739_v5  ;;  %v13900_v40 = vunpack.i.l.bf16 %v13899_v43 }
 0x334   : > { %12685 = vmatprep.subr.msk.bf16.mxu1 %vm15644_vm6, %v12683_v55 }
 0x336   : > { %11346 = vmatmul.mubr.msk.f32.gmra.mrb[6].mxu1 %vm2518_vm15, %v3849_v57 }
 0x337   : > { %12688 = vmatpush3.bf16.msk.msra.mxu1 %vm15644_vm6, %v12683_v55  ;;  %3988 = vmatprep.mubr.f32.mxu1 %v14739_v5  ;;  %v4102_v55 = vld [vmem:[#allocation3 + $0xf8] sm:$0xff] }
 0x338   : > { %12690 = vmatprep.subr.bf16.mxu1 %v12689_v61 }
 0x33a   : > { %11347 = vmatmul.mubr.msk.f32.gmra.mrb[8].mxu1 %vm2518_vm15, %v3850_v62 }
 0x33b   : > { %3994 = vmatprep.mubr.f32.mxu1 %v14739_v5 }
 0x33e   : > { %11348 = vmatmul.mubr.msk.f32.gmra.mrb[10].mxu1 %vm2518_vm15, %v3851_v17 }
 0x33f   : > { %12176 = vmatprep.mubr.msk.f32.mxu1 %vm2518_vm15, %v3848_v49  ;;  %v13911_v49 = vunpack.i.h.bf16 %v13909_v52 }
 0x341   : > { %v4385_v61 = vsel %vm16985_vm13, %v13910_v53, %v13911_v49  ;;  %v12723_v3 = vpack.c.bf16 %v13911_v49, %v13906_v46 }
 0x342   : > { %12177 = vmatmul.mubr.msk.f32.vlgmr.msra.gmra.mrb[12].mxu1 %vm2518_vm15, %v3849_v57  ;;  %v4378_v57 = vsel %vm16985_vm13, %v13900_v40, %v13890_v36  ;;  %v12713_v4 = vpack.c.bf16 %v4385_v61, %v4383_v60  ;;  %v4618_v40 = vpop.permute.xlu0 %4617  ;;  %vm17028_vm13 = vmmov %vm17026_vm11 }
 0x343   : > { %12692 = vmatpush1.bf16.msra.mxu1 %v12691_v27  ;;  %12179 = vmatprep.mubr.msk.f32.mxu1 %vm2518_vm15, %v3850_v62  ;;  %v12711_v62 = vpack.c.bf16 %v4380_v56, %v4378_v57 }
 0x344   : > { %12694 = vmatprep.subr.bf16.mxu1 %v12693_v31 }
 0x346   : > { %12180 = vmatmul.mubr.msk.f32.gmra.mrb[14].mxu1 %vm2518_vm15, %v3851_v17  ;;  %v4351_v17 = vld [vmem:[#allocation3 + $0x108] sm:$0xff] }
 0x347   : > { %12696 = vmatpush1.bf16.msra.mxu1 %v12695_v32  ;;  %4227 = vmatprep.mubr.f32.mxu1 %v14739_v5 }
 0x348   : > { %12699 = vmatprep.subr.msk.bf16.mxu1 %vm15680_vm8, %v12697_v35 }
 0x34a   : > { %11357 = vmatmul.mubr.msk.f32.vlgmr.msra.gmra.mrb[4].mxu1 %vm2518_vm15, %v4099_v28 }
 0x34b   : > { %12702 = vmatpush3.bf16.msk.msra.mxu1 %vm15680_vm8, %v12697_v35  ;;  %4233 = vmatprep.mubr.f32.mxu1 %v14739_v5 }
 0x34c   : > { %12705 = vmatprep.subr.msk.bf16.mxu1 %vm15680_vm8, %v12703_v42 }
 0x34e   : > { %11358 = vmatmul.mubr.msk.f32.gmra.mrb[6].mxu1 %vm2518_vm15, %v4100_v33 }
 0x34f   : > { %12708 = vmatpush3.bf16.msk.msra.mxu1 %vm15680_vm8, %v12703_v42  ;;  %4239 = vmatprep.mubr.f32.mxu1 %v14739_v5 }
 0x350   : > { %12710 = vmatprep.subr.bf16.mxu1 %v12709_v50 }
 0x352   : > { %11359 = vmatmul.mubr.msk.f32.gmra.mrb[8].mxu1 %vm2518_vm15, %v4101_v51 }
 0x353   : > { %4245 = vmatprep.mubr.f32.mxu1 %v14739_v5 }
 0x356   : > { %11360 = vmatmul.mubr.msk.f32.gmra.mrb[10].mxu1 %vm2518_vm15, %v4102_v55 }
 0x357   : > { %12190 = vmatprep.mubr.msk.f32.mxu1 %vm2518_vm15, %v4099_v28 }
 0x35a   : > { %12191 = vmatmul.mubr.msk.f32.vlgmr.msra.gmra.mrb[12].mxu1 %vm2518_vm15, %v4100_v33 }
 0x35b   : > { %12712 = vmatpush1.bf16.msra.mxu1 %v12711_v62  ;;  %12193 = vmatprep.mubr.msk.f32.mxu1 %vm2518_vm15, %v4101_v51 }
 0x35c   : > { %12714 = vmatprep.subr.bf16.mxu1 %v12713_v4 }
 0x35e   : > { %12194 = vmatmul.mubr.msk.f32.gmra.mrb[14].mxu1 %vm2518_vm15, %v4102_v55 }
 0x35f   : > { %12716 = vmatpush1.bf16.msra.mxu1 %v12715_v11  ;;  %4478 = vmatprep.mubr.f32.mxu1 %v14739_v5 }
 0x360   : > { %12719 = vmatprep.subr.msk.bf16.mxu1 %vm15714_vm9, %v12717_v9 }
 0x362   : > { %11369 = vmatmul.mubr.msk.f32.vlgmr.msra.gmra.mrb[4].mxu1 %vm2518_vm15, %v4350_v15 }
 0x363   : > { %12722 = vmatpush3.bf16.msk.msra.mxu1 %vm15714_vm9, %v12717_v9  ;;  %4484 = vmatprep.mubr.f32.mxu1 %v14739_v5 }
 0x364   : > { %12725 = vmatprep.subr.msk.bf16.mxu1 %vm15714_vm9, %v12723_v3 }
 0x366   : > { %11370 = vmatmul.mubr.msk.f32.gmra.mrb[6].mxu1 %vm2518_vm15, %v4351_v17 }
 0x367   : > { %12728 = vmatpush3.bf16.msk.msra.mxu1 %vm15714_vm9, %v12723_v3  ;;  %4490 = vmatprep.mubr.f32.mxu1 %v14739_v5 }
 0x36a   : > { %11371 = vmatmul.mubr.msk.f32.gmra.mrb[8].mxu1 %vm2518_vm15, %v4352_v18 }
 0x36b   : > { %4496 = vmatprep.mubr.f32.mxu1 %v14739_v5 }
 0x36e   : > { %11372 = vmatmul.mubr.msk.f32.gmra.mrb[10].mxu1 %vm2518_vm15, %v4353_v20 }
 0x36f   : > { %12204 = vmatprep.mubr.msk.f32.mxu1 %vm2518_vm15, %v4350_v15 }
 0x372   : > { %12205 = vmatmul.mubr.msk.f32.vlgmr.msra.gmra.mrb[12].mxu1 %vm2518_vm15, %v4351_v17 }
 0x373   : > { %12207 = vmatprep.mubr.msk.f32.mxu1 %vm2518_vm15, %v4352_v18 }
 0x376   : > { %12208 = vmatmul.mubr.msk.f32.gmra.mrb[14].mxu1 %vm2518_vm15, %v4353_v20 }
 0x377   : > { %7164 = vmatprep.mubr.f32.mxu1 %v14739_v5 }
 0x435   : > { %v4480_v23 = vpop.f32.mrb[4].mxu1 }
 0x436   : > { %v4620_v25 = vadd.f32 %v4603_v22, %v4480_v23  ;;  %v4482_v26 = vpop.f32.mrb[5].mxu1 }
 0x437   : > { %v4621_v27 = vadd.f32 %v4603_v22, %v4482_v26 }
 0x438   : > { %v4632_v29 = vmax.f32 %v4620_v25, 0.0 }
 0x439   : > { %v4633_v31 = vmax.f32 %v4621_v27, 0.0  ;;  %v4486_v34 = vpop.f32.mrb[6].mxu1 }
 0x43a   : > { %v15741_v16 = vmul.f32 %v4632_v29, %v15318_v2  ;;  %v4623_v32 = vadd.f32 %v4608_v30, %v4486_v34  ;;  %v4488_v35 = vpop.f32.mrb[7].mxu1 }
 0x43b   : > { %v15744_v13 = vmul.f32 %v4633_v31, %v15320_v8  ;;  %v4624_v21 = vadd.f32 %v4608_v30, %v4488_v35 }
 0x43c   : > { %v4635_v28 = vmax.f32 %v4623_v32, 0.0 }
 0x43d   : > { %v4636_v36 = vmax.f32 %v4624_v21, 0.0  ;;  %v4492_v42 = vpop.f32.mrb[8].mxu1  ;;  %v15748_v43 = vpack.i.bf16 %v15744_v13, %v15741_v16 }
 0x43e   : > { %v15751_v33 = vmul.f32 %v4635_v28, %v15318_v2  ;;  %v4626_v41 = vadd.f32 %v4613_v38, %v4492_v42  ;;  %v4494_v44 = vpop.f32.mrb[9].mxu1 }
 0x43f   : > { %v15754_v47 = vmul.f32 %v4636_v36, %v15320_v8  ;;  %v4627_v50 = vadd.f32 %v4613_v38, %v4494_v44  ;;  %13918 = vrot.lane.b32.xlu1 %v15748_v43, %s16982_s12 }
 0x440   : > { %v4638_v51 = vmax.f32 %v4626_v41, 0.0  ;;  %v15760_v52 = vpack.i.bf16 %v15751_v33, %v15741_v16  ;;  %v12803_v39 = vpack.c.bf16 %v15751_v33, %v15741_v16  ;;  %v5679_v16 = vld [vmem:[#allocation3 + $0x1a0] sm:$0xff] }
 0x441   : > { %v4639_v46 = vmax.f32 %v4627_v50, 0.0  ;;  %v4498_v48 = vpop.f32.mrb[10].mxu1  ;;  %v13922_v49 = vpack.i.bf16 %v15754_v47, %v15751_v33  ;;  %v12801_v53 = vpack.c.bf16 %v15754_v47, %v15744_v13 }
 0x442   : > { %v15769_v54 = vmul.f32 %v4638_v51, %v15318_v2  ;;  %v4629_v55 = vadd.f32 %v4618_v40, %v4498_v48  ;;  %v4500_v56 = vpop.f32.mrb[11].mxu1 }
 0x443   : > { %v15772_v57 = vmul.f32 %v4639_v46, %v15320_v8  ;;  %v4630_v58 = vadd.f32 %v4618_v40, %v4500_v56  ;;  %13923 = vrot.lane.b32.xlu0 %v13922_v49, %s16982_s12  ;;  %v11383_v46 = vld [vmem:[%s16957_s5 + $0x30] sm:$0xff] }
 0x444   : > { %v4641_v59 = vmax.f32 %v4629_v55, 0.0 }
 0x445   : > { %v4642_v60 = vmax.f32 %v4630_v58, 0.0  ;;  %v12206_v61 = vpop.f32.mrb[12].mxu1  ;;  %v13927_v62 = vpack.i.bf16 %v15772_v57, %v15769_v54 }
 0x446   : > { %v15778_v63 = vmul.f32 %v4641_v59, %v15318_v2  ;;  %v4625_v0 = vadd.f32 %v12206_v61, %v4608_v30  ;;  %v4569_v4 = vpop.f32.mrb[13].mxu1 }
 0x447   : > { %v15781_v11 = vmul.f32 %v4642_v60, %v15320_v8  ;;  %v4622_v9 = vadd.f32 %v4603_v22, %v4569_v4  ;;  %13928 = vrot.lane.b32.xlu1 %v13927_v62, %s16982_s12 }
 0x448   : > { %v4637_v15 = vmax.f32 %v4625_v0, 0.0  ;;  %v15786_v3 = vpack.i.bf16 %v15778_v63, %v15769_v54  ;;  %v12807_v17 = vpack.c.bf16 %v15778_v63, %v15769_v54 }
 0x449   : > { %v4634_v18 = vmax.f32 %v4622_v9, 0.0  ;;  %v12209_v20 = vpop.f32.mrb[14].mxu1  ;;  %v13932_v23 = vpack.i.bf16 %v15781_v11, %v15778_v63  ;;  %v12805_v25 = vpack.c.bf16 %v15781_v11, %v15772_v57 }
 0x44a   : > { %v4649_v22 = vmul.f32 %v4637_v15, %v15306_v45  ;;  %v4631_v26 = vadd.f32 %v12209_v20, %v4618_v40  ;;  %v4579_v27 = vpop.f32.mrb[15].mxu1  ;;  %v11381_v40 = vld [vmem:[%s16957_s5 + $0x20] sm:$0xff] }
 0x44b   : > { %v4646_v29 = vmul.f32 %v4634_v18, %v15306_v45  ;;  %v4628_v30 = vadd.f32 %v4613_v38, %v4579_v27  ;;  %13933 = vrot.lane.b32.xlu0 %v13932_v23, %s16982_s12 }
 0x44c   : > { %4662 = vst.msk [vmem:[#allocation2 + $0x88] sm:$0xff] %vm16984_vm14, %v4649_v22  ;;  %v4643_v31 = vmax.f32 %v4631_v26, 0.0 }
 0x44d   : > { %4659 = vst.msk [vmem:[#allocation2 + $0x70] sm:$0xff] %vm16984_vm14, %v4646_v29  ;;  %v4640_v34 = vmax.f32 %v4628_v30, 0.0  ;;  %v4752_v30 = vld [vmem:[#allocation3 + $0x140] sm:$0xff] }
 0x44e   : > { %v4655_v32 = vmul.f32 %v4643_v31, %v15306_v45  ;;  %v4753_v31 = vld [vmem:[#allocation3 + $0x148] sm:$0xff] }
 0x44f   : > { %v4652_v35 = vmul.f32 %v4640_v34, %v15306_v45 }
 0x450   : > { %4668 = vst.msk [vmem:[#allocation2 + $0xb8] sm:$0xff] %vm16984_vm14, %v4655_v32 }
 0x451   : > { %4665 = vst.msk [vmem:[#allocation2 + $0xa0] sm:$0xff] %vm16984_vm14, %v4652_v35  ;;  %vm17027_vm14 = vmmov %vm17026_vm11 }
 0x453   : > { %v15803_v21 = vld [vmem:[#allocation2 + $0x88] sm:$0xff] }
 0x454   : > { %v15805_v28 = vld [vmem:[#allocation2 + $0x70] sm:$0xff] }
 0x455   : > { %v13937_v38 = vpack.i.bf16 %v15803_v21, %v15805_v28  ;;  %v14037_v44 = vpack.i.bf16 %v15805_v28, %v15744_v13 }
 0x457   : > { %13938 = vrot.lane.b32.xlu1 %v13937_v38, %s16982_s12  ;;  %v15810_v36 = vld [vmem:[#allocation2 + $0xb8] sm:$0xff] }
 0x458   : > { %v15812_v42 = vld [vmem:[#allocation2 + $0xa0] sm:$0xff]  ;;  %v14052_v50 = vpack.i.bf16 %v15810_v36, %v15781_v11  ;;  %v5680_v11 = vld [vmem:[#allocation3 + $0x1a8] sm:$0xff] }
 0x459   : > { %v13947_v41 = vpack.i.bf16 %v15810_v36, %v15812_v42  ;;  %v14057_v51 = vpack.i.bf16 %v15812_v42, %v15772_v57  ;;  %v12813_v57 = vpack.c.bf16 %v15810_v36, %v15812_v42 }
 0x45b   : > { %13943 = vrot.lane.b32.xlu1 %v15748_v43, %s16980_s10  ;;  %13948 = vrot.lane.b32.xlu0 %v13947_v41, %s16982_s12 }
 0x45f   : > { %13958 = vrot.lane.b32.xlu1 %v13927_v62, %s16980_s10  ;;  %13953 = vrot.lane.b32.xlu0 %v13922_v49, %s16980_s10 }
 0x463   : > { %13968 = vrot.lane.b32.xlu1 %v13937_v38, %s16980_s10  ;;  %13963 = vrot.lane.b32.xlu0 %v13932_v23, %s16980_s10 }
 0x467   : > { %13973 = vrot.lane.b32.xlu1 %v15748_v43, %s17022_s13  ;;  %13978 = vrot.lane.b32.xlu0 %v13947_v41, %s16980_s10 }
 0x46b   : > { %13988 = vrot.lane.b32.xlu1 %v13927_v62, %s17022_s13  ;;  %13983 = vrot.lane.b32.xlu0 %v13922_v49, %s17022_s13 }
 0x46f   : > { %13998 = vrot.lane.b32.xlu1 %v13937_v38, %s17022_s13  ;;  %13993 = vrot.lane.b32.xlu0 %v13932_v23, %s17022_s13 }
 0x473   : > { %14003 = vrot.lane.b32.xlu1 %v15748_v43, %s17023_s18  ;;  %14008 = vrot.lane.b32.xlu0 %v13947_v41, %s17022_s13  ;;  %v14042_v43 = vpack.i.bf16 %v15803_v21, %v15754_v47  ;;  %v12809_v47 = vpack.c.bf16 %v15803_v21, %v15805_v28  ;;  %v5681_v21 = vld [vmem:[#allocation3 + $0x1b0] sm:$0xff] }
 0x477   : > { %14018 = vrot.lane.b32.xlu1 %v13927_v62, %s17023_s18  ;;  %14013 = vrot.lane.b32.xlu0 %v13922_v49, %s17023_s18  ;;  %v11384_v49 = vld [vmem:[%s16957_s5 + $0x38] sm:$0xff] }
 0x47b   : > { %14028 = vrot.lane.b32.xlu1 %v13937_v38, %s17023_s18  ;;  %14023 = vrot.lane.b32.xlu0 %v13932_v23, %s17023_s18 }
 0x47f   : > { %14038 = vrot.lane.b32.xlu1 %v14037_v44, %s17024_s21  ;;  %14033 = vrot.lane.b32.xlu0 %v13947_v41, %s17023_s18 }
 0x483   : > { %14048 = vrot.lane.b32.xlu1 %v15760_v52, %s17024_s21  ;;  %14043 = vrot.lane.b32.xlu0 %v14042_v43, %s17024_s21 }
 0x487   : > { %14053 = vrot.lane.b32.xlu1 %v14052_v50, %s17024_s21  ;;  %14058 = vrot.lane.b32.xlu0 %v14057_v51, %s17024_s21 }
 0x48b   : > { %14068 = vrot.lane.b32.xlu1 %v14037_v44, %s17025_s22  ;;  %14063 = vrot.lane.b32.xlu0 %v15786_v3, %s17024_s21 }
 0x48f   : > { %14078 = vrot.lane.b32.xlu1 %v15760_v52, %s17025_s22  ;;  %14073 = vrot.lane.b32.xlu0 %v14042_v43, %s17025_s22 }
 0x493   : > { %14083 = vrot.lane.b32.xlu1 %v14052_v50, %s17025_s22  ;;  %14088 = vrot.lane.b32.xlu0 %v14057_v51, %s17025_s22 }
 0x497   : > { %14098 = vrot.lane.b32.xlu1 %v14037_v44, %s17004_s25  ;;  %14093 = vrot.lane.b32.xlu0 %v15786_v3, %s17025_s22 }
 0x49b   : > { %14108 = vrot.lane.b32.xlu1 %v15760_v52, %s17004_s25  ;;  %14103 = vrot.lane.b32.xlu0 %v14042_v43, %s17004_s25 }
 0x49f   : > { %14113 = vrot.lane.b32.xlu1 %v14052_v50, %s17004_s25  ;;  %14118 = vrot.lane.b32.xlu0 %v14057_v51, %s17004_s25 }
 0x4a3   : > { %14128 = vrot.lane.b32.xlu1 %v14037_v44, %s17005_s26  ;;  %14123 = vrot.lane.b32.xlu0 %v15786_v3, %s17004_s25  ;;  %v4754_v44 = vld [vmem:[#allocation3 + $0x150] sm:$0xff] }
 0x4a7   : > { %14138 = vrot.lane.b32.xlu1 %v15760_v52, %s17005_s26  ;;  %14133 = vrot.lane.b32.xlu0 %v14042_v43, %s17005_s26  ;;  %v11382_v52 = vld [vmem:[%s16957_s5 + $0x28] sm:$0xff] }
 0x4ab   : > { %14143 = vrot.lane.b32.xlu1 %v14052_v50, %s17005_s26  ;;  %14148 = vrot.lane.b32.xlu0 %v14057_v51, %s17005_s26 }
 0x4af   : > { %6887 = vperm.xlu1 %13676, %v11381_v40   ;;  %14153 = vrot.lane.b32.xlu0 %v15786_v3, %s17005_s26 }
 0x4b1   : > { %v13919_v48 = vpop.permute.xlu1 %13918 }
 0x4b2   : > { %v13921_v55 = vunpack.i.h.bf16 %v13919_v48  ;;  %v13920_v56 = vunpack.i.l.bf16 %v13919_v48 }
 0x4b3   : > { %6897 = vperm.xlu1 %13676, %v11383_v46   ;;  %6892 = vperm.xlu0 %13675, %v11382_v52  }
 0x4b4   : > { %v4780_v61 = vsel %vm17026_vm11, %v13920_v56, %v13921_v55 }
 0x4b5   : > { %v13924_v58 = vpop.permute.xlu0 %13923 }
 0x4b6   : > { %v13926_v59 = vunpack.i.h.bf16 %v13924_v58  ;;  %v13925_v60 = vunpack.i.l.bf16 %v13924_v58 }
 0x4b7   : > { %6902 = vperm.xlu0 %13675, %v11384_v49  }
 0x4b8   : > { %v4782_v62 = vsel %vm17027_vm14, %v13925_v60, %v13926_v59  ;;  %v12731_v9 = vpack.c.bf16 %v13925_v60, %v13920_v56  ;;  %vm17032_vm14 = vmmov %vm17026_vm11  ;;  %v4755_v56 = vld [vmem:[#allocation3 + $0x158] sm:$0xff] }
 0x4b9   : > { %v13929_v0 = vpop.permute.xlu1 %13928  ;;  %v12729_v4 = vpack.c.bf16 %v4782_v62, %v4780_v61 }
 0x4ba   : > { %v13931_v15 = vunpack.i.h.bf16 %v13929_v0  ;;  %v13930_v3 = vunpack.i.l.bf16 %v13929_v0 }
 0x4bb   : > { %12730 = vmatprep.subr.bf16.mxu0 %v12729_v4 }
 0x4bc   : > { %12733 = vmatpush1.bf16.msk.msra.mxu0 %vm15455_vm0, %v12731_v9  ;;  %v4784_v22 = vsel %vm17028_vm13, %v13930_v3, %v13931_v15  ;;  %vm17030_vm13 = vmmov %vm17026_vm11 }
 0x4bd   : > { %v13934_v18 = vpop.permute.xlu0 %13933 }
 0x4be   : > { %v13936_v20 = vunpack.i.h.bf16 %v13934_v18  ;;  %v13935_v23 = vunpack.i.l.bf16 %v13934_v18 }
 0x4c0   : > { %v4786_v26 = vsel %vm17029_vm12, %v13935_v23, %v13936_v20  ;;  %v12736_v29 = vpack.c.bf16 %v13935_v23, %v13930_v3  ;;  %vm17031_vm12 = vmmov %vm17026_vm11 }
 0x4c1   : > { %v12734_v27 = vpack.c.bf16 %v4786_v26, %v4784_v22 }
 0x4c3   : > { %12735 = vmatprep.subr.bf16.mxu0 %v12734_v27 }
 0x4c4   : > { %12738 = vmatpush1.bf16.msk.msra.mxu0 %vm15455_vm0, %v12736_v29 }
 0x4c7   : > { %11393 = vmatmul.mubr.msk.f32.vlgmr.msra.gmra.mrb[8].mxu0 %vm2518_vm15, %v4752_v30 }
 0x4c8   : > { %4886 = vmatprep.mubr.f32.mxu0 %v14739_v5 }
 0x4c9   : > { %v13939_v34 = vpop.permute.xlu1 %13938 }
 0x4ca   : > { %v13941_v32 = vunpack.i.h.bf16 %v13939_v34  ;;  %v13940_v35 = vunpack.i.l.bf16 %v13939_v34 }
 0x4cb   : > { %11394 = vmatmul.mubr.msk.f32.gmra.mrb[10].mxu0 %vm2518_vm15, %v4753_v31 }
 0x4cc   : > { %v4781_v38 = vsel %vm17030_vm13, %v13921_v55, %v13940_v35  ;;  %v4783_v41 = vsel %vm17031_vm12, %v13926_v59, %v13941_v32  ;;  %4892 = vmatprep.mubr.f32.mxu0 %v14739_v5  ;;  %vm17033_vm13 = vcmask 154624  }
 0x4cd   : > { %v13944_v43 = vpop.permute.xlu1 %13943  ;;  %v13949_v50 = vpop.permute.xlu0 %13948  ;;  %v12739_v51 = vpack.c.bf16 %v4783_v41, %v4781_v38  ;;  %vm17034_vm12 = vmmov %vm17033_vm13 }
 0x4ce   : > { %v13951_v40 = vunpack.i.h.bf16 %v13949_v50  ;;  %v13950_v46 = vunpack.i.l.bf16 %v13949_v50  ;;  %v13946_v52 = vunpack.i.h.bf16 %v13944_v43  ;;  %v13945_v48 = vunpack.i.l.bf16 %v13944_v43 }
 0x4cf   : > { %12740 = vmatprep.subr.bf16.mxu0 %v12739_v51  ;;  %11395 = vmatmul.mubr.msk.f32.gmra.mrb[12].mxu0 %vm2518_vm15, %v4754_v44 }
 0x4d0   : > { %12742 = vmatpush3.bf16.msra.mxu0 %v12739_v51  ;;  %v4785_v49 = vsel %vm17032_vm14, %v13931_v15, %v13950_v46  ;;  %v4787_v55 = vsel %vm17026_vm11, %v13936_v20, %v13951_v40  ;;  %4898 = vmatprep.mubr.f32.mxu0 %v14739_v5  ;;  %v4727_v9 = vsel %vm17033_vm13, %v13945_v48, %v13946_v52  ;;  %vm17035_vm14 = vmmov %vm17034_vm12 }
 0x4d1   : > { %v13959_v58 = vpop.permute.xlu1 %13958  ;;  %v13954_v59 = vpop.permute.xlu0 %13953  ;;  %v12743_v60 = vpack.c.bf16 %v4787_v55, %v4785_v49  ;;  %vm17036_vm11 = vmmov %vm17034_vm12 }
 0x4d2   : > { %v13956_v61 = vunpack.i.h.bf16 %v13954_v59  ;;  %v13955_v62 = vunpack.i.l.bf16 %v13954_v59  ;;  %v13961_v0 = vunpack.i.h.bf16 %v13959_v58  ;;  %v13960_v4 = vunpack.i.l.bf16 %v13959_v58  ;;  %vm17037_vm13 = vmmov %vm17036_vm11 }
 0x4d3   : > { %12744 = vmatprep.subr.bf16.mxu0 %v12743_v60  ;;  %11396 = vmatmul.mubr.msk.f32.gmra.mrb[14].mxu0 %vm2518_vm15, %v4755_v56 }
 0x4d4   : > { %12746 = vmatpush3.bf16.msra.mxu0 %v12743_v60  ;;  %v4729_v15 = vsel %vm17034_vm12, %v13955_v62, %v13956_v61  ;;  %12218 = vmatprep.mubr.msk.f32.mxu0 %vm2518_vm15, %v4752_v30  ;;  %v12749_v3 = vpack.c.bf16 %v13955_v62, %v13945_v48  ;;  %v4731_v34 = vsel %vm17035_vm14, %v13960_v4, %v13961_v0  ;;  %vm17038_vm12 = vmmov %vm17036_vm11  ;;  %v4688_v60 = vld [vmem:[#allocation3 + $0x128] sm:$0xff] }
 0x4d5   : > { %v13969_v18 = vpop.permute.xlu1 %13968  ;;  %v13964_v20 = vpop.permute.xlu0 %13963  ;;  %v12747_v23 = vpack.c.bf16 %v4729_v15, %v4727_v9  ;;  %vm17039_vm14 = vmmov %vm17036_vm11  ;;  %v4689_v9 = vld [vmem:[#allocation3 + $0x130] sm:$0xff] }
 0x4d6   : > { %v13971_v22 = vunpack.i.h.bf16 %v13969_v18  ;;  %v13970_v26 = vunpack.i.l.bf16 %v13969_v18  ;;  %v13966_v27 = vunpack.i.h.bf16 %v13964_v20  ;;  %v13965_v29 = vunpack.i.l.bf16 %v13964_v20  ;;  %v4690_v20 = vld [vmem:[#allocation3 + $0x138] sm:$0xff] }
 0x4d7   : > { %12748 = vmatprep.subr.bf16.mxu0 %v12747_v23  ;;  %12219 = vmatmul.mubr.msk.f32.vlgmr.msra.gmra.mrb[16].mxu0 %vm2518_vm15, %v4753_v31 }
 0x4d8   : > { %12751 = vmatpush1.bf16.msk.msra.mxu0 %vm15481_vm2, %v12749_v3  ;;  %v4733_v32 = vsel %vm17036_vm11, %v13965_v29, %v13966_v27  ;;  %12221 = vmatprep.mubr.msk.f32.mxu0 %vm2518_vm15, %v4754_v44  ;;  %v4728_v30 = vsel %vm17037_vm13, %v13946_v52, %v13970_v26  ;;  %v4730_v41 = vsel %vm17038_vm12, %v13956_v61, %v13971_v22  ;;  %v4687_v44 = vld [vmem:[#allocation3 + $0x120] sm:$0xff]  ;;  %vm17040_vm13 = vcmask 138240  }
 0x4d9   : > { %v13979_v35 = vpop.permute.xlu0 %13978  ;;  %v12752_v38 = vpack.c.bf16 %v4733_v32, %v4731_v34  ;;  %v12754_v43 = vpack.c.bf16 %v13965_v29, %v13960_v4  ;;  %v13974_v40 = vpop.permute.xlu1 %13973  ;;  %v12757_v31 = vpack.c.bf16 %v4730_v41, %v4728_v30  ;;  %vm17041_vm12 = vmmov %vm17040_vm13 }
 0x4da   : > { %v13981_v50 = vunpack.i.h.bf16 %v13979_v35  ;;  %v13980_v51 = vunpack.i.l.bf16 %v13979_v35  ;;  %v13976_v49 = vunpack.i.h.bf16 %v13974_v40  ;;  %v13975_v55 = vunpack.i.l.bf16 %v13974_v40 }
 0x4db   : > { %12753 = vmatprep.subr.bf16.mxu0 %v12752_v38  ;;  %12222 = vmatmul.mubr.msk.f32.gmra.mrb[18].mxu0 %vm2518_vm15, %v4755_v56 }
 0x4dc   : > { %12756 = vmatpush1.bf16.msk.msra.mxu0 %vm15481_vm2, %v12754_v43  ;;  %5066 = vmatprep.mubr.f32.mxu0 %v14739_v5  ;;  %v4732_v46 = vsel %vm17039_vm14, %v13961_v0, %v13980_v51  ;;  %v4734_v52 = vsel %vm17036_vm11, %v13966_v27, %v13981_v50  ;;  %v5205_v62 = vsel %vm17041_vm12, %v13975_v55, %v13976_v49  ;;  %vm17042_vm14 = vmmov %vm17041_vm12 }
 0x4dd   : > { %v13984_v48 = vpop.permute.xlu0 %13983  ;;  %12758 = vmatprep.subr.bf16.mxu0 %v12757_v31  ;;  %v12761_v56 = vpack.c.bf16 %v4734_v52, %v4732_v46  ;;  %v13989_v0 = vpop.permute.xlu1 %13988  ;;  %vm17043_vm11 = vmmov %vm17041_vm12 }
 0x4de   : > { %v13986_v58 = vunpack.i.h.bf16 %v13984_v48  ;;  %v13985_v59 = vunpack.i.l.bf16 %v13984_v48  ;;  %v13991_v22 = vunpack.i.h.bf16 %v13989_v0  ;;  %v13990_v26 = vunpack.i.l.bf16 %v13989_v0  ;;  %vm17045_vm12 = vmmov %vm17043_vm11 }
 0x4df   : > { %11409 = vmatmul.mubr.msk.f32.vlgmr.msra.gmra.mrb[8].mxu0 %vm2518_vm15, %v4687_v44 }
 0x4e0   : > { %12760 = vmatpush3.bf16.msra.mxu0 %v12757_v31  ;;  %5072 = vmatprep.mubr.f32.mxu0 %v14739_v5  ;;  %v5207_v61 = vsel %vm17040_vm13, %v13985_v59, %v13986_v58  ;;  %v12767_v30 = vpack.c.bf16 %v13985_v59, %v13975_v55  ;;  %v5209_v35 = vsel %vm17043_vm11, %v13990_v26, %v13991_v22  ;;  %vm17044_vm13 = vmmov %vm17043_vm11  ;;  %v5177_v55 = vld [vmem:[#allocation3 + $0x160] sm:$0xff] }
 0x4e1   : > { %12762 = vmatprep.subr.bf16.mxu0 %v12761_v56  ;;  %v12765_v4 = vpack.c.bf16 %v5207_v61, %v5205_v62  ;;  %v13994_v15 = vpop.permute.xlu0 %13993  ;;  %v13999_v23 = vpop.permute.xlu1 %13998  ;;  %v5178_v61 = vld [vmem:[#allocation3 + $0x168] sm:$0xff] }
 0x4e2   : > { %v13996_v3 = vunpack.i.h.bf16 %v13994_v15  ;;  %v13995_v18 = vunpack.i.l.bf16 %v13994_v15  ;;  %v14001_v29 = vunpack.i.h.bf16 %v13999_v23  ;;  %v14000_v34 = vunpack.i.l.bf16 %v13999_v23  ;;  %v5179_v15 = vld [vmem:[#allocation3 + $0x170] sm:$0xff]  ;;  %v5180_v23 = vld [vmem:[#allocation3 + $0x178] sm:$0xff] }
 0x4e3   : > { %11410 = vmatmul.mubr.msk.f32.gmra.mrb[10].mxu0 %vm2518_vm15, %v4688_v60 }
 0x4e4   : > { %12764 = vmatpush3.bf16.msra.mxu0 %v12761_v56  ;;  %5078 = vmatprep.mubr.f32.mxu0 %v14739_v5  ;;  %v5211_v32 = vsel %vm17042_vm14, %v13995_v18, %v13996_v3  ;;  %v5206_v50 = vsel %vm17044_vm13, %v13976_v49, %v14000_v34  ;;  %v5208_v51 = vsel %vm17045_vm12, %v13986_v58, %v14001_v29  ;;  %vm17046_vm14 = vmmov %vm17043_vm11  ;;  %vm17047_vm13 = vcmask 900096  }
 0x4e5   : > { %12766 = vmatprep.subr.bf16.mxu0 %v12765_v4  ;;  %v14009_v27 = vpop.permute.xlu0 %14008  ;;  %v12770_v38 = vpack.c.bf16 %v5211_v32, %v5209_v35  ;;  %v12772_v31 = vpack.c.bf16 %v13995_v18, %v13990_v26  ;;  %v12775_v46 = vpack.c.bf16 %v5208_v51, %v5206_v50  ;;  %vm17048_vm12 = vmmov %vm17047_vm13 }
 0x4e6   : > { %v14011_v41 = vunpack.i.h.bf16 %v14009_v27  ;;  %v14010_v43 = vunpack.i.l.bf16 %v14009_v27 }
 0x4e7   : > { %11411 = vmatmul.mubr.msk.f32.gmra.mrb[12].mxu0 %vm2518_vm15, %v4689_v9 }
 0x4e8   : > { %5084 = vmatprep.mubr.f32.mxu0 %v14739_v5  ;;  %v5210_v59 = vsel %vm17046_vm14, %v13991_v22, %v14010_v43  ;;  %v5212_v49 = vsel %vm17043_vm11, %v13996_v3, %v14011_v41  ;;  %vm17049_vm14 = vmmov %vm17048_vm12 }
 0x4e9   : > { %v14014_v40 = vpop.permute.xlu0 %14013  ;;  %vm17050_vm11 = vmmov %vm17048_vm12 }
 0x4ea   : > { %v14016_v52 = vunpack.i.h.bf16 %v14014_v40  ;;  %v14015_v48 = vunpack.i.l.bf16 %v14014_v40 }
 0x4eb   : > { %11412 = vmatmul.mubr.msk.f32.gmra.mrb[14].mxu0 %vm2518_vm15, %v4690_v20 }
 0x4ec   : > { %12232 = vmatprep.mubr.msk.f32.mxu0 %vm2518_vm15, %v4687_v44  ;;  %v14004_v44 = vpop.permute.xlu1 %14003  ;;  %v5458_v62 = vsel %vm993_vm5, %v14015_v48, %v14016_v52 }
 0x4ed   : > { %v14006_v58 = vunpack.i.h.bf16 %v14004_v44  ;;  %v14005_v56 = vunpack.i.l.bf16 %v14004_v44  ;;  %v14024_v3 = vpop.permute.xlu0 %14023 }
 0x4ee   : > { %v14026_v18 = vunpack.i.h.bf16 %v14024_v3 }
 0x4ef   : > { %12233 = vmatmul.mubr.msk.f32.vlgmr.msra.gmra.mrb[16].mxu0 %vm2518_vm15, %v4688_v60  ;;  %v12779_v60 = vpack.c.bf16 %v5212_v49, %v5210_v59  ;;  %v5456_v0 = vsel %vm993_vm5, %v14005_v56, %v14006_v58  ;;  %v12785_v35 = vpack.c.bf16 %v14015_v48, %v14005_v56  ;;  %v5430_v49 = vld [vmem:[#allocation3 + $0x190] sm:$0xff] }
 0x4f0   : > { %12769 = vmatpush1.bf16.msk.msra.mxu0 %vm15510_vm1, %v12767_v30  ;;  %12235 = vmatprep.mubr.msk.f32.mxu0 %vm2518_vm15, %v4689_v9  ;;  %v14019_v4 = vpop.permute.xlu1 %14018  ;;  %v12783_v9 = vpack.c.bf16 %v5458_v62, %v5456_v0 }
 0x4f1   : > { %12771 = vmatprep.subr.bf16.mxu0 %v12770_v38  ;;  %v14021_v26 = vunpack.i.h.bf16 %v14019_v4  ;;  %v14020_v27 = vunpack.i.l.bf16 %v14019_v4  ;;  %v14034_v30 = vpop.permute.xlu0 %14033 }
 0x4f2   : > { %v14036_v43 = vunpack.i.h.bf16 %v14034_v30  ;;  %v14035_v50 = vunpack.i.l.bf16 %v14034_v30 }
 0x4f3   : > { %12236 = vmatmul.mubr.msk.f32.gmra.mrb[18].mxu0 %vm2518_vm15, %v4690_v20  ;;  %v14025_v20 = vunpack.i.l.bf16 %v14024_v3  ;;  %v5460_v38 = vsel %vm993_vm5, %v14020_v27, %v14021_v26  ;;  %v5682_v3 = vld [vmem:[#allocation3 + $0x1b8] sm:$0xff] }
 0x4f4   : > { %12774 = vmatpush1.bf16.msk.msra.mxu0 %vm15510_vm1, %v12772_v31  ;;  %5305 = vmatprep.mubr.f32.mxu0 %v14739_v5  ;;  %v14029_v22 = vpop.permute.xlu1 %14028  ;;  %v5461_v48 = vsel %vm993_vm5, %v14021_v26, %v14035_v50 }
 0x4f5   : > { %12776 = vmatprep.subr.bf16.mxu0 %v12775_v46  ;;  %v14031_v29 = vunpack.i.h.bf16 %v14029_v22  ;;  %v14030_v34 = vunpack.i.l.bf16 %v14029_v22  ;;  %v5462_v32 = vsel %vm993_vm5, %v14025_v20, %v14026_v18  ;;  %v12790_v31 = vpack.c.bf16 %v14025_v20, %v14020_v27  ;;  %v14044_v13 = vpop.permute.xlu0 %14043 }
 0x4f6   : > { %v12788_v41 = vpack.c.bf16 %v5462_v32, %v5460_v38 }
 0x4f7   : > { %11425 = vmatmul.mubr.msk.f32.vlgmr.msra.gmra.mrb[8].mxu0 %vm2518_vm15, %v5177_v55  ;;  %v5457_v51 = vsel %vm993_vm5, %v14006_v58, %v14030_v34  ;;  %v5459_v40 = vsel %vm993_vm5, %v14016_v52, %v14031_v29  ;;  %v5429_v52 = vld [vmem:[#allocation3 + $0x188] sm:$0xff]  ;;  %v5431_v58 = vld [vmem:[#allocation3 + $0x198] sm:$0xff] }
 0x4f8   : > { %12778 = vmatpush3.bf16.msra.mxu0 %v12775_v46  ;;  %5311 = vmatprep.mubr.f32.mxu0 %v14739_v5  ;;  %v12793_v44 = vpack.c.bf16 %v5459_v40, %v5457_v51  ;;  %v5428_v46 = vld [vmem:[#allocation3 + $0x180] sm:$0xff]  ;;  %v14039_v56 = vpop.permute.xlu1 %14038 }
 0x4f9   : > { %12780 = vmatprep.subr.bf16.mxu0 %v12779_v60  ;;  %v14041_v33 = vunpack.i.h.bf16 %v14039_v56  ;;  %v14059_v54 = vpop.permute.xlu0 %14058  ;;  %v5882_v40 = vld [vmem:[#allocation3 + $0x1c0] sm:$0xff] }
 0x4fa   : > { %v14061_v4 = vunpack.i.h.bf16 %v14059_v54 }
 0x4fb   : > { %11426 = vmatmul.mubr.msk.f32.gmra.mrb[10].mxu0 %vm2518_vm15, %v5178_v61 }
 0x4fc   : > { %12782 = vmatpush3.bf16.msra.mxu0 %v12779_v60  ;;  %5317 = vmatprep.mubr.f32.mxu0 %v14739_v5  ;;  %v14045_v60 = vunpack.i.l.bf16 %v14044_v13 }
 0x4fd   : > { %12784 = vmatprep.subr.bf16.mxu0 %v12783_v9  ;;  %v14060_v9 = vunpack.i.l.bf16 %v14059_v54 }
 0x4ff   : > { %11427 = vmatmul.mubr.msk.f32.gmra.mrb[12].mxu0 %vm2518_vm15, %v5179_v15  ;;  %v5915_v26 = vsel %vm16988_vm7, %v14060_v9, %v14061_v4 }
 0x500   : > { %5323 = vmatprep.mubr.f32.mxu0 %v14739_v5 }
 0x503   : > { %11428 = vmatmul.mubr.msk.f32.gmra.mrb[14].mxu0 %vm2518_vm15, %v5180_v23 }
 0x504   : > { %12246 = vmatprep.mubr.msk.f32.mxu0 %vm2518_vm15, %v5177_v55  ;;  %v5463_v55 = vsel %vm993_vm5, %v14026_v18, %v14036_v43 }
 0x505   : > { %v12797_v59 = vpack.c.bf16 %v5463_v55, %v5461_v48  ;;  %v5883_v55 = vld [vmem:[#allocation3 + $0x1c8] sm:$0xff] }
 0x507   : > { %12247 = vmatmul.mubr.msk.f32.vlgmr.msra.gmra.mrb[16].mxu0 %vm2518_vm15, %v5178_v61  ;;  %v14049_v61 = vpop.permute.xlu1 %14048 }
 0x508   : > { %12787 = vmatpush1.bf16.msk.msra.mxu0 %vm15539_vm4, %v12785_v35  ;;  %12249 = vmatprep.mubr.msk.f32.mxu0 %vm2518_vm15, %v5179_v15  ;;  %v14051_v36 = vunpack.i.h.bf16 %v14049_v61  ;;  %v14050_v42 = vunpack.i.l.bf16 %v14049_v61  ;;  %v14064_v15 = vpop.permute.xlu0 %14063 }
 0x509   : > { %12789 = vmatprep.subr.bf16.mxu0 %v12788_v41  ;;  %v14065_v22 = vunpack.i.l.bf16 %v14064_v15 }
 0x50a   : > { %v5912_v20 = vsel %vm16988_vm7, %v14051_v36, %v14045_v60 }
 0x50b   : > { %12250 = vmatmul.mubr.msk.f32.gmra.mrb[18].mxu0 %vm2518_vm15, %v5180_v23  ;;  %v14054_v28 = vpop.permute.xlu1 %14053  ;;  %v14066_v23 = vunpack.i.h.bf16 %v14064_v15  ;;  %v5914_v32 = vsel %vm16988_vm7, %v14065_v22, %v14060_v9 }
 0x50c   : > { %12792 = vmatpush1.bf16.msk.msra.mxu0 %vm15539_vm4, %v12790_v31  ;;  %5556 = vmatprep.mubr.f32.mxu0 %v14739_v5  ;;  %v14056_v62 = vunpack.i.h.bf16 %v14054_v28  ;;  %v14055_v0 = vunpack.i.l.bf16 %v14054_v28  ;;  %v14074_v38 = vpop.permute.xlu0 %14073 }
 0x50d   : > { %12794 = vmatprep.subr.bf16.mxu0 %v12793_v44  ;;  %v14076_v50 = vunpack.i.h.bf16 %v14074_v38  ;;  %v14075_v51 = vunpack.i.l.bf16 %v14074_v38  ;;  %v6135_v38 = vld [vmem:[#allocation3 + $0x1f0] sm:$0xff] }
 0x50e   : > { %v5917_v27 = vsel %vm16988_vm7, %v14055_v0, %v14056_v62  ;;  %v5916_v34 = vsel %vm16988_vm7, %v14066_v23, %v14055_v0 }
 0x50f   : > { %11441 = vmatmul.mubr.msk.f32.vlgmr.msra.gmra.mrb[8].mxu0 %vm2518_vm15, %v5428_v46  ;;  %v12821_v30 = vpack.c.bf16 %v5917_v27, %v5915_v26  ;;  %v14069_v35 = vpop.permute.xlu1 %14068  ;;  %v12823_v41 = vpack.c.bf16 %v5916_v34, %v5914_v32 }
 0x510   : > { %12796 = vmatpush3.bf16.msra.mxu0 %v12793_v44  ;;  %5562 = vmatprep.mubr.f32.mxu0 %v14739_v5  ;;  %v14071_v31 = vunpack.i.h.bf16 %v14069_v35  ;;  %v14070_v44 = vunpack.i.l.bf16 %v14069_v35 }
 0x511   : > { %12798 = vmatprep.subr.bf16.mxu0 %v12797_v59 }
 0x512   : > { %v12845_v15 = vpack.c.bf16 %v14076_v50, %v14071_v31 }
 0x513   : > { %11442 = vmatmul.mubr.msk.f32.gmra.mrb[10].mxu0 %vm2518_vm15, %v5429_v52  ;;  %v14079_v48 = vpop.permute.xlu1 %14078 }
 0x514   : > { %12800 = vmatpush3.bf16.msra.mxu0 %v12797_v59  ;;  %5568 = vmatprep.mubr.f32.mxu0 %v14739_v5  ;;  %v6164_v59 = vsel %vm16987_vm10, %v14075_v51, %v14076_v50 }
 0x515   : > { %12802 = vmatprep.subr.bf16.mxu0 %v12801_v53  ;;  %v14046_v53 = vunpack.i.h.bf16 %v14044_v13 }
 0x517   : > { %11443 = vmatmul.mubr.msk.f32.gmra.mrb[12].mxu0 %vm2518_vm15, %v5430_v49  ;;  %v12825_v43 = vpack.c.bf16 %v14046_v53, %v14041_v33  ;;  %v14084_v13 = vpop.permute.xlu1 %14083 }
 0x518   : > { %5574 = vmatprep.mubr.f32.mxu0 %v14739_v5 }
 0x51b   : > { %11444 = vmatmul.mubr.msk.f32.gmra.mrb[14].mxu0 %vm2518_vm15, %v5431_v58  ;;  %v14099_v0 = vpop.permute.xlu1 %14098 }
 0x51c   : > { %12260 = vmatprep.mubr.msk.f32.mxu0 %vm2518_vm15, %v5428_v46  ;;  %v12831_v46 = vpack.c.bf16 %v14056_v62, %v14061_v4  ;;  %v14101_v23 = vunpack.i.h.bf16 %v14099_v0  ;;  %v14100_v22 = vunpack.i.l.bf16 %v14099_v0 }
 0x51f   : > { %12261 = vmatmul.mubr.msk.f32.vlgmr.msra.gmra.mrb[16].mxu0 %vm2518_vm15, %v5429_v52  ;;  %v14089_v52 = vpop.permute.xlu0 %14088  ;;  %v14109_v27 = vpop.permute.xlu1 %14108 }
 0x520   : > { %12804 = vmatpush1.bf16.msra.mxu0 %v12803_v39  ;;  %12263 = vmatprep.mubr.msk.f32.mxu0 %vm2518_vm15, %v5430_v49  ;;  %v14040_v39 = vunpack.i.l.bf16 %v14039_v56  ;;  %v6162_v49 = vsel %vm16987_vm10, %v14070_v44, %v14071_v31  ;;  %v5884_v56 = vld [vmem:[#allocation3 + $0x1d0] sm:$0xff]  ;;  %v14110_v50 = vunpack.i.l.bf16 %v14109_v27 }
 0x521   : > { %12806 = vmatprep.subr.bf16.mxu0 %v12805_v25  ;;  %v5913_v25 = vsel %vm16988_vm7, %v14045_v60, %v14046_v53  ;;  %v14080_v53 = vunpack.i.l.bf16 %v14079_v48  ;;  %v14086_v60 = vunpack.i.h.bf16 %v14084_v13 }
 0x522   : > { %v5911_v63 = vsel %vm16988_vm7, %v14040_v39, %v14041_v33  ;;  %v5910_v18 = vsel %vm16988_vm7, %v14050_v42, %v14040_v39  ;;  %v14091_v33 = vunpack.i.h.bf16 %v14089_v52  ;;  %v14090_v39 = vunpack.i.l.bf16 %v14089_v52 }
 0x523   : > { %12264 = vmatmul.mubr.msk.f32.gmra.mrb[18].mxu0 %vm2518_vm15, %v5431_v58  ;;  %v12819_v29 = vpack.c.bf16 %v5912_v20, %v5910_v18  ;;  %v12837_v58 = vpack.c.bf16 %v6164_v59, %v6162_v49  ;;  %v14094_v61 = vpop.permute.xlu0 %14093  ;;  %v6133_v20 = vld [vmem:[#allocation3 + $0x1e0] sm:$0xff] }
 0x524   : > { %12808 = vmatpush1.bf16.msra.mxu0 %v12807_v17  ;;  %5759 = vmatprep.mubr.f32.mxu0 %v14739_v5  ;;  %v12817_v17 = vpack.c.bf16 %v5913_v25, %v5911_v63  ;;  %v14096_v54 = vunpack.i.h.bf16 %v14094_v61  ;;  %v14095_v63 = vunpack.i.l.bf16 %v14094_v61  ;;  %v12851_v26 = vpack.c.bf16 %v14086_v60, %v14091_v33 }
 0x525   : > { %12810 = vmatprep.subr.bf16.mxu0 %v12809_v47 }
 0x526   : > { %v6165_v42 = vsel %vm16987_vm10, %v14095_v63, %v14090_v39 }
 0x527   : > { %11449 = vmatmul.mubr.msk.f32.vlgmr.msra.gmra.mrb[8].mxu0 %vm2518_vm15, %v5679_v16  ;;  %v14104_v4 = vpop.permute.xlu0 %14103 }
 0x528   : > { %12812 = vmatpush3.bf16.msra.mxu0 %v12809_v47  ;;  %5765 = vmatprep.mubr.f32.mxu0 %v14739_v5  ;;  %v14081_v47 = vunpack.i.h.bf16 %v14079_v48  ;;  %v14105_v18 = vunpack.i.l.bf16 %v14104_v4  ;;  %v6136_v48 = vld [vmem:[#allocation3 + $0x1f8] sm:$0xff] }
 0x529   : > { %12814 = vmatprep.subr.bf16.mxu0 %v12813_v57 }
 0x52a   : > { %v6163_v25 = vsel %vm16987_vm10, %v14081_v47, %v14075_v51 }
 0x52b   : > { %11450 = vmatmul.mubr.msk.f32.gmra.mrb[10].mxu0 %vm2518_vm15, %v5680_v11  ;;  %v14119_v32 = vpop.permute.xlu0 %14118 }
 0x52c   : > { %12816 = vmatpush3.bf16.msra.mxu0 %v12813_v57  ;;  %5771 = vmatprep.mubr.f32.mxu0 %v14739_v5  ;;  %v5885_v57 = vld [vmem:[#allocation3 + $0x1d8] sm:$0xff]  ;;  %v14121_v31 = vunpack.i.h.bf16 %v14119_v32 }
 0x52d   : > { %12818 = vmatprep.subr.bf16.mxu0 %v12817_v17  ;;  %v6166_v17 = vsel %vm16987_vm10, %v14090_v39, %v14091_v33 }
 0x52f   : > { %11451 = vmatmul.mubr.msk.f32.gmra.mrb[12].mxu0 %vm2518_vm15, %v5681_v21 }
 0x530   : > { %5777 = vmatprep.mubr.f32.mxu0 %v14739_v5 }
 0x533   : > { %11452 = vmatmul.mubr.msk.f32.gmra.mrb[14].mxu0 %vm2518_vm15, %v5682_v3 }
 0x534   : > { %12274 = vmatprep.mubr.msk.f32.mxu0 %vm2518_vm15, %v5679_v16  ;;  %v14085_v16 = vunpack.i.l.bf16 %v14084_v13 }
 0x536   : > { %v6167_v36 = vsel %vm16987_vm10, %v14096_v54, %v14085_v16 }
 0x537   : > { %12275 = vmatmul.mubr.msk.f32.vlgmr.msra.gmra.mrb[16].mxu0 %vm2518_vm15, %v5680_v11  ;;  %v6161_v11 = vsel %vm16987_vm10, %v14080_v53, %v14070_v44  ;;  %v12843_v9 = vpack.c.bf16 %v6167_v36, %v6165_v42  ;;  %v14120_v44 = vunpack.i.l.bf16 %v14119_v32 }
 0x538   : > { %12820 = vmatpush1.bf16.msra.mxu0 %v12819_v29  ;;  %12277 = vmatprep.mubr.msk.f32.mxu0 %vm2518_vm15, %v5681_v21  ;;  %v6168_v21 = vsel %vm16987_vm10, %v14085_v16, %v14086_v60  ;;  %v12839_v28 = vpack.c.bf16 %v6163_v25, %v6161_v11  ;;  %v6134_v29 = vld [vmem:[#allocation3 + $0x1e8] sm:$0xff]  ;;  %vm17053_vm10 = vmmov %vm17050_vm11  ;;  %v6384_v25 = vld [vmem:[#allocation3 + $0x200] sm:$0xff] }
 0x539   : > { %12822 = vmatprep.subr.bf16.mxu0 %v12821_v30  ;;  %v12841_v62 = vpack.c.bf16 %v6168_v21, %v6166_v17  ;;  %v6413_v30 = vsel %vm17048_vm12, %v14100_v22, %v14101_v23  ;;  %vm17052_vm12 = vmmov %vm17050_vm11 }
 0x53a   : > { %vm17054_vm7 = vmmov %vm17053_vm10 }
 0x53b   : > { %12278 = vmatmul.mubr.msk.f32.gmra.mrb[18].mxu0 %vm2518_vm15, %v5682_v3  ;;  %v14106_v3 = vunpack.i.h.bf16 %v14104_v4  ;;  %v6386_v4 = vld [vmem:[#allocation3 + $0x210] sm:$0xff] }
 0x53c   : > { %12824 = vmatpush1.bf16.msra.mxu0 %v12823_v41  ;;  %6010 = vmatprep.mubr.f32.mxu0 %v14739_v5  ;;  %v14114_v41 = vpop.permute.xlu1 %14113 }
 0x53d   : > { %12827 = vmatprep.subr.msk.bf16.mxu0 %vm15606_vm3, %v12825_v43  ;;  %v6415_v34 = vsel %vm17047_vm13, %v14105_v18, %v14106_v3  ;;  %v14116_v51 = vunpack.i.h.bf16 %v14114_v41  ;;  %vm17051_vm13 = vmmov %vm17050_vm11  ;;  %v12865_v61 = vpack.c.bf16 %v14106_v3, %v14101_v23 }
 0x53e   : > { %v12857_v35 = vpack.c.bf16 %v6415_v34, %v6413_v30 }
 0x53f   : > { %11457 = vmatmul.mubr.msk.f32.vlgmr.msra.gmra.mrb[8].mxu0 %vm2518_vm15, %v5882_v40  ;;  %v12871_v17 = vpack.c.bf16 %v14116_v51, %v14121_v31 }
 0x540   : > { %12830 = vmatpush3.bf16.msk.msra.mxu0 %vm15606_vm3, %v12825_v43  ;;  %6016 = vmatprep.mubr.f32.mxu0 %v14739_v5  ;;  %v14111_v43 = vunpack.i.h.bf16 %v14109_v27  ;;  %v14129_v16 = vpop.permute.xlu1 %14128  ;;  %v6387_v27 = vld [vmem:[#allocation3 + $0x218] sm:$0xff] }
 0x541   : > { %12833 = vmatprep.subr.msk.bf16.mxu0 %vm15606_vm3, %v12831_v46  ;;  %v14131_v54 = vunpack.i.h.bf16 %v14129_v16  ;;  %v14130_v63 = vunpack.i.l.bf16 %v14129_v16 }
 0x542   : > { %v6414_v59 = vsel %vm17050_vm11, %v14111_v43, %v14105_v18 }
 0x543   : > { %11458 = vmatmul.mubr.msk.f32.gmra.mrb[10].mxu0 %vm2518_vm15, %v5883_v55 }
 0x544   : > { %12836 = vmatpush3.bf16.msk.msra.mxu0 %vm15606_vm3, %v12831_v46  ;;  %6022 = vmatprep.mubr.f32.mxu0 %v14739_v5  ;;  %v14124_v46 = vpop.permute.xlu0 %14123  ;;  %v14139_v21 = vpop.permute.xlu1 %14138 }
 0x545   : > { %12838 = vmatprep.subr.bf16.mxu0 %v12837_v58  ;;  %v14126_v52 = vunpack.i.h.bf16 %v14124_v46  ;;  %v14125_v49 = vunpack.i.l.bf16 %v14124_v46  ;;  %v6417_v58 = vsel %vm17051_vm13, %v14120_v44, %v14121_v31  ;;  %v14140_v3 = vunpack.i.l.bf16 %v14139_v21 }
 0x547   : > { %11459 = vmatmul.mubr.msk.f32.gmra.mrb[12].mxu0 %vm2518_vm15, %v5884_v56  ;;  %v6416_v53 = vsel %vm17054_vm7, %v14125_v49, %v14120_v44  ;;  %vm17055_vm7 = vcmask 891904   ;;  %v6635_v44 = vld [vmem:[#allocation3 + $0x220] sm:$0xff] }
 0x548   : > { %6028 = vmatprep.mubr.f32.mxu0 %v14739_v5  ;;  %v14134_v33 = vpop.permute.xlu0 %14133  ;;  %vm17058_vm11 = vmmov %vm17055_vm7 }
 0x549   : > { %v14135_v11 = vunpack.i.l.bf16 %v14134_v33  ;;  %vm17059_vm13 = vmmov %vm17055_vm7 }
 0x54b   : > { %11460 = vmatmul.mubr.msk.f32.gmra.mrb[14].mxu0 %vm2518_vm15, %v5885_v57 }
 0x54c   : > { %12288 = vmatprep.mubr.msk.f32.mxu0 %vm2518_vm15, %v5882_v40  ;;  %v14115_v40 = vunpack.i.l.bf16 %v14114_v41  ;;  %v14149_v42 = vpop.permute.xlu0 %14148 }
 0x54d   : > { %v14151_v23 = vunpack.i.h.bf16 %v14149_v42 }
 0x54e   : > { %v6418_v47 = vsel %vm17053_vm10, %v14126_v52, %v14115_v40  ;;  %vm17056_vm10 = vmmov %vm17055_vm7 }
 0x54f   : > { %12289 = vmatmul.mubr.msk.f32.vlgmr.msra.gmra.mrb[16].mxu0 %vm2518_vm15, %v5883_v55  ;;  %v6412_v55 = vsel %vm17049_vm14, %v14110_v50, %v14100_v22  ;;  %v12863_v39 = vpack.c.bf16 %v6418_v47, %v6416_v53  ;;  %v14150_v22 = vunpack.i.l.bf16 %v14149_v42  ;;  %vm17057_vm14 = vmmov %vm17055_vm7 }
 0x550   : > { %12840 = vmatpush1.bf16.msra.mxu0 %v12839_v28  ;;  %12291 = vmatprep.mubr.msk.f32.mxu0 %vm2518_vm15, %v5884_v56  ;;  %v6419_v56 = vsel %vm17052_vm12, %v14115_v40, %v14116_v51  ;;  %v12859_v13 = vpack.c.bf16 %v6414_v59, %v6412_v55  ;;  %v6385_v28 = vld [vmem:[#allocation3 + $0x208] sm:$0xff]  ;;  %vm17060_vm12 = vmmov %vm17055_vm7  ;;  %v6637_v55 = vld [vmem:[#allocation3 + $0x230] sm:$0xff] }
 0x551   : > { %12842 = vmatprep.subr.bf16.mxu0 %v12841_v62  ;;  %v12861_v60 = vpack.c.bf16 %v6419_v56, %v6417_v58  ;;  %v6664_v62 = vsel %vm17056_vm10, %v14130_v63, %v14131_v54  ;;  %vm17061_vm10 = vmmov %vm17055_vm7  ;;  %v6638_v59 = vld [vmem:[#allocation3 + $0x238] sm:$0xff] }
 0x553   : > { %12292 = vmatmul.mubr.msk.f32.gmra.mrb[18].mxu0 %vm2518_vm15, %v5885_v57  ;;  %v14136_v57 = vunpack.i.h.bf16 %v14134_v33 }
 0x554   : > { %12844 = vmatpush1.bf16.msra.mxu0 %v12843_v9  ;;  %6261 = vmatprep.mubr.f32.mxu0 %v14739_v5  ;;  %v14144_v9 = vpop.permute.xlu1 %14143 }
 0x555   : > { %12847 = vmatprep.subr.msk.bf16.mxu0 %vm15644_vm6, %v12845_v15  ;;  %v6666_v36 = vsel %vm17055_vm7, %v14135_v11, %v14136_v57  ;;  %v14146_v18 = vunpack.i.h.bf16 %v14144_v9  ;;  %v12885_v31 = vpack.c.bf16 %v14136_v57, %v14131_v54 }
 0x556   : > { %v12877_v0 = vpack.c.bf16 %v6666_v36, %v6664_v62 }
 0x557   : > { %11469 = vmatmul.mubr.msk.f32.vlgmr.msra.gmra.mrb[8].mxu0 %vm2518_vm15, %v6133_v20  ;;  %v12891_v46 = vpack.c.bf16 %v14146_v18, %v14151_v23 }
 0x558   : > { %12850 = vmatpush3.bf16.msk.msra.mxu0 %vm15644_vm6, %v12845_v15  ;;  %6267 = vmatprep.mubr.f32.mxu0 %v14739_v5  ;;  %v14141_v15 = vunpack.i.h.bf16 %v14139_v21  ;;  %v6888_v52 = vpop.permute.xlu1 %6887 }
 0x559   : > { %12853 = vmatprep.subr.msk.bf16.mxu0 %vm15644_vm6, %v12851_v26 }
 0x55a   : > { %v6665_v34 = vsel %vm17058_vm11, %v14141_v15, %v14135_v11 }
 0x55b   : > { %11470 = vmatmul.mubr.msk.f32.gmra.mrb[10].mxu0 %vm2518_vm15, %v6134_v29 }
 0x55c   : > { %12856 = vmatpush3.bf16.msk.msra.mxu0 %vm15644_vm6, %v12851_v26  ;;  %6273 = vmatprep.mubr.f32.mxu0 %v14739_v5  ;;  %v14154_v26 = vpop.permute.xlu0 %14153  ;;  %v6898_v54 = vpop.permute.xlu1 %6897 }
 0x55d   : > { %12858 = vmatprep.subr.bf16.mxu0 %v12857_v35  ;;  %v14156_v32 = vunpack.i.h.bf16 %v14154_v26  ;;  %v14155_v30 = vunpack.i.l.bf16 %v14154_v26  ;;  %v6668_v35 = vsel %vm17059_vm13, %v14150_v22, %v14151_v23 }
 0x55f   : > { %11471 = vmatmul.mubr.msk.f32.gmra.mrb[12].mxu0 %vm2518_vm15, %v6135_v38  ;;  %v6667_v50 = vsel %vm17061_vm10, %v14155_v30, %v14150_v22 }
 0x560   : > { %6279 = vmatprep.mubr.f32.mxu0 %v14739_v5  ;;  %v6893_v53 = vpop.permute.xlu0 %6892 }
 0x563   : > { %11472 = vmatmul.mubr.msk.f32.gmra.mrb[14].mxu0 %vm2518_vm15, %v6136_v48 }
 0x564   : > { %12302 = vmatprep.mubr.msk.f32.mxu0 %vm2518_vm15, %v6133_v20  ;;  %v14145_v20 = vunpack.i.l.bf16 %v14144_v9 }
 0x566   : > { %v6669_v43 = vsel %vm17055_vm7, %v14156_v32, %v14145_v20  ;;  %vm17068_vm7 = vcmask 146432  }
 0x567   : > { %12303 = vmatmul.mubr.msk.f32.vlgmr.msra.gmra.mrb[16].mxu0 %vm2518_vm15, %v6134_v29  ;;  %v6663_v29 = vsel %vm17057_vm14, %v14140_v3, %v14130_v63  ;;  %v12883_v40 = vpack.c.bf16 %v6669_v43, %v6667_v50  ;;  %v6903_v3 = vpop.permute.xlu0 %6902  ;;  %vm17063_vm14 = vcmask 556032   ;;  %vm17069_vm10 = vmmov %vm17068_vm7 }
 0x568   : > { %12860 = vmatpush1.bf16.msra.mxu0 %v12859_v13  ;;  %12305 = vmatprep.mubr.msk.f32.mxu0 %vm2518_vm15, %v6135_v38  ;;  %v6670_v38 = vsel %vm17060_vm12, %v14145_v20, %v14146_v18  ;;  %v12879_v41 = vpack.c.bf16 %v6665_v34, %v6663_v29  ;;  %vm17064_vm11 = vmmov %vm17063_vm14 }
 0x569   : > { %12862 = vmatprep.subr.bf16.mxu0 %v12861_v60  ;;  %v12881_v51 = vpack.c.bf16 %v6670_v38, %v6668_v35  ;;  %vm17065_vm13 = vmmov %vm17064_vm11 }
 0x56a   : > { %vm17066_vm12 = vmmov %vm17064_vm11 }
 0x56b   : > { %12306 = vmatmul.mubr.msk.f32.gmra.mrb[18].mxu0 %vm2518_vm15, %v6136_v48  ;;  %v6636_v48 = vld [vmem:[#allocation3 + $0x228] sm:$0xff] }
 0x56c   : > { %12864 = vmatpush1.bf16.msra.mxu0 %v12863_v39  ;;  %6512 = vmatprep.mubr.f32.mxu0 %v14739_v5 }
 0x56d   : > { %12867 = vmatprep.subr.msk.bf16.mxu0 %vm15680_vm8, %v12865_v61 }
 0x56f   : > { %11481 = vmatmul.mubr.msk.f32.vlgmr.msra.gmra.mrb[8].mxu0 %vm2518_vm15, %v6384_v25 }
 0x570   : > { %12870 = vmatpush3.bf16.msk.msra.mxu0 %vm15680_vm8, %v12865_v61  ;;  %6518 = vmatprep.mubr.f32.mxu0 %v14739_v5 }
 0x571   : > { %12873 = vmatprep.subr.msk.bf16.mxu0 %vm15680_vm8, %v12871_v17 }
 0x573   : > { %11482 = vmatmul.mubr.msk.f32.gmra.mrb[10].mxu0 %vm2518_vm15, %v6385_v28 }
 0x574   : > { %12876 = vmatpush3.bf16.msk.msra.mxu0 %vm15680_vm8, %v12871_v17  ;;  %6524 = vmatprep.mubr.f32.mxu0 %v14739_v5 }
 0x575   : > { %12878 = vmatprep.subr.bf16.mxu0 %v12877_v0 }
 0x577   : > { %11483 = vmatmul.mubr.msk.f32.gmra.mrb[12].mxu0 %vm2518_vm15, %v6386_v4 }
 0x578   : > { %6530 = vmatprep.mubr.f32.mxu0 %v14739_v5 }
 0x57b   : > { %11484 = vmatmul.mubr.msk.f32.gmra.mrb[14].mxu0 %vm2518_vm15, %v6387_v27 }
 0x57c   : > { %12316 = vmatprep.mubr.msk.f32.mxu0 %vm2518_vm15, %v6384_v25 }
 0x57f   : > { %12317 = vmatmul.mubr.msk.f32.vlgmr.msra.gmra.mrb[16].mxu0 %vm2518_vm15, %v6385_v28 }
 0x580   : > { %12880 = vmatpush1.bf16.msra.mxu0 %v12879_v41  ;;  %12319 = vmatprep.mubr.msk.f32.mxu0 %vm2518_vm15, %v6386_v4 }
 0x581   : > { %12882 = vmatprep.subr.bf16.mxu0 %v12881_v51 }
 0x583   : > { %12320 = vmatmul.mubr.msk.f32.gmra.mrb[18].mxu0 %vm2518_vm15, %v6387_v27 }
 0x584   : > { %12884 = vmatpush1.bf16.msra.mxu0 %v12883_v40  ;;  %6763 = vmatprep.mubr.f32.mxu0 %v14739_v5 }
 0x585   : > { %12887 = vmatprep.subr.msk.bf16.mxu0 %vm15714_vm9, %v12885_v31 }
 0x587   : > { %11493 = vmatmul.mubr.msk.f32.vlgmr.msra.gmra.mrb[8].mxu0 %vm2518_vm15, %v6635_v44 }
 0x588   : > { %12890 = vmatpush3.bf16.msk.msra.mxu0 %vm15714_vm9, %v12885_v31  ;;  %6769 = vmatprep.mubr.f32.mxu0 %v14739_v5 }
 0x589   : > { %12893 = vmatprep.subr.msk.bf16.mxu0 %vm15714_vm9, %v12891_v46 }
 0x58b   : > { %11494 = vmatmul.mubr.msk.f32.gmra.mrb[10].mxu0 %vm2518_vm15, %v6636_v48 }
 0x58c   : > { %12896 = vmatpush3.bf16.msk.msra.mxu0 %vm15714_vm9, %v12891_v46  ;;  %6775 = vmatprep.mubr.f32.mxu0 %v14739_v5 }
 0x58f   : > { %11495 = vmatmul.mubr.msk.f32.gmra.mrb[12].mxu0 %vm2518_vm15, %v6637_v55 }
 0x590   : > { %6781 = vmatprep.mubr.f32.mxu0 %v14739_v5 }
 0x593   : > { %11496 = vmatmul.mubr.msk.f32.gmra.mrb[14].mxu0 %vm2518_vm15, %v6638_v59 }
 0x594   : > { %12330 = vmatprep.mubr.msk.f32.mxu0 %vm2518_vm15, %v6635_v44 }
 0x597   : > { %12331 = vmatmul.mubr.msk.f32.vlgmr.msra.gmra.mrb[16].mxu0 %vm2518_vm15, %v6636_v48 }
 0x598   : > { %12333 = vmatprep.mubr.msk.f32.mxu0 %vm2518_vm15, %v6637_v55 }
 0x59b   : > { %12334 = vmatmul.mubr.msk.f32.gmra.mrb[18].mxu0 %vm2518_vm15, %v6638_v59 }
 0x59c   : > { %9428 = vmatprep.mubr.f32.mxu0 %v14739_v5 }
 0x65a   : > { %v6765_v49 = vpop.f32.mrb[8].mxu0 }
 0x65b   : > { %v6905_v58 = vadd.f32 %v6888_v52, %v6765_v49  ;;  %v6767_v56 = vpop.f32.mrb[9].mxu0 }
 0x65c   : > { %v6906_v13 = vadd.f32 %v6888_v52, %v6767_v56 }
 0x65d   : > { %v6917_v47 = vmax.f32 %v6905_v58, 0.0 }
 0x65e   : > { %v6918_v60 = vmax.f32 %v6906_v13, 0.0  ;;  %v6771_v16 = vpop.f32.mrb[10].mxu0 }
 0x65f   : > { %v16127_v33 = vmul.f32 %v6917_v47, %v15318_v2  ;;  %v6908_v39 = vadd.f32 %v6893_v53, %v6771_v16  ;;  %v6773_v61 = vpop.f32.mrb[11].mxu0 }
 0x660   : > { %v16130_v57 = vmul.f32 %v6918_v60, %v15320_v8  ;;  %v6909_v11 = vadd.f32 %v6893_v53, %v6773_v61 }
 0x661   : > { %v6920_v25 = vmax.f32 %v6908_v39, 0.0 }
 0x662   : > { %v6921_v63 = vmax.f32 %v6909_v11, 0.0  ;;  %v6777_v17 = vpop.f32.mrb[12].mxu0  ;;  %v16134_v21 = vpack.i.bf16 %v16130_v57, %v16127_v33 }
 0x663   : > { %v16137_v28 = vmul.f32 %v6920_v25, %v15318_v2  ;;  %v6911_v36 = vadd.f32 %v6898_v54, %v6777_v17  ;;  %v6779_v42 = vpop.f32.mrb[13].mxu0 }
 0x664   : > { %v16140_v62 = vmul.f32 %v6921_v63, %v15320_v8  ;;  %v6912_v0 = vadd.f32 %v6898_v54, %v6779_v42  ;;  %14158 = vrot.lane.b32.xlu1 %v16134_v21, %s17062_s0 }
 0x665   : > { %v6923_v4 = vmax.f32 %v6911_v36, 0.0  ;;  %v16146_v9 = vpack.i.bf16 %v16137_v28, %v16127_v33  ;;  %v12971_v15 = vpack.c.bf16 %v16137_v28, %v16127_v33  ;;  %v7963_v33 = vld [vmem:[#allocation3 + $0x2c0] sm:$0xff] }
 0x666   : > { %v6924_v18 = vmax.f32 %v6912_v0, 0.0  ;;  %v6783_v20 = vpop.f32.mrb[14].mxu0  ;;  %v14162_v23 = vpack.i.bf16 %v16140_v62, %v16137_v28  ;;  %v12969_v22 = vpack.c.bf16 %v16140_v62, %v16130_v57 }
 0x667   : > { %v16155_v26 = vmul.f32 %v6923_v4, %v15318_v2  ;;  %v6914_v27 = vadd.f32 %v6903_v3, %v6783_v20  ;;  %v6785_v29 = vpop.f32.mrb[15].mxu0  ;;  %v11505_v20 = vld [vmem:[%s16957_s5 + $0x40] sm:$0xff] }
 0x668   : > { %v16158_v34 = vmul.f32 %v6924_v18, %v15320_v8  ;;  %v6915_v32 = vadd.f32 %v6903_v3, %v6785_v29  ;;  %14163 = vrot.lane.b32.xlu0 %v14162_v23, %s17062_s0  ;;  %v11508_v29 = vld [vmem:[%s16957_s5 + $0x58] sm:$0xff] }
 0x669   : > { %v6926_v30 = vmax.f32 %v6914_v27, 0.0 }
 0x66a   : > { %v6927_v35 = vmax.f32 %v6915_v32, 0.0  ;;  %v12332_v38 = vpop.f32.mrb[16].mxu0  ;;  %v14167_v41 = vpack.i.bf16 %v16158_v34, %v16155_v26 }
 0x66b   : > { %v16164_v43 = vmul.f32 %v6926_v30, %v15318_v2  ;;  %v6910_v50 = vadd.f32 %v12332_v38, %v6893_v53  ;;  %v6854_v51 = vpop.f32.mrb[17].mxu0 }
 0x66c   : > { %v16167_v40 = vmul.f32 %v6927_v35, %v15320_v8  ;;  %v6907_v31 = vadd.f32 %v6888_v52, %v6854_v51  ;;  %14168 = vrot.lane.b32.xlu1 %v14167_v41, %s17062_s0 }
 0x66d   : > { %v6922_v44 = vmax.f32 %v6910_v50, 0.0  ;;  %v16172_v46 = vpack.i.bf16 %v16164_v43, %v16155_v26  ;;  %v12975_v48 = vpack.c.bf16 %v16164_v43, %v16155_v26 }
 0x66e   : > { %v6919_v55 = vmax.f32 %v6907_v31, 0.0  ;;  %v12335_v59 = vpop.f32.mrb[18].mxu0  ;;  %v14172_v49 = vpack.i.bf16 %v16167_v40, %v16164_v43  ;;  %v12973_v58 = vpack.c.bf16 %v16167_v40, %v16158_v34 }
 0x66f   : > { %v6934_v52 = vmul.f32 %v6922_v44, %v15306_v45  ;;  %v6916_v56 = vadd.f32 %v12335_v59, %v6903_v3  ;;  %v6864_v13 = vpop.f32.mrb[19].mxu0 }
 0x670   : > { %v6931_v47 = vmul.f32 %v6919_v55, %v15306_v45  ;;  %v6913_v53 = vadd.f32 %v6898_v54, %v6864_v13  ;;  %14173 = vrot.lane.b32.xlu0 %v14172_v49, %s17062_s0 }
 0x671   : > { %6946 = vst.msk [vmem:[#allocation2 + $0x28] sm:$0xff] %vm17063_vm14, %v6934_v52  ;;  %v6928_v60 = vmax.f32 %v6916_v56, 0.0  ;;  %vm17070_vm14 = vmmov %vm17068_vm7 }
 0x672   : > { %6943 = vst.msk [vmem:[#allocation2 + $0x10] sm:$0xff] %vm17064_vm11, %v6931_v47  ;;  %v6925_v16 = vmax.f32 %v6913_v53, 0.0  ;;  %vm17071_vm11 = vmmov %vm17068_vm7 }
 0x673   : > { %v6940_v39 = vmul.f32 %v6928_v60, %v15306_v45 }
 0x674   : > { %v6937_v61 = vmul.f32 %v6925_v16, %v15306_v45  ;;  %v7036_v16 = vld [vmem:[#allocation3 + $0x260] sm:$0xff] }
 0x675   : > { %6952 = vst.msk [vmem:[#allocation2 + $0x58] sm:$0xff] %vm17065_vm13, %v6940_v39  ;;  %v7037_v39 = vld [vmem:[#allocation3 + $0x268] sm:$0xff]  ;;  %vm17072_vm13 = vmmov %vm17068_vm7 }
 0x676   : > { %6949 = vst.msk [vmem:[#allocation2 + $0x40] sm:$0xff] %vm17066_vm12, %v6937_v61  ;;  %vm17073_vm12 = vmmov %vm17068_vm7 }
 0x678   : > { %v6958_v11 = vld [vmem:[#allocation2 + $0x28] sm:$0xff] }
 0x679   : > { %v6955_v25 = vld [vmem:[#allocation2 + $0x10] sm:$0xff]  ;;  %v14282_v3 = vpack.i.bf16 %v6958_v11, %v16140_v62 }
 0x67a   : > { %v14177_v63 = vpack.i.bf16 %v6958_v11, %v6955_v25  ;;  %v16189_v54 = vpack.c.bf16 %v6958_v11, %v6955_v25  ;;  %v14277_v4 = vpack.i.bf16 %v6955_v25, %v16130_v57 }
 0x67c   : > { %14178 = vrot.lane.b32.xlu1 %v14177_v63, %s17062_s0  ;;  %v6964_v17 = vld [vmem:[#allocation2 + $0x58] sm:$0xff] }
 0x67d   : > { %v6961_v36 = vld [vmem:[#allocation2 + $0x40] sm:$0xff] }
 0x67e   : > { %v14187_v42 = vpack.i.bf16 %v6964_v17, %v6961_v36  ;;  %v16192_v0 = vpack.c.bf16 %v6964_v17, %v6961_v36  ;;  %v14297_v18 = vpack.i.bf16 %v6961_v36, %v16158_v34  ;;  %v7038_v36 = vld [vmem:[#allocation3 + $0x270] sm:$0xff]  ;;  %v7964_v34 = vld [vmem:[#allocation3 + $0x2c8] sm:$0xff] }
 0x680   : > { %14183 = vrot.lane.b32.xlu1 %v16134_v21, %s17067_s1  ;;  %14188 = vrot.lane.b32.xlu0 %v14187_v42, %s17062_s0 }
 0x684   : > { %14198 = vrot.lane.b32.xlu1 %v14167_v41, %s17067_s1  ;;  %14193 = vrot.lane.b32.xlu0 %v14162_v23, %s17067_s1 }
 0x688   : > { %14208 = vrot.lane.b32.xlu1 %v14177_v63, %s17067_s1  ;;  %14203 = vrot.lane.b32.xlu0 %v14172_v49, %s17067_s1 }
 0x68c   : > { %14213 = vrot.lane.b32.xlu1 %v16134_v21, %s17022_s13  ;;  %14218 = vrot.lane.b32.xlu0 %v14187_v42, %s17067_s1 }
 0x690   : > { %14228 = vrot.lane.b32.xlu1 %v14167_v41, %s17022_s13  ;;  %14223 = vrot.lane.b32.xlu0 %v14162_v23, %s17022_s13 }
 0x694   : > { %14238 = vrot.lane.b32.xlu1 %v14177_v63, %s17022_s13  ;;  %14233 = vrot.lane.b32.xlu0 %v14172_v49, %s17022_s13 }
 0x698   : > { %14243 = vrot.lane.b32.xlu1 %v16134_v21, %s17023_s18  ;;  %14248 = vrot.lane.b32.xlu0 %v14187_v42, %s17022_s13  ;;  %v14292_v21 = vpack.i.bf16 %v6964_v17, %v16167_v40 }
 0x69c   : > { %14258 = vrot.lane.b32.xlu1 %v14167_v41, %s17023_s18  ;;  %14253 = vrot.lane.b32.xlu0 %v14162_v23, %s17023_s18  ;;  %v11507_v23 = vld [vmem:[%s16957_s5 + $0x50] sm:$0xff] }
 0x6a0   : > { %14268 = vrot.lane.b32.xlu1 %v14177_v63, %s17023_s18  ;;  %14263 = vrot.lane.b32.xlu0 %v14172_v49, %s17023_s18 }
 0x6a4   : > { %14278 = vrot.lane.b32.xlu1 %v14277_v4, %s17024_s21  ;;  %14273 = vrot.lane.b32.xlu0 %v14187_v42, %s17023_s18 }
 0x6a8   : > { %14288 = vrot.lane.b32.xlu1 %v16146_v9, %s17024_s21  ;;  %14283 = vrot.lane.b32.xlu0 %v14282_v3, %s17024_s21 }
 0x6ac   : > { %14293 = vrot.lane.b32.xlu1 %v14292_v21, %s17024_s21  ;;  %14298 = vrot.lane.b32.xlu0 %v14297_v18, %s17024_s21 }
 0x6b0   : > { %14308 = vrot.lane.b32.xlu1 %v14277_v4, %s17025_s22  ;;  %14303 = vrot.lane.b32.xlu0 %v16172_v46, %s17024_s21 }
 0x6b4   : > { %14318 = vrot.lane.b32.xlu1 %v16146_v9, %s17025_s22  ;;  %14313 = vrot.lane.b32.xlu0 %v14282_v3, %s17025_s22 }
 0x6b8   : > { %14323 = vrot.lane.b32.xlu1 %v14292_v21, %s17025_s22  ;;  %14328 = vrot.lane.b32.xlu0 %v14297_v18, %s17025_s22 }
 0x6bc   : > { %14338 = vrot.lane.b32.xlu1 %v14277_v4, %s17004_s25  ;;  %14333 = vrot.lane.b32.xlu0 %v16172_v46, %s17025_s22 }
 0x6c0   : > { %14348 = vrot.lane.b32.xlu1 %v16146_v9, %s17004_s25  ;;  %14343 = vrot.lane.b32.xlu0 %v14282_v3, %s17004_s25 }
 0x6c4   : > { %14353 = vrot.lane.b32.xlu1 %v14292_v21, %s17004_s25  ;;  %14358 = vrot.lane.b32.xlu0 %v14297_v18, %s17004_s25 }
 0x6c8   : > { %14368 = vrot.lane.b32.xlu1 %v14277_v4, %s17005_s26  ;;  %14363 = vrot.lane.b32.xlu0 %v16172_v46, %s17004_s25 }
 0x6cc   : > { %14378 = vrot.lane.b32.xlu1 %v16146_v9, %s17005_s26  ;;  %14373 = vrot.lane.b32.xlu0 %v14282_v3, %s17005_s26  ;;  %v11506_v9 = vld [vmem:[%s16957_s5 + $0x48] sm:$0xff] }
 0x6d0   : > { %14383 = vrot.lane.b32.xlu1 %v14292_v21, %s17005_s26  ;;  %14388 = vrot.lane.b32.xlu0 %v14297_v18, %s17005_s26 }
 0x6d4   : > { %9171 = vperm.xlu1 %13676, %v11505_v20   ;;  %14393 = vrot.lane.b32.xlu0 %v16172_v46, %s17005_s26 }
 0x6d6   : > { %v14159_v27 = vpop.permute.xlu1 %14158 }
 0x6d7   : > { %v14161_v32 = vunpack.i.h.bf16 %v14159_v27  ;;  %v14160_v30 = vunpack.i.l.bf16 %v14159_v27 }
 0x6d8   : > { %9181 = vperm.xlu1 %13676, %v11507_v23   ;;  %9176 = vperm.xlu0 %13675, %v11506_v9  }
 0x6d9   : > { %v7064_v50 = vsel %vm17068_vm7, %v14160_v30, %v14161_v32 }
 0x6da   : > { %v14164_v35 = vpop.permute.xlu0 %14163 }
 0x6db   : > { %v14166_v38 = vunpack.i.h.bf16 %v14164_v35  ;;  %v14165_v41 = vunpack.i.l.bf16 %v14164_v35 }
 0x6dc   : > { %9186 = vperm.xlu0 %13675, %v11508_v29   ;;  %v7039_v29 = vld [vmem:[#allocation3 + $0x278] sm:$0xff] }
 0x6dd   : > { %v7066_v51 = vsel %vm17069_vm10, %v14165_v41, %v14166_v38  ;;  %v12899_v46 = vpack.c.bf16 %v14165_v41, %v14160_v30  ;;  %vm17074_vm10 = vmmov %vm17068_vm7 }
 0x6de   : > { %v14169_v31 = vpop.permute.xlu1 %14168  ;;  %v12897_v44 = vpack.c.bf16 %v7066_v51, %v7064_v50 }
 0x6df   : > { %v14171_v55 = vunpack.i.h.bf16 %v14169_v31  ;;  %v14170_v59 = vunpack.i.l.bf16 %v14169_v31 }
 0x6e0   : > { %12898 = vmatprep.subr.bf16.mxu1 %v12897_v44 }
 0x6e1   : > { %12901 = vmatpush1.bf16.msk.msra.mxu1 %vm15455_vm0, %v12899_v46  ;;  %v7068_v13 = vsel %vm17070_vm14, %v14170_v59, %v14171_v55  ;;  %vm17075_vm14 = vcmask 154624  }
 0x6e2   : > { %v14174_v49 = vpop.permute.xlu0 %14173 }
 0x6e3   : > { %v14176_v52 = vunpack.i.h.bf16 %v14174_v49  ;;  %v14175_v56 = vunpack.i.l.bf16 %v14174_v49 }
 0x6e5   : > { %v7070_v47 = vsel %vm17071_vm11, %v14175_v56, %v14176_v52  ;;  %v12904_v60 = vpack.c.bf16 %v14175_v56, %v14170_v59  ;;  %vm17076_vm11 = vmmov %vm17075_vm14 }
 0x6e6   : > { %v12902_v53 = vpack.c.bf16 %v7070_v47, %v7068_v13 }
 0x6e8   : > { %12903 = vmatprep.subr.bf16.mxu1 %v12902_v53 }
 0x6e9   : > { %12906 = vmatpush1.bf16.msk.msra.mxu1 %vm15455_vm0, %v12904_v60 }
 0x6ec   : > { %11517 = vmatmul.mubr.msk.f32.vlgmr.msra.gmra.mrb[16].mxu1 %vm2518_vm15, %v7036_v16 }
 0x6ed   : > { %7170 = vmatprep.mubr.f32.mxu1 %v14739_v5 }
 0x6ee   : > { %v14179_v61 = vpop.permute.xlu1 %14178 }
 0x6ef   : > { %v14181_v11 = vunpack.i.h.bf16 %v14179_v61  ;;  %v14180_v25 = vunpack.i.l.bf16 %v14179_v61 }
 0x6f0   : > { %11518 = vmatmul.mubr.msk.f32.gmra.mrb[18].mxu1 %vm2518_vm15, %v7037_v39 }
 0x6f1   : > { %v7065_v63 = vsel %vm17072_vm13, %v14161_v32, %v14180_v25  ;;  %v7067_v17 = vsel %vm17073_vm12, %v14166_v38, %v14181_v11  ;;  %7176 = vmatprep.mubr.f32.mxu1 %v14739_v5  ;;  %vm17077_vm13 = vmmov %vm17076_vm11 }
 0x6f2   : > { %v14184_v42 = vpop.permute.xlu1 %14183  ;;  %v14189_v4 = vpop.permute.xlu0 %14188  ;;  %v12907_v3 = vpack.c.bf16 %v7067_v17, %v7065_v63  ;;  %vm17078_vm12 = vmmov %vm17076_vm11 }
 0x6f3   : > { %v14191_v21 = vunpack.i.h.bf16 %v14189_v4  ;;  %v14190_v18 = vunpack.i.l.bf16 %v14189_v4  ;;  %v14186_v20 = vunpack.i.h.bf16 %v14184_v42  ;;  %v14185_v23 = vunpack.i.l.bf16 %v14184_v42 }
 0x6f4   : > { %12908 = vmatprep.subr.bf16.mxu1 %v12907_v3  ;;  %11519 = vmatmul.mubr.msk.f32.gmra.mrb[20].mxu1 %vm2518_vm15, %v7038_v36 }
 0x6f5   : > { %12910 = vmatpush3.bf16.msra.mxu1 %v12907_v3  ;;  %v7069_v9 = vsel %vm17068_vm7, %v14171_v55, %v14190_v18  ;;  %v7071_v27 = vsel %vm17074_vm10, %v14176_v52, %v14191_v21  ;;  %7182 = vmatprep.mubr.f32.mxu1 %v14739_v5  ;;  %v7011_v31 = vsel %vm17075_vm14, %v14185_v23, %v14186_v20  ;;  %vm17079_vm7 = vmmov %vm17076_vm11 }
 0x6f6   : > { %v14199_v32 = vpop.permute.xlu1 %14198  ;;  %v14194_v30 = vpop.permute.xlu0 %14193  ;;  %v12911_v35 = vpack.c.bf16 %v7071_v27, %v7069_v9  ;;  %vm17080_vm10 = vmmov %vm17079_vm7 }
 0x6f7   : > { %v14196_v38 = vunpack.i.h.bf16 %v14194_v30  ;;  %v14195_v41 = vunpack.i.l.bf16 %v14194_v30  ;;  %v14201_v50 = vunpack.i.h.bf16 %v14199_v32  ;;  %v14200_v51 = vunpack.i.l.bf16 %v14199_v32  ;;  %vm17081_vm14 = vmmov %vm17079_vm7  ;;  %v6972_v32 = vld [vmem:[#allocation3 + $0x248] sm:$0xff] }
 0x6f8   : > { %12912 = vmatprep.subr.bf16.mxu1 %v12911_v35  ;;  %11520 = vmatmul.mubr.msk.f32.gmra.mrb[22].mxu1 %vm2518_vm15, %v7039_v29 }
 0x6f9   : > { %12914 = vmatpush3.bf16.msra.mxu1 %v12911_v35  ;;  %v7013_v44 = vsel %vm17076_vm11, %v14195_v41, %v14196_v38  ;;  %12344 = vmatprep.mubr.msk.f32.mxu1 %vm2518_vm15, %v7036_v16  ;;  %v12917_v46 = vpack.c.bf16 %v14195_v41, %v14185_v23  ;;  %v7015_v53 = vsel %vm17077_vm13, %v14200_v51, %v14201_v50  ;;  %vm17082_vm11 = vmmov %vm17079_vm7  ;;  %vm17083_vm13 = vcmask 138240  }
 0x6fa   : > { %v14209_v55 = vpop.permute.xlu1 %14208  ;;  %v14204_v59 = vpop.permute.xlu0 %14203  ;;  %v12915_v49 = vpack.c.bf16 %v7013_v44, %v7011_v31 }
 0x6fb   : > { %v14211_v52 = vunpack.i.h.bf16 %v14209_v55  ;;  %v14210_v56 = vunpack.i.l.bf16 %v14209_v55  ;;  %v14206_v13 = vunpack.i.h.bf16 %v14204_v59  ;;  %v14205_v47 = vunpack.i.l.bf16 %v14204_v59 }
 0x6fc   : > { %12916 = vmatprep.subr.bf16.mxu1 %v12915_v49  ;;  %12345 = vmatmul.mubr.msk.f32.vlgmr.msra.gmra.mrb[24].mxu1 %vm2518_vm15, %v7037_v39 }
 0x6fd   : > { %12919 = vmatpush1.bf16.msk.msra.mxu1 %vm15481_vm2, %v12917_v46  ;;  %v7017_v60 = vsel %vm17078_vm12, %v14205_v47, %v14206_v13  ;;  %12347 = vmatprep.mubr.msk.f32.mxu1 %vm2518_vm15, %v7038_v36  ;;  %v7012_v16 = vsel %vm17079_vm7, %v14186_v20, %v14210_v56  ;;  %v7014_v25 = vsel %vm17080_vm10, %v14196_v38, %v14211_v52  ;;  %v6971_v36 = vld [vmem:[#allocation3 + $0x240] sm:$0xff]  ;;  %vm17084_vm12 = vmmov %vm17083_vm13  ;;  %v6974_v46 = vld [vmem:[#allocation3 + $0x258] sm:$0xff] }
 0x6fe   : > { %v14219_v61 = vpop.permute.xlu0 %14218  ;;  %v12920_v11 = vpack.c.bf16 %v7017_v60, %v7015_v53  ;;  %v12922_v63 = vpack.c.bf16 %v14205_v47, %v14200_v51  ;;  %v14214_v4 = vpop.permute.xlu1 %14213  ;;  %v12925_v39 = vpack.c.bf16 %v7014_v25, %v7012_v16  ;;  %vm17085_vm7 = vmmov %vm17084_vm12 }
 0x6ff   : > { %v14221_v17 = vunpack.i.h.bf16 %v14219_v61  ;;  %v14220_v42 = vunpack.i.l.bf16 %v14219_v61  ;;  %v14216_v20 = vunpack.i.h.bf16 %v14214_v4  ;;  %v14215_v23 = vunpack.i.l.bf16 %v14214_v4  ;;  %vm17086_vm10 = vmmov %vm17085_vm7 }
 0x700   : > { %12921 = vmatprep.subr.bf16.mxu1 %v12920_v11  ;;  %12348 = vmatmul.mubr.msk.f32.gmra.mrb[26].mxu1 %vm2518_vm15, %v7039_v29 }
 0x701   : > { %12924 = vmatpush1.bf16.msk.msra.mxu1 %vm15481_vm2, %v12922_v63  ;;  %7350 = vmatprep.mubr.f32.mxu1 %v14739_v5  ;;  %v7016_v3 = vsel %vm17081_vm14, %v14201_v50, %v14220_v42  ;;  %v7018_v21 = vsel %vm17082_vm11, %v14206_v13, %v14221_v17  ;;  %v7489_v35 = vsel %vm17084_vm12, %v14215_v23, %v14216_v20  ;;  %v6973_v50 = vld [vmem:[#allocation3 + $0x250] sm:$0xff]  ;;  %vm17087_vm14 = vmmov %vm17085_vm7 }
 0x702   : > { %v14224_v18 = vpop.permute.xlu0 %14223  ;;  %12926 = vmatprep.subr.bf16.mxu1 %v12925_v39  ;;  %v12929_v29 = vpack.c.bf16 %v7018_v21, %v7016_v3  ;;  %v14229_v38 = vpop.permute.xlu1 %14228  ;;  %vm17088_vm11 = vmmov %vm17085_vm7  ;;  %v7461_v21 = vld [vmem:[#allocation3 + $0x280] sm:$0xff] }
 0x703   : > { %v14226_v9 = vunpack.i.h.bf16 %v14224_v18  ;;  %v14225_v27 = vunpack.i.l.bf16 %v14224_v18  ;;  %v14231_v59 = vunpack.i.h.bf16 %v14229_v38  ;;  %v14230_v49 = vunpack.i.l.bf16 %v14229_v38  ;;  %vm17090_vm12 = vmmov %vm17085_vm7 }
 0x704   : > { %11533 = vmatmul.mubr.msk.f32.vlgmr.msra.gmra.mrb[16].mxu1 %vm2518_vm15, %v6971_v36 }
 0x705   : > { %12928 = vmatpush3.bf16.msra.mxu1 %v12925_v39  ;;  %7356 = vmatprep.mubr.f32.mxu1 %v14739_v5  ;;  %v7491_v30 = vsel %vm17083_vm13, %v14225_v27, %v14226_v9  ;;  %v12935_v53 = vpack.c.bf16 %v14225_v27, %v14215_v23  ;;  %v7493_v60 = vsel %vm17086_vm10, %v14230_v49, %v14231_v59  ;;  %vm17089_vm13 = vmmov %vm17085_vm7 }
 0x706   : > { %12930 = vmatprep.subr.bf16.mxu1 %v12929_v29  ;;  %v12933_v41 = vpack.c.bf16 %v7491_v30, %v7489_v35  ;;  %v14234_v51 = vpop.permute.xlu0 %14233  ;;  %v14239_v55 = vpop.permute.xlu1 %14238 }
 0x707   : > { %v14236_v31 = vunpack.i.h.bf16 %v14234_v51  ;;  %v14235_v44 = vunpack.i.l.bf16 %v14234_v51  ;;  %v14241_v56 = vunpack.i.h.bf16 %v14239_v55  ;;  %v14240_v13 = vunpack.i.l.bf16 %v14239_v55 }
 0x708   : > { %11534 = vmatmul.mubr.msk.f32.gmra.mrb[18].mxu1 %vm2518_vm15, %v6972_v32 }
 0x709   : > { %12932 = vmatpush3.bf16.msra.mxu1 %v12929_v29  ;;  %7362 = vmatprep.mubr.f32.mxu1 %v14739_v5  ;;  %v7495_v47 = vsel %vm17085_vm7, %v14235_v44, %v14236_v31  ;;  %v7490_v25 = vsel %vm17087_vm14, %v14216_v20, %v14240_v13  ;;  %v7492_v63 = vsel %vm17088_vm11, %v14226_v9, %v14241_v56  ;;  %v7462_v29 = vld [vmem:[#allocation3 + $0x288] sm:$0xff]  ;;  %vm17091_vm7 = vcmask 1039360  }
 0x70a   : > { %12934 = vmatprep.subr.bf16.mxu1 %v12933_v41  ;;  %v14249_v52 = vpop.permute.xlu0 %14248  ;;  %v12938_v16 = vpack.c.bf16 %v7495_v47, %v7493_v60  ;;  %v12940_v42 = vpack.c.bf16 %v14235_v44, %v14230_v49  ;;  %v14244_v4 = vpop.permute.xlu1 %14243  ;;  %v12943_v39 = vpack.c.bf16 %v7492_v63, %v7490_v25  ;;  %v7463_v41 = vld [vmem:[#allocation3 + $0x290] sm:$0xff]  ;;  %v7464_v44 = vld [vmem:[#allocation3 + $0x298] sm:$0xff]  ;;  %vm17092_vm10 = vmmov %vm17091_vm7 }
 0x70b   : > { %v14251_v61 = vunpack.i.h.bf16 %v14249_v52  ;;  %v14250_v11 = vunpack.i.l.bf16 %v14249_v52  ;;  %v14246_v23 = vunpack.i.h.bf16 %v14244_v4  ;;  %v14245_v9 = vunpack.i.l.bf16 %v14244_v4  ;;  %vm17093_vm14 = vmmov %vm17091_vm7 }
 0x70c   : > { %11535 = vmatmul.mubr.msk.f32.gmra.mrb[20].mxu1 %vm2518_vm15, %v6973_v50  ;;  %vm17094_vm11 = vmmov %vm17091_vm7 }
 0x70d   : > { %7368 = vmatprep.mubr.f32.mxu1 %v14739_v5  ;;  %v7494_v18 = vsel %vm17089_vm13, %v14231_v59, %v14250_v11  ;;  %v7496_v20 = vsel %vm17090_vm12, %v14236_v31, %v14251_v61  ;;  %v7740_v30 = vsel %vm993_vm5, %v14245_v9, %v14246_v23  ;;  %vm17095_vm13 = vmmov %vm17091_vm7 }
 0x70e   : > { %v14254_v17 = vpop.permute.xlu0 %14253  ;;  %v12947_v27 = vpack.c.bf16 %v7496_v20, %v7494_v18  ;;  %v14259_v35 = vpop.permute.xlu1 %14258  ;;  %v7715_v18 = vld [vmem:[#allocation3 + $0x2b8] sm:$0xff]  ;;  %vm17096_vm12 = vmmov %vm17091_vm7 }
 0x70f   : > { %v14255_v3 = vunpack.i.l.bf16 %v14254_v17  ;;  %v14261_v55 = vunpack.i.h.bf16 %v14259_v35  ;;  %v14260_v59 = vunpack.i.l.bf16 %v14259_v35 }
 0x710   : > { %11536 = vmatmul.mubr.msk.f32.gmra.mrb[22].mxu1 %vm2518_vm15, %v6974_v46 }
 0x711   : > { %12358 = vmatprep.mubr.msk.f32.mxu1 %vm2518_vm15, %v6971_v36  ;;  %v14256_v36 = vunpack.i.h.bf16 %v14254_v17  ;;  %v12953_v47 = vpack.c.bf16 %v14255_v3, %v14245_v9 }
 0x714   : > { %12359 = vmatmul.mubr.msk.f32.vlgmr.msra.gmra.mrb[24].mxu1 %vm2518_vm15, %v6972_v32  ;;  %v7742_v32 = vsel %vm993_vm5, %v14255_v3, %v14256_v36 }
 0x715   : > { %12937 = vmatpush1.bf16.msk.msra.mxu1 %vm15510_vm1, %v12935_v53  ;;  %12361 = vmatprep.mubr.msk.f32.mxu1 %vm2518_vm15, %v6973_v50  ;;  %v12951_v38 = vpack.c.bf16 %v7742_v32, %v7740_v30  ;;  %v14264_v50 = vpop.permute.xlu0 %14263  ;;  %v7744_v53 = vsel %vm993_vm5, %v14260_v59, %v14261_v55 }
 0x716   : > { %12939 = vmatprep.subr.bf16.mxu1 %v12938_v16  ;;  %v14266_v51 = vunpack.i.h.bf16 %v14264_v50  ;;  %v14265_v31 = vunpack.i.l.bf16 %v14264_v50 }
 0x718   : > { %12362 = vmatmul.mubr.msk.f32.gmra.mrb[26].mxu1 %vm2518_vm15, %v6974_v46  ;;  %v14269_v46 = vpop.permute.xlu1 %14268  ;;  %v7746_v56 = vsel %vm993_vm5, %v14265_v31, %v14266_v51  ;;  %v12958_v63 = vpack.c.bf16 %v14265_v31, %v14260_v59 }
 0x719   : > { %12942 = vmatpush1.bf16.msk.msra.mxu1 %vm15510_vm1, %v12940_v42  ;;  %7589 = vmatprep.mubr.f32.mxu1 %v14739_v5  ;;  %v14271_v49 = vunpack.i.h.bf16 %v14269_v46  ;;  %v14270_v52 = vunpack.i.l.bf16 %v14269_v46  ;;  %v14274_v13 = vpop.permute.xlu0 %14273  ;;  %v12956_v60 = vpack.c.bf16 %v7746_v56, %v7744_v53  ;;  %v7712_v42 = vld [vmem:[#allocation3 + $0x2a0] sm:$0xff] }
 0x71a   : > { %12944 = vmatprep.subr.bf16.mxu1 %v12943_v39  ;;  %v14276_v16 = vunpack.i.h.bf16 %v14274_v13  ;;  %v14275_v61 = vunpack.i.l.bf16 %v14274_v13 }
 0x71b   : > { %v7741_v11 = vsel %vm993_vm5, %v14246_v23, %v14270_v52  ;;  %v7743_v25 = vsel %vm993_vm5, %v14256_v36, %v14271_v49  ;;  %v7713_v36 = vld [vmem:[#allocation3 + $0x2a8] sm:$0xff] }
 0x71c   : > { %11549 = vmatmul.mubr.msk.f32.vlgmr.msra.gmra.mrb[16].mxu1 %vm2518_vm15, %v7461_v21  ;;  %v12961_v17 = vpack.c.bf16 %v7743_v25, %v7741_v11  ;;  %v7745_v4 = vsel %vm993_vm5, %v14261_v55, %v14275_v61  ;;  %v14279_v20 = vpop.permute.xlu1 %14278  ;;  %v8166_v61 = vld [vmem:[#allocation3 + $0x2e0] sm:$0xff] }
 0x71d   : > { %12946 = vmatpush3.bf16.msra.mxu1 %v12943_v39  ;;  %7595 = vmatprep.mubr.f32.mxu1 %v14739_v5  ;;  %v7747_v39 = vsel %vm993_vm5, %v14266_v51, %v14276_v16  ;;  %v14284_v57 = vpop.permute.xlu0 %14283  ;;  %v14281_v28 = vunpack.i.h.bf16 %v14279_v20 }
 0x71e   : > { %12948 = vmatprep.subr.bf16.mxu1 %v12947_v27  ;;  %v12965_v3 = vpack.c.bf16 %v7747_v39, %v7745_v4  ;;  %v14286_v62 = vunpack.i.h.bf16 %v14284_v57 }
 0x720   : > { %11550 = vmatmul.mubr.msk.f32.gmra.mrb[18].mxu1 %vm2518_vm15, %v7462_v29  ;;  %v14289_v23 = vpop.permute.xlu1 %14288  ;;  %v12993_v53 = vpack.c.bf16 %v14286_v62, %v14281_v28 }
 0x721   : > { %12950 = vmatpush3.bf16.msra.mxu1 %v12947_v27  ;;  %7601 = vmatprep.mubr.f32.mxu1 %v14739_v5  ;;  %v14299_v26 = vpop.permute.xlu0 %14298  ;;  %v14290_v27 = vunpack.i.l.bf16 %v14289_v23 }
 0x722   : > { %12952 = vmatprep.subr.bf16.mxu1 %v12951_v38  ;;  %v14301_v30 = vunpack.i.h.bf16 %v14299_v26  ;;  %v14300_v35 = vunpack.i.l.bf16 %v14299_v26 }
 0x724   : > { %11551 = vmatmul.mubr.msk.f32.gmra.mrb[20].mxu1 %vm2518_vm15, %v7463_v41  ;;  %v14294_v9 = vpop.permute.xlu1 %14293 }
 0x725   : > { %7607 = vmatprep.mubr.f32.mxu1 %v14739_v5  ;;  %v14295_v32 = vunpack.i.l.bf16 %v14294_v9  ;;  %v14304_v38 = vpop.permute.xlu0 %14303 }
 0x726   : > { %v14306_v51 = vunpack.i.h.bf16 %v14304_v38  ;;  %v14305_v31 = vunpack.i.l.bf16 %v14304_v38 }
 0x728   : > { %11552 = vmatmul.mubr.msk.f32.gmra.mrb[22].mxu1 %vm2518_vm15, %v7464_v44  ;;  %v8200_v59 = vsel %vm17091_vm7, %v14306_v51, %v14295_v32  ;;  %v14309_v56 = vpop.permute.xlu1 %14308 }
 0x729   : > { %12372 = vmatprep.mubr.msk.f32.mxu1 %vm2518_vm15, %v7461_v21  ;;  %v7714_v21 = vld [vmem:[#allocation3 + $0x2b0] sm:$0xff]  ;;  %v14314_v13 = vpop.permute.xlu0 %14313  ;;  %v14311_v11 = vunpack.i.h.bf16 %v14309_v56  ;;  %v14310_v25 = vunpack.i.l.bf16 %v14309_v56 }
 0x72a   : > { %v14315_v16 = vunpack.i.l.bf16 %v14314_v13 }
 0x72c   : > { %12373 = vmatmul.mubr.msk.f32.vlgmr.msra.gmra.mrb[24].mxu1 %vm2518_vm15, %v7462_v29  ;;  %v14296_v29 = vunpack.i.h.bf16 %v14294_v9 }
 0x72d   : > { %12955 = vmatpush1.bf16.msk.msra.mxu1 %vm15539_vm4, %v12953_v47  ;;  %12375 = vmatprep.mubr.msk.f32.mxu1 %vm2518_vm15, %v7463_v41  ;;  %v7966_v41 = vld [vmem:[#allocation3 + $0x2d8] sm:$0xff]  ;;  %v14329_v39 = vpop.permute.xlu0 %14328 }
 0x72e   : > { %12957 = vmatprep.subr.bf16.mxu1 %v12956_v60  ;;  %v8201_v46 = vsel %vm17096_vm12, %v14295_v32, %v14296_v29  ;;  %v14316_v60 = vunpack.i.h.bf16 %v14314_v13  ;;  %v8419_v13 = vld [vmem:[#allocation3 + $0x310] sm:$0xff] }
 0x730   : > { %12376 = vmatmul.mubr.msk.f32.gmra.mrb[26].mxu1 %vm2518_vm15, %v7464_v44  ;;  %v8199_v44 = vsel %vm17095_vm13, %v14300_v35, %v14301_v30  ;;  %v13013_v38 = vpack.c.bf16 %v14316_v60, %v14311_v11 }
 0x731   : > { %12960 = vmatpush1.bf16.msk.msra.mxu1 %vm15539_vm4, %v12958_v63  ;;  %7840 = vmatprep.mubr.f32.mxu1 %v14739_v5  ;;  %v12989_v52 = vpack.c.bf16 %v8201_v46, %v8199_v44  ;;  %v12999_v63 = vpack.c.bf16 %v14296_v29, %v14301_v30 }
 0x732   : > { %12962 = vmatprep.subr.bf16.mxu1 %v12961_v17 }
 0x734   : > { %11565 = vmatmul.mubr.msk.f32.vlgmr.msra.gmra.mrb[16].mxu1 %vm2518_vm15, %v7712_v42 }
 0x735   : > { %12964 = vmatpush3.bf16.msra.mxu1 %v12961_v17  ;;  %7846 = vmatprep.mubr.f32.mxu1 %v14739_v5  ;;  %v14319_v17 = vpop.permute.xlu1 %14318 }
 0x736   : > { %12966 = vmatprep.subr.bf16.mxu1 %v12965_v3 }
 0x738   : > { %11566 = vmatmul.mubr.msk.f32.gmra.mrb[18].mxu1 %vm2518_vm15, %v7713_v36 }
 0x739   : > { %12968 = vmatpush3.bf16.msra.mxu1 %v12965_v3  ;;  %7852 = vmatprep.mubr.f32.mxu1 %v14739_v5 }
 0x73a   : > { %12970 = vmatprep.subr.bf16.mxu1 %v12969_v22  ;;  %v14285_v22 = vunpack.i.l.bf16 %v14284_v57  ;;  %v14320_v57 = vunpack.i.l.bf16 %v14319_v17 }
 0x73c   : > { %11567 = vmatmul.mubr.msk.f32.gmra.mrb[20].mxu1 %vm2518_vm15, %v7714_v21  ;;  %v8197_v40 = vsel %vm17091_vm7, %v14285_v22, %v14286_v62 }
 0x73d   : > { %7858 = vmatprep.mubr.f32.mxu1 %v14739_v5 }
 0x740   : > { %11568 = vmatmul.mubr.msk.f32.gmra.mrb[22].mxu1 %vm2518_vm15, %v7715_v18 }
 0x741   : > { %12386 = vmatprep.mubr.msk.f32.mxu1 %vm2518_vm15, %v7712_v42  ;;  %v8167_v42 = vld [vmem:[#allocation3 + $0x2e8] sm:$0xff] }
 0x744   : > { %12387 = vmatmul.mubr.msk.f32.vlgmr.msra.gmra.mrb[24].mxu1 %vm2518_vm15, %v7713_v36 }
 0x745   : > { %12972 = vmatpush1.bf16.msra.mxu1 %v12971_v15  ;;  %12389 = vmatprep.mubr.msk.f32.mxu1 %vm2518_vm15, %v7714_v21  ;;  %v14280_v15 = vunpack.i.l.bf16 %v14279_v20  ;;  %v8168_v21 = vld [vmem:[#allocation3 + $0x2f0] sm:$0xff]  ;;  %v14321_v20 = vunpack.i.h.bf16 %v14319_v17  ;;  %v8420_v17 = vld [vmem:[#allocation3 + $0x318] sm:$0xff] }
 0x746   : > { %12974 = vmatprep.subr.bf16.mxu1 %v12973_v58  ;;  %v7965_v58 = vld [vmem:[#allocation3 + $0x2d0] sm:$0xff] }
 0x747   : > { %v8195_v43 = vsel %vm17092_vm10, %v14280_v15, %v14281_v28  ;;  %v8194_v50 = vsel %vm17093_vm14, %v14290_v27, %v14280_v15  ;;  %vm17097_vm10 = vmmov %vm17091_vm7  ;;  %vm17098_vm14 = vcmask 908288   ;;  %v14330_v28 = vunpack.i.l.bf16 %v14329_v39  ;;  %v14334_v15 = vpop.permute.xlu0 %14333 }
 0x748   : > { %12390 = vmatmul.mubr.msk.f32.gmra.mrb[26].mxu1 %vm2518_vm15, %v7715_v18  ;;  %v8198_v49 = vsel %vm17097_vm10, %v14305_v31, %v14300_v35  ;;  %v8448_v4 = vsel %vm17098_vm14, %v14315_v16, %v14316_v60  ;;  %v14324_v18 = vpop.permute.xlu1 %14323  ;;  %v14336_v26 = vunpack.i.h.bf16 %v14334_v15 }
 0x749   : > { %12976 = vmatpush1.bf16.msra.mxu1 %v12975_v48  ;;  %8043 = vmatprep.mubr.f32.mxu1 %v14739_v5  ;;  %v12985_v48 = vpack.c.bf16 %v8197_v40, %v8195_v43  ;;  %v12991_v47 = vpack.c.bf16 %v8200_v59, %v8198_v49  ;;  %v14326_v62 = vunpack.i.h.bf16 %v14324_v18  ;;  %v14335_v43 = vunpack.i.l.bf16 %v14334_v15 }
 0x74a   : > { %12978 = vmatprep.subr.bf16.mxu1 %v16189_v54 }
 0x74b   : > { %v14344_v30 = vpop.permute.xlu0 %14343 }
 0x74c   : > { %11573 = vmatmul.mubr.msk.f32.vlgmr.msra.gmra.mrb[16].mxu1 %vm2518_vm15, %v7963_v33  ;;  %v14339_v32 = vpop.permute.xlu1 %14338 }
 0x74d   : > { %12980 = vmatpush3.bf16.msra.mxu1 %v16189_v54  ;;  %8049 = vmatprep.mubr.f32.mxu1 %v14739_v5  ;;  %v14291_v54 = vunpack.i.h.bf16 %v14289_v23  ;;  %v8169_v23 = vld [vmem:[#allocation3 + $0x2f8] sm:$0xff]  ;;  %v14341_v51 = vunpack.i.h.bf16 %v14339_v32  ;;  %v14340_v31 = vunpack.i.l.bf16 %v14339_v32 }
 0x74e   : > { %12982 = vmatprep.subr.bf16.mxu1 %v16192_v0 }
 0x74f   : > { %v14359_v49 = vpop.permute.xlu0 %14358 }
 0x750   : > { %11574 = vmatmul.mubr.msk.f32.gmra.mrb[18].mxu1 %vm2518_vm15, %v7964_v34  ;;  %v14349_v46 = vpop.permute.xlu1 %14348 }
 0x751   : > { %12984 = vmatpush3.bf16.msra.mxu1 %v16192_v0  ;;  %8055 = vmatprep.mubr.f32.mxu1 %v14739_v5  ;;  %v8196_v0 = vsel %vm17094_vm11, %v14291_v54, %v14285_v22  ;;  %vm17099_vm11 = vmmov %vm17098_vm14  ;;  %v14325_v22 = vunpack.i.l.bf16 %v14324_v18  ;;  %v14350_v60 = vunpack.i.l.bf16 %v14349_v46 }
 0x752   : > { %12986 = vmatprep.subr.bf16.mxu1 %v12985_v48  ;;  %v12987_v55 = vpack.c.bf16 %v8196_v0, %v8194_v50  ;;  %v8446_v3 = vsel %vm17099_vm11, %v14310_v25, %v14311_v11  ;;  %vm17100_vm13 = vmmov %vm17099_vm11  ;;  %v14345_v50 = vunpack.i.l.bf16 %v14344_v30  ;;  %v8417_v0 = vld [vmem:[#allocation3 + $0x300] sm:$0xff]  ;;  %v14361_v11 = vunpack.i.h.bf16 %v14359_v49 }
 0x753   : > { %v13005_v36 = vpack.c.bf16 %v8448_v4, %v8446_v3  ;;  %vm17101_vm12 = vmmov %vm17099_vm11 }
 0x754   : > { %11575 = vmatmul.mubr.msk.f32.gmra.mrb[20].mxu1 %vm2518_vm15, %v7965_v58  ;;  %v8447_v40 = vsel %vm17101_vm12, %v14321_v20, %v14315_v16  ;;  %vm17102_vm7 = vmmov %vm17099_vm11 }
 0x755   : > { %8061 = vmatprep.mubr.f32.mxu1 %v14739_v5  ;;  %vm17103_vm10 = vmmov %vm17102_vm7 }
 0x756   : > { %vm17104_vm14 = vmmov %vm17102_vm7 }
 0x757   : > { %v8451_v54 = vsel %vm17104_vm14, %v14336_v26, %v14325_v22  ;;  %vm17105_vm11 = vmmov %vm17102_vm7 }
 0x758   : > { %11576 = vmatmul.mubr.msk.f32.gmra.mrb[22].mxu1 %vm2518_vm15, %v7966_v41  ;;  %v8449_v27 = vsel %vm17105_vm11, %v14335_v43, %v14330_v28 }
 0x759   : > { %12400 = vmatprep.mubr.msk.f32.mxu1 %vm2518_vm15, %v7963_v33  ;;  %v14331_v33 = vunpack.i.h.bf16 %v14329_v39  ;;  %v13011_v35 = vpack.c.bf16 %v8451_v54, %v8449_v27 }
 0x75b   : > { %v8450_v48 = vsel %vm17102_vm7, %v14330_v28, %v14331_v33  ;;  %v13019_v44 = vpack.c.bf16 %v14326_v62, %v14331_v33 }
 0x75c   : > { %12401 = vmatmul.mubr.msk.f32.vlgmr.msra.gmra.mrb[24].mxu1 %vm2518_vm15, %v7964_v34  ;;  %v8445_v34 = vsel %vm17100_vm13, %v14320_v57, %v14310_v25  ;;  %vm17106_vm13 = vcmask 900096   ;;  %v14360_v25 = vunpack.i.l.bf16 %v14359_v49 }
 0x75d   : > { %12988 = vmatpush1.bf16.msra.mxu1 %v12987_v55  ;;  %12403 = vmatprep.mubr.msk.f32.mxu1 %vm2518_vm15, %v7965_v58  ;;  %v8452_v58 = vsel %vm17103_vm10, %v14325_v22, %v14326_v62  ;;  %v13007_v9 = vpack.c.bf16 %v8447_v40, %v8445_v34  ;;  %v8418_v55 = vld [vmem:[#allocation3 + $0x308] sm:$0xff]  ;;  %vm17107_vm12 = vmmov %vm17106_vm13  ;;  %v8668_v40 = vld [vmem:[#allocation3 + $0x320] sm:$0xff] }
 0x75e   : > { %12990 = vmatprep.subr.bf16.mxu1 %v12989_v52  ;;  %v13009_v29 = vpack.c.bf16 %v8452_v58, %v8450_v48  ;;  %v8697_v52 = vsel %vm17107_vm12, %v14340_v31, %v14341_v51  ;;  %vm17108_vm7 = vmmov %vm17107_vm12 }
 0x75f   : > { %vm17109_vm10 = vmmov %vm17108_vm7 }
 0x760   : > { %12404 = vmatmul.mubr.msk.f32.gmra.mrb[26].mxu1 %vm2518_vm15, %v7966_v41  ;;  %v14346_v41 = vunpack.i.h.bf16 %v14344_v30  ;;  %vm17110_vm14 = vmmov %vm17108_vm7  ;;  %v8670_v30 = vld [vmem:[#allocation3 + $0x330] sm:$0xff] }
 0x761   : > { %12992 = vmatpush1.bf16.msra.mxu1 %v12991_v47  ;;  %8294 = vmatprep.mubr.f32.mxu1 %v14739_v5  ;;  %v14354_v47 = vpop.permute.xlu1 %14353  ;;  %vm17111_vm11 = vmmov %vm17108_vm7 }
 0x762   : > { %12995 = vmatprep.subr.msk.bf16.mxu1 %vm15606_vm3, %v12993_v53  ;;  %v8699_v59 = vsel %vm17106_vm13, %v14345_v50, %v14346_v41  ;;  %v14356_v16 = vunpack.i.h.bf16 %v14354_v47  ;;  %vm17112_vm13 = vmmov %vm17108_vm7  ;;  %v13033_v15 = vpack.c.bf16 %v14346_v41, %v14341_v51 }
 0x763   : > { %v13025_v56 = vpack.c.bf16 %v8699_v59, %v8697_v52  ;;  %vm17113_vm12 = vmmov %vm17108_vm7 }
 0x764   : > { %11581 = vmatmul.mubr.msk.f32.vlgmr.msra.gmra.mrb[16].mxu1 %vm2518_vm15, %v8166_v61  ;;  %v13039_v48 = vpack.c.bf16 %v14356_v16, %v14361_v11 }
 0x765   : > { %12998 = vmatpush3.bf16.msk.msra.mxu1 %vm15606_vm3, %v12993_v53  ;;  %8300 = vmatprep.mubr.f32.mxu1 %v14739_v5  ;;  %v14351_v53 = vunpack.i.h.bf16 %v14349_v46  ;;  %v14369_v22 = vpop.permute.xlu1 %14368  ;;  %v8671_v46 = vld [vmem:[#allocation3 + $0x338] sm:$0xff] }
 0x766   : > { %13001 = vmatprep.subr.msk.bf16.mxu1 %vm15606_vm3, %v12999_v63  ;;  %v14371_v26 = vunpack.i.h.bf16 %v14369_v22  ;;  %v14370_v43 = vunpack.i.l.bf16 %v14369_v22 }
 0x767   : > { %v8698_v4 = vsel %vm17109_vm10, %v14351_v53, %v14345_v50 }
 0x768   : > { %11582 = vmatmul.mubr.msk.f32.gmra.mrb[18].mxu1 %vm2518_vm15, %v8167_v42 }
 0x769   : > { %13004 = vmatpush3.bf16.msk.msra.mxu1 %vm15606_vm3, %v12999_v63  ;;  %8306 = vmatprep.mubr.f32.mxu1 %v14739_v5  ;;  %v14364_v63 = vpop.permute.xlu0 %14363  ;;  %v14379_v58 = vpop.permute.xlu1 %14378 }
 0x76a   : > { %13006 = vmatprep.subr.bf16.mxu1 %v13005_v36  ;;  %v14366_v39 = vunpack.i.h.bf16 %v14364_v63  ;;  %v14365_v3 = vunpack.i.l.bf16 %v14364_v63  ;;  %v8701_v36 = vsel %vm17110_vm14, %v14360_v25, %v14361_v11  ;;  %v14380_v41 = vunpack.i.l.bf16 %v14379_v58 }
 0x76c   : > { %11583 = vmatmul.mubr.msk.f32.gmra.mrb[20].mxu1 %vm2518_vm15, %v8168_v21  ;;  %v8700_v57 = vsel %vm17113_vm12, %v14365_v3, %v14360_v25  ;;  %v8919_v25 = vld [vmem:[#allocation3 + $0x340] sm:$0xff] }
 0x76d   : > { %8312 = vmatprep.mubr.f32.mxu1 %v14739_v5  ;;  %v14374_v33 = vpop.permute.xlu0 %14373 }
 0x76e   : > { %v14375_v34 = vunpack.i.l.bf16 %v14374_v33 }
 0x770   : > { %11584 = vmatmul.mubr.msk.f32.gmra.mrb[22].mxu1 %vm2518_vm15, %v8169_v23 }
 0x771   : > { %12414 = vmatprep.mubr.msk.f32.mxu1 %vm2518_vm15, %v8166_v61  ;;  %v14355_v61 = vunpack.i.l.bf16 %v14354_v47  ;;  %v14389_v27 = vpop.permute.xlu0 %14388 }
 0x772   : > { %v14391_v51 = vunpack.i.h.bf16 %v14389_v27 }
 0x773   : > { %v8702_v20 = vsel %vm17112_vm13, %v14366_v39, %v14355_v61 }
 0x774   : > { %12415 = vmatmul.mubr.msk.f32.vlgmr.msra.gmra.mrb[24].mxu1 %vm2518_vm15, %v8167_v42  ;;  %v8696_v42 = vsel %vm17108_vm7, %v14350_v60, %v14340_v31  ;;  %v13031_v28 = vpack.c.bf16 %v8702_v20, %v8700_v57  ;;  %vm17114_vm7 = vcmask 891904   ;;  %v14390_v31 = vunpack.i.l.bf16 %v14389_v27 }
 0x775   : > { %13008 = vmatpush1.bf16.msra.mxu1 %v13007_v9  ;;  %12417 = vmatprep.mubr.msk.f32.mxu1 %vm2518_vm15, %v8168_v21  ;;  %v8703_v21 = vsel %vm17111_vm11, %v14355_v61, %v14356_v16  ;;  %v13027_v18 = vpack.c.bf16 %v8698_v4, %v8696_v42  ;;  %v8669_v9 = vld [vmem:[#allocation3 + $0x328] sm:$0xff]  ;;  %vm17115_vm10 = vmmov %vm17114_vm7  ;;  %v8921_v42 = vld [vmem:[#allocation3 + $0x350] sm:$0xff] }
 0x776   : > { %13010 = vmatprep.subr.bf16.mxu1 %v13009_v29  ;;  %v13029_v62 = vpack.c.bf16 %v8703_v21, %v8701_v36  ;;  %v8948_v29 = vsel %vm17115_vm10, %v14370_v43, %v14371_v26  ;;  %vm17116_vm14 = vmmov %vm17114_vm7  ;;  %v8922_v4 = vld [vmem:[#allocation3 + $0x358] sm:$0xff] }
 0x777   : > { %vm17117_vm11 = vmmov %vm17114_vm7 }
 0x778   : > { %12418 = vmatmul.mubr.msk.f32.gmra.mrb[26].mxu1 %vm2518_vm15, %v8169_v23  ;;  %v14376_v23 = vunpack.i.h.bf16 %v14374_v33  ;;  %vm17118_vm13 = vmmov %vm17114_vm7 }
 0x779   : > { %13012 = vmatpush1.bf16.msra.mxu1 %v13011_v35  ;;  %8545 = vmatprep.mubr.f32.mxu1 %v14739_v5  ;;  %v14384_v35 = vpop.permute.xlu1 %14383  ;;  %vm17119_vm12 = vmmov %vm17114_vm7 }
 0x77a   : > { %13015 = vmatprep.subr.msk.bf16.mxu1 %vm15644_vm6, %v13013_v38  ;;  %v8950_v54 = vsel %vm17114_vm7, %v14375_v34, %v14376_v23  ;;  %v14386_v50 = vunpack.i.h.bf16 %v14384_v35  ;;  %vm17120_vm10 = vmmov %vm17114_vm7  ;;  %v13053_v11 = vpack.c.bf16 %v14376_v23, %v14371_v26 }
 0x77b   : > { %v13045_v32 = vpack.c.bf16 %v8950_v54, %v8948_v29 }
 0x77c   : > { %11593 = vmatmul.mubr.msk.f32.vlgmr.msra.gmra.mrb[16].mxu1 %vm2518_vm15, %v8417_v0  ;;  %v13059_v63 = vpack.c.bf16 %v14386_v50, %v14391_v51 }
 0x77d   : > { %13018 = vmatpush3.bf16.msk.msra.mxu1 %vm15644_vm6, %v13013_v38  ;;  %8551 = vmatprep.mubr.f32.mxu1 %v14739_v5  ;;  %v14381_v38 = vunpack.i.h.bf16 %v14379_v58  ;;  %v9172_v39 = vpop.permute.xlu1 %9171 }
 0x77e   : > { %13021 = vmatprep.subr.msk.bf16.mxu1 %vm15644_vm6, %v13019_v44 }
 0x77f   : > { %v8949_v59 = vsel %vm17117_vm11, %v14381_v38, %v14375_v34 }
 0x780   : > { %11594 = vmatmul.mubr.msk.f32.gmra.mrb[18].mxu1 %vm2518_vm15, %v8418_v55 }
 0x781   : > { %13024 = vmatpush3.bf16.msk.msra.mxu1 %vm15644_vm6, %v13019_v44  ;;  %8557 = vmatprep.mubr.f32.mxu1 %v14739_v5  ;;  %v14394_v44 = vpop.permute.xlu0 %14393  ;;  %v9182_v26 = vpop.permute.xlu1 %9181 }
 0x782   : > { %13026 = vmatprep.subr.bf16.mxu1 %v13025_v56  ;;  %v14396_v49 = vunpack.i.h.bf16 %v14394_v44  ;;  %v14395_v52 = vunpack.i.l.bf16 %v14394_v44  ;;  %v8952_v56 = vsel %vm17118_vm13, %v14390_v31, %v14391_v51 }
 0x784   : > { %11595 = vmatmul.mubr.msk.f32.gmra.mrb[20].mxu1 %vm2518_vm15, %v8419_v13  ;;  %v8951_v60 = vsel %vm17120_vm10, %v14395_v52, %v14390_v31 }
 0x785   : > { %8563 = vmatprep.mubr.f32.mxu1 %v14739_v5  ;;  %v9177_v57 = vpop.permute.xlu0 %9176 }
 0x788   : > { %11596 = vmatmul.mubr.msk.f32.gmra.mrb[22].mxu1 %vm2518_vm15, %v8420_v17 }
 0x789   : > { %12428 = vmatprep.mubr.msk.f32.mxu1 %vm2518_vm15, %v8417_v0  ;;  %v14385_v0 = vunpack.i.l.bf16 %v14384_v35 }
 0x78b   : > { %v8953_v53 = vsel %vm17114_vm7, %v14396_v49, %v14385_v0  ;;  %vm17125_vm7 = vcmask 146432  }
 0x78c   : > { %12429 = vmatmul.mubr.msk.f32.vlgmr.msra.gmra.mrb[24].mxu1 %vm2518_vm15, %v8418_v55  ;;  %v8947_v55 = vsel %vm17116_vm14, %v14380_v41, %v14370_v43  ;;  %v13051_v61 = vpack.c.bf16 %v8953_v53, %v8951_v60  ;;  %v9187_v41 = vpop.permute.xlu0 %9186  ;;  %vm17121_vm14 = vcmask 556032   ;;  %vm17126_vm10 = vmmov %vm17125_vm7 }
 0x78d   : > { %13028 = vmatpush1.bf16.msra.mxu1 %v13027_v18  ;;  %12431 = vmatprep.mubr.msk.f32.mxu1 %vm2518_vm15, %v8419_v13  ;;  %v8954_v13 = vsel %vm17119_vm12, %v14385_v0, %v14386_v50  ;;  %v13047_v47 = vpack.c.bf16 %v8949_v59, %v8947_v55  ;;  %vm17122_vm11 = vmmov %vm17121_vm14 }
 0x78e   : > { %13030 = vmatprep.subr.bf16.mxu1 %v13029_v62  ;;  %v13049_v16 = vpack.c.bf16 %v8954_v13, %v8952_v56  ;;  %vm17123_vm13 = vmmov %vm17122_vm11 }
 0x78f   : > { %vm17124_vm12 = vmmov %vm17122_vm11 }
 0x790   : > { %12432 = vmatmul.mubr.msk.f32.gmra.mrb[26].mxu1 %vm2518_vm15, %v8420_v17  ;;  %v8920_v17 = vld [vmem:[#allocation3 + $0x348] sm:$0xff] }
 0x791   : > { %13032 = vmatpush1.bf16.msra.mxu1 %v13031_v28  ;;  %8796 = vmatprep.mubr.f32.mxu1 %v14739_v5 }
 0x792   : > { %13035 = vmatprep.subr.msk.bf16.mxu1 %vm15680_vm8, %v13033_v15 }
 0x794   : > { %11605 = vmatmul.mubr.msk.f32.vlgmr.msra.gmra.mrb[16].mxu1 %vm2518_vm15, %v8668_v40 }
 0x795   : > { %13038 = vmatpush3.bf16.msk.msra.mxu1 %vm15680_vm8, %v13033_v15  ;;  %8802 = vmatprep.mubr.f32.mxu1 %v14739_v5 }
 0x796   : > { %13041 = vmatprep.subr.msk.bf16.mxu1 %vm15680_vm8, %v13039_v48 }
 0x798   : > { %11606 = vmatmul.mubr.msk.f32.gmra.mrb[18].mxu1 %vm2518_vm15, %v8669_v9 }
 0x799   : > { %13044 = vmatpush3.bf16.msk.msra.mxu1 %vm15680_vm8, %v13039_v48  ;;  %8808 = vmatprep.mubr.f32.mxu1 %v14739_v5 }
 0x79a   : > { %13046 = vmatprep.subr.bf16.mxu1 %v13045_v32 }
 0x79c   : > { %11607 = vmatmul.mubr.msk.f32.gmra.mrb[20].mxu1 %vm2518_vm15, %v8670_v30 }
 0x79d   : > { %8814 = vmatprep.mubr.f32.mxu1 %v14739_v5 }
 0x7a0   : > { %11608 = vmatmul.mubr.msk.f32.gmra.mrb[22].mxu1 %vm2518_vm15, %v8671_v46 }
 0x7a1   : > { %12442 = vmatprep.mubr.msk.f32.mxu1 %vm2518_vm15, %v8668_v40 }
 0x7a4   : > { %12443 = vmatmul.mubr.msk.f32.vlgmr.msra.gmra.mrb[24].mxu1 %vm2518_vm15, %v8669_v9 }
 0x7a5   : > { %13048 = vmatpush1.bf16.msra.mxu1 %v13047_v47  ;;  %12445 = vmatprep.mubr.msk.f32.mxu1 %vm2518_vm15, %v8670_v30 }
 0x7a6   : > { %13050 = vmatprep.subr.bf16.mxu1 %v13049_v16 }
 0x7a8   : > { %12446 = vmatmul.mubr.msk.f32.gmra.mrb[26].mxu1 %vm2518_vm15, %v8671_v46 }
 0x7a9   : > { %13052 = vmatpush1.bf16.msra.mxu1 %v13051_v61  ;;  %9047 = vmatprep.mubr.f32.mxu1 %v14739_v5 }
 0x7aa   : > { %13055 = vmatprep.subr.msk.bf16.mxu1 %vm15714_vm9, %v13053_v11 }
 0x7ac   : > { %11617 = vmatmul.mubr.msk.f32.vlgmr.msra.gmra.mrb[16].mxu1 %vm2518_vm15, %v8919_v25 }
 0x7ad   : > { %13058 = vmatpush3.bf16.msk.msra.mxu1 %vm15714_vm9, %v13053_v11  ;;  %9053 = vmatprep.mubr.f32.mxu1 %v14739_v5 }
 0x7ae   : > { %13061 = vmatprep.subr.msk.bf16.mxu1 %vm15714_vm9, %v13059_v63 }
 0x7b0   : > { %11618 = vmatmul.mubr.msk.f32.gmra.mrb[18].mxu1 %vm2518_vm15, %v8920_v17 }
 0x7b1   : > { %13064 = vmatpush3.bf16.msk.msra.mxu1 %vm15714_vm9, %v13059_v63  ;;  %9059 = vmatprep.mubr.f32.mxu1 %v14739_v5 }
 0x7b4   : > { %11619 = vmatmul.mubr.msk.f32.gmra.mrb[20].mxu1 %vm2518_vm15, %v8921_v42 }
 0x7b5   : > { %9065 = vmatprep.mubr.f32.mxu1 %v14739_v5 }
 0x7b8   : > { %11620 = vmatmul.mubr.msk.f32.gmra.mrb[22].mxu1 %vm2518_vm15, %v8922_v4 }
 0x7b9   : > { %12456 = vmatprep.mubr.msk.f32.mxu1 %vm2518_vm15, %v8919_v25 }
 0x7bc   : > { %12457 = vmatmul.mubr.msk.f32.vlgmr.msra.gmra.mrb[24].mxu1 %vm2518_vm15, %v8920_v17 }
 0x7bd   : > { %12459 = vmatprep.mubr.msk.f32.mxu1 %vm2518_vm15, %v8921_v42 }
 0x7c0   : > { %12460 = vmatmul.mubr.msk.f32.gmra.mrb[26].mxu1 %vm2518_vm15, %v8922_v4 }
 0x87f   : > { %v9049_v3 = vpop.f32.mrb[16].mxu1 }
 0x880   : > { %v9189_v36 = vadd.f32 %v9172_v39, %v9049_v3  ;;  %v9051_v21 = vpop.f32.mrb[17].mxu1 }
 0x881   : > { %v9190_v18 = vadd.f32 %v9172_v39, %v9051_v21 }
 0x882   : > { %v9201_v20 = vmax.f32 %v9189_v36, 0.0 }
 0x883   : > { %v9202_v62 = vmax.f32 %v9190_v18, 0.0  ;;  %v9055_v22 = vpop.f32.mrb[18].mxu1 }
 0x884   : > { %v16500_v33 = vmul.f32 %v9201_v20, %v15318_v2  ;;  %v9192_v28 = vadd.f32 %v9177_v57, %v9055_v22  ;;  %v9057_v15 = vpop.f32.mrb[19].mxu1 }
 0x885   : > { %v16503_v23 = vmul.f32 %v9202_v62, %v15320_v8  ;;  %v9193_v34 = vadd.f32 %v9177_v57, %v9057_v15 }
 0x886   : > { %v9204_v40 = vmax.f32 %v9192_v28, 0.0 }
 0x887   : > { %v9205_v43 = vmax.f32 %v9193_v34, 0.0  ;;  %v9061_v48 = vpop.f32.mrb[20].mxu1  ;;  %v16507_v58 = vpack.i.bf16 %v16503_v23, %v16500_v33 }
 0x888   : > { %v16510_v9 = vmul.f32 %v9204_v40, %v15318_v2  ;;  %v9195_v54 = vadd.f32 %v9182_v26, %v9061_v48  ;;  %v9063_v27 = vpop.f32.mrb[21].mxu1 }
 0x889   : > { %v16513_v29 = vmul.f32 %v9205_v43, %v15320_v8  ;;  %v9196_v32 = vadd.f32 %v9182_v26, %v9063_v27  ;;  %14398 = vrot.lane.b32.xlu1 %v16507_v58, %s17062_s0 }
 0x88a   : > { %v9207_v30 = vmax.f32 %v9195_v54, 0.0  ;;  %v16519_v35 = vpack.i.bf16 %v16510_v9, %v16500_v33  ;;  %v13131_v38 = vpack.c.bf16 %v16510_v9, %v16500_v33  ;;  %v11672_v33 = vld [vmem:[%s16958_s6 + $0x8] sm:$0x3] }
 0x88b   : > { %v9208_v50 = vmax.f32 %v9196_v32, 0.0  ;;  %v9067_v0 = vpop.f32.mrb[22].mxu1  ;;  %v14402_v51 = vpack.i.bf16 %v16513_v29, %v16510_v9  ;;  %v13129_v31 = vpack.c.bf16 %v16513_v29, %v16503_v23 }
 0x88c   : > { %v16528_v44 = vmul.f32 %v9207_v30, %v15318_v2  ;;  %v9198_v46 = vadd.f32 %v9187_v41, %v9067_v0  ;;  %v9069_v55 = vpop.f32.mrb[23].mxu1  ;;  %v9249_v30 = vld [vmem:[%s16959_s7] sm:$0x3] }
 0x88d   : > { %v16531_v59 = vmul.f32 %v9208_v50, %v15320_v8  ;;  %v9199_v49 = vadd.f32 %v9187_v41, %v9069_v55  ;;  %14403 = vrot.lane.b32.xlu0 %v14402_v51, %s17062_s0 }
 0x88e   : > { %v9210_v52 = vmax.f32 %v9198_v46, 0.0 }
 0x88f   : > { %v9211_v56 = vmax.f32 %v9199_v49, 0.0  ;;  %v12458_v13 = vpop.f32.mrb[24].mxu1  ;;  %v14407_v47 = vpack.i.bf16 %v16531_v59, %v16528_v44 }
 0x890   : > { %v16537_v53 = vmul.f32 %v9210_v52, %v15318_v2  ;;  %v9194_v60 = vadd.f32 %v12458_v13, %v9177_v57  ;;  %v9138_v16 = vpop.f32.mrb[25].mxu1 }
 0x891   : > { %v16540_v61 = vmul.f32 %v9211_v56, %v15320_v8  ;;  %v9191_v11 = vadd.f32 %v9172_v39, %v9138_v16  ;;  %14408 = vrot.lane.b32.xlu1 %v14407_v47, %s17062_s0 }
 0x892   : > { %v9206_v25 = vmax.f32 %v9194_v60, 0.0  ;;  %v16545_v63 = vpack.i.bf16 %v16537_v53, %v16528_v44  ;;  %v13135_v17 = vpack.c.bf16 %v16537_v53, %v16528_v44 }
 0x893   : > { %v9203_v42 = vmax.f32 %v9191_v11, 0.0  ;;  %v12461_v4 = vpop.f32.mrb[26].mxu1  ;;  %v14412_v2 = vpack.i.bf16 %v16540_v61, %v16537_v53  ;;  %v13133_v8 = vpack.c.bf16 %v16540_v61, %v16531_v59 }
 0x894   : > { %v9218_v39 = vmul.f32 %v9206_v25, %v15306_v45  ;;  %v9200_v3 = vadd.f32 %v12461_v4, %v9187_v41  ;;  %v9148_v36 = vpop.f32.mrb[27].mxu1 }
 0x895   : > { %v9215_v21 = vmul.f32 %v9203_v42, %v15306_v45  ;;  %v9197_v18 = vadd.f32 %v9182_v26, %v9148_v36  ;;  %14413 = vrot.lane.b32.xlu0 %v14412_v2, %s17062_s0 }
 0x896   : > { %9230 = vst.msk [vmem:[#allocation2 + $0x88] sm:$0xff] %vm17121_vm14, %v9218_v39  ;;  %v9212_v20 = vmax.f32 %v9200_v3, 0.0  ;;  %vm17127_vm14 = vmmov %vm17125_vm7  ;;  %v11629_v39 = vld [vmem:[%s16958_s6 + $0x2] sm:$0x3]  ;;  %v14749_v3 = vmov 0.0|0.0  }
 0x897   : > { %9227 = vst.msk [vmem:[#allocation2 + $0x70] sm:$0xff] %vm17122_vm11, %v9215_v21  ;;  %v9209_v57 = vmax.f32 %v9197_v18, 0.0  ;;  %vm17128_vm11 = vmmov %vm17125_vm7 }
 0x898   : > { %v9224_v62 = vmul.f32 %v9212_v20, %v15306_v45 }
 0x899   : > { %v9221_v22 = vmul.f32 %v9209_v57, %v15306_v45 }
 0x89a   : > { %9236 = vst.msk [vmem:[#allocation2 + $0xb8] sm:$0xff] %vm17123_vm13, %v9224_v62  ;;  %vm14750_vm13 = vmmov 0  }
 0x89b   : > { %9233 = vst.msk [vmem:[#allocation2 + $0xa0] sm:$0xff] %vm17124_vm12, %v9221_v22  ;;  %vm17129_vm12 = vmmov %vm17125_vm7 }
 0x89d   : > { %v16562_v28 = vld [vmem:[#allocation2 + $0x88] sm:$0xff] }
 0x89e   : > { %v16564_v15 = vld [vmem:[#allocation2 + $0x70] sm:$0xff] }
 0x89f   : > { %v14417_v34 = vpack.i.bf16 %v16562_v28, %v16564_v15  ;;  %v13138_v40 = vpack.c.bf16 %v16562_v28, %v16564_v15  ;;  %v14517_v54 = vpack.i.bf16 %v16564_v15, %v16503_v23 }
 0x8a1   : > { %14418 = vrot.lane.b32.xlu1 %v14417_v34, %s17062_s0  ;;  %v16571_v26 = vld [vmem:[#allocation2 + $0xb8] sm:$0xff] }
 0x8a2   : > { %v16573_v43 = vld [vmem:[#allocation2 + $0xa0] sm:$0xff]  ;;  %v14532_v27 = vpack.i.bf16 %v16571_v26, %v16540_v61 }
 0x8a3   : > { %v14427_v45 = vpack.i.bf16 %v16571_v26, %v16573_v43  ;;  %v13141_v48 = vpack.c.bf16 %v16571_v26, %v16573_v43  ;;  %v14537_v32 = vpack.i.bf16 %v16573_v43, %v16531_v59 }
 0x8a5   : > { %14423 = vrot.lane.b32.xlu1 %v16507_v58, %s17067_s1  ;;  %14428 = vrot.lane.b32.xlu0 %v14427_v45, %s17062_s0 }
 0x8a9   : > { %14438 = vrot.lane.b32.xlu1 %v14407_v47, %s17067_s1  ;;  %14433 = vrot.lane.b32.xlu0 %v14402_v51, %s17067_s1 }
 0x8ad   : > { %14448 = vrot.lane.b32.xlu1 %v14417_v34, %s17067_s1  ;;  %14443 = vrot.lane.b32.xlu0 %v14412_v2, %s17067_s1 }
 0x8b1   : > { %14453 = vrot.lane.b32.xlu1 %v16507_v58, %s17022_s13  ;;  %14458 = vrot.lane.b32.xlu0 %v14427_v45, %s17067_s1 }
 0x8b5   : > { %14468 = vrot.lane.b32.xlu1 %v14407_v47, %s17022_s13  ;;  %14463 = vrot.lane.b32.xlu0 %v14402_v51, %s17022_s13 }
 0x8b9   : > { %14478 = vrot.lane.b32.xlu1 %v14417_v34, %s17022_s13  ;;  %14473 = vrot.lane.b32.xlu0 %v14412_v2, %s17022_s13 }
 0x8bd   : > { %14483 = vrot.lane.b32.xlu1 %v16507_v58, %s17023_s18  ;;  %14488 = vrot.lane.b32.xlu0 %v14427_v45, %s17022_s13  ;;  %v14522_v58 = vpack.i.bf16 %v16562_v28, %v16513_v29  ;;  %s311_s13 = sand.u32 1, %s14725_s28  }
 0x8c1   : > { %14498 = vrot.lane.b32.xlu1 %v14407_v47, %s17023_s18  ;;  %14493 = vrot.lane.b32.xlu0 %v14402_v51, %s17023_s18 }
 0x8c5   : > { %14508 = vrot.lane.b32.xlu1 %v14417_v34, %s17023_s18  ;;  %14503 = vrot.lane.b32.xlu0 %v14412_v2, %s17023_s18 }
 0x8c9   : > { %14518 = vrot.lane.b32.xlu1 %v14517_v54, %s17024_s21  ;;  %14513 = vrot.lane.b32.xlu0 %v14427_v45, %s17023_s18  ;;  %s13607_s18 = smul.u32 6, %s311_s13 }
 0x8cd   : > { %14528 = vrot.lane.b32.xlu1 %v16519_v35, %s17024_s21  ;;  %14523 = vrot.lane.b32.xlu0 %v14522_v58, %s17024_s21 }
 0x8d1   : > { %14533 = vrot.lane.b32.xlu1 %v14532_v27, %s17024_s21  ;;  %14538 = vrot.lane.b32.xlu0 %v14537_v32, %s17024_s21 }
 0x8d5   : > { %14548 = vrot.lane.b32.xlu1 %v14517_v54, %s17025_s22  ;;  %14543 = vrot.lane.b32.xlu0 %v16545_v63, %s17024_s21  ;;  %s313_s21 = scalar_lea.vmem [#allocation6], %s13607_s18 }
 0x8d9   : > { %14558 = vrot.lane.b32.xlu1 %v16519_v35, %s17025_s22  ;;  %14553 = vrot.lane.b32.xlu0 %v14522_v58, %s17025_s22 }
 0x8dd   : > { %14563 = vrot.lane.b32.xlu1 %v14532_v27, %s17025_s22  ;;  %14568 = vrot.lane.b32.xlu0 %v14537_v32, %s17025_s22 }
 0x8e1   : > { %14578 = vrot.lane.b32.xlu1 %v14517_v54, %s17004_s25  ;;  %14573 = vrot.lane.b32.xlu0 %v16545_v63, %s17025_s22  ;;  %s11052_s22 = sshll.u32 %s313_s21, 4  ;;  %s16912_s22 = int_to_ptr.vmem [resolvable:$true] %s11052_s22 }
 0x8e2   : > { %s14667_s12 = scalar_lea.vmem %s16912_s22, 96  ;;  %p14674_p2 = scmp.lt.s32.totalorder %s16912_s22, %s14672_s17 }
 0x8e3   : > { %p14668_p6 = scmp.ne.s32.totalorder %s16912_s22, %s14667_s12  ;;  %p14675_p3 = scmp.lt.s32.totalorder %s14673_s19, %s14667_s12 }
 0x8e5   : > { %14588 = vrot.lane.b32.xlu1 %v16519_v35, %s17004_s25  ;;  %14583 = vrot.lane.b32.xlu0 %v14522_v58, %s17004_s25  ;;  %p14669_p10 = pnand %p14668_p6, %p17181_p9  ;;  %p14676_p4 = por %p14675_p3, %p14674_p2 }
 0x8e7   : > { %p14670_p12 = pneg %p14669_p10 }
 0x8e9   : > { %14593 = vrot.lane.b32.xlu1 %v14532_v27, %s17004_s25  ;;  %14598 = vrot.lane.b32.xlu0 %v14537_v32, %s17004_s25  ;;  %p14677_p7 = pnand %p14676_p4, %p14670_p12 }
 0x8ed   : > { %14608 = vrot.lane.b32.xlu1 %v14517_v54, %s17005_s26  ;;  %14603 = vrot.lane.b32.xlu0 %v16545_v63, %s17004_s25 }
 0x8f1   : > { %14618 = vrot.lane.b32.xlu1 %v16519_v35, %s17005_s26  ;;  %14613 = vrot.lane.b32.xlu0 %v14522_v58, %s17005_s26 }
 0x8f5   : > { %14623 = vrot.lane.b32.xlu1 %v14532_v27, %s17005_s26  ;;  %14628 = vrot.lane.b32.xlu0 %v14537_v32, %s17005_s26 }
 0x8f9   : > { %10982 = vperm.xlu1 %13676, %v9249_v30   ;;  %14633 = vrot.lane.b32.xlu0 %v16545_v63, %s17005_s26 }
 0x8fb   : > { %v14399_v41 = vpop.permute.xlu1 %14398 }
 0x8fc   : > { %v14401_v50 = vunpack.i.h.bf16 %v14399_v41  ;;  %v14400_v0 = vunpack.i.l.bf16 %v14399_v41 }
 0x8fe   : > { %v9337_v55 = vsel %vm17125_vm7, %v14400_v0, %v14401_v50 }
 0x8ff   : > { %v14404_v51 = vpop.permute.xlu0 %14403 }
 0x900   : > { %v14406_v46 = vunpack.i.h.bf16 %v14404_v51  ;;  %v14405_v35 = vunpack.i.l.bf16 %v14404_v51 }
 0x902   : > { %v9339_v49 = vsel %vm17126_vm10, %v14405_v35, %v14406_v46  ;;  %v13067_v13 = vpack.c.bf16 %v14405_v35, %v14400_v0 }
 0x903   : > { %v14409_v52 = vpop.permute.xlu1 %14408  ;;  %v13065_v56 = vpack.c.bf16 %v9339_v49, %v9337_v55 }
 0x904   : > { %v14411_v47 = vunpack.i.h.bf16 %v14409_v52  ;;  %v14410_v60 = vunpack.i.l.bf16 %v14409_v52 }
 0x905   : > { %13066 = vmatprep.subr.bf16.mxu0 %v13065_v56 }
 0x906   : > { %13069 = vmatpush1.bf16.msk.msra.mxu0 %vm15455_vm0, %v13067_v13  ;;  %v9341_v63 = vsel %vm17127_vm14, %v14410_v60, %v14411_v47  ;;  %vm17132_vm14 = vcmask 154624  }
 0x907   : > { %v14414_v16 = vpop.permute.xlu0 %14413 }
 0x908   : > { %v14416_v11 = vunpack.i.h.bf16 %v14414_v16  ;;  %v14415_v25 = vunpack.i.l.bf16 %v14414_v16 }
 0x90a   : > { %v9343_v42 = vsel %vm17128_vm11, %v14415_v25, %v14416_v11  ;;  %v13072_v2 = vpack.c.bf16 %v14415_v25, %v14410_v60  ;;  %vm17133_vm11 = vmmov %vm17132_vm14 }
 0x90b   : > { %v13070_v4 = vpack.c.bf16 %v9343_v42, %v9341_v63 }
 0x90d   : > { %13071 = vmatprep.subr.bf16.mxu0 %v13070_v4 }
 0x90e   : > { %13074 = vmatpush1.bf16.msk.msra.mxu0 %vm15455_vm0, %v13072_v2  ;;  %vm17130_vm0 = vmmov %vm17125_vm7 }
 0x90f   : > { %13075 = vmatprep.subr.bf16.mxu0 %v14749_v3  ;;  %vm17131_vm10 = vmmov %vm17130_vm0 }
 0x911   : > { %11638 = vmatmul.mubr.msk.f32.vlgmr.msra.gmra.mrb[20].mxu0 %vm2518_vm15, %v11629_v39 }
 0x912   : > { %12470 = vmatprep.mubr.msk.f32.mxu0 %vm14750_vm13, %v14739_v5 }
 0x913   : > { %v14419_v36 = vpop.permute.xlu1 %14418 }
 0x914   : > { %v14421_v21 = vunpack.i.h.bf16 %v14419_v36  ;;  %v14420_v18 = vunpack.i.l.bf16 %v14419_v36 }
 0x916   : > { %v9340_v20 = vsel %vm17129_vm12, %v14406_v46, %v14421_v21  ;;  %v9338_v14 = vsel %vm17125_vm7, %v14401_v50, %v14420_v18  ;;  %vm17134_vm12 = vmmov %vm17133_vm11 }
 0x917   : > { %v13076_v57 = vpack.c.bf16 %v9340_v20, %v9338_v14  ;;  %v14424_v62 = vpop.permute.xlu1 %14423  ;;  %v14429_v22 = vpop.permute.xlu0 %14428  ;;  %vm17135_vm7 = vmmov %vm17133_vm11 }
 0x918   : > { %v14431_v34 = vunpack.i.h.bf16 %v14429_v22  ;;  %v14430_v45 = vunpack.i.l.bf16 %v14429_v22  ;;  %v14426_v54 = vunpack.i.h.bf16 %v14424_v62  ;;  %v14425_v58 = vunpack.i.l.bf16 %v14424_v62 }
 0x919   : > { %13077 = vmatpush3.bf16.msra.mxu0 %v13076_v57  ;;  %v9250_v57 = vld [vmem:[%s16958_s6] sm:$0x3] }
 0x91a   : > { %v9344_v27 = vsel %vm17130_vm0, %v14416_v11, %v14431_v34  ;;  %v9342_v32 = vsel %vm17131_vm10, %v14411_v47, %v14430_v45  ;;  %13078 = vmatprep.subr.bf16.mxu0 %v14749_v3  ;;  %v9287_v55 = vsel %vm17132_vm14, %v14425_v58, %v14426_v54  ;;  %vm17136_vm0 = vmmov %vm17135_vm7 }
 0x91b   : > { %v13079_v30 = vpack.c.bf16 %v9344_v27, %v9342_v32  ;;  %v14439_v41 = vpop.permute.xlu1 %14438  ;;  %v14434_v0 = vpop.permute.xlu0 %14433  ;;  %vm17137_vm10 = vmmov %vm17136_vm0 }
 0x91c   : > { %v14436_v51 = vunpack.i.h.bf16 %v14434_v0  ;;  %v14435_v46 = vunpack.i.l.bf16 %v14434_v0  ;;  %v14441_v50 = vunpack.i.h.bf16 %v14439_v41  ;;  %v14440_v35 = vunpack.i.l.bf16 %v14439_v41  ;;  %vm17138_vm14 = vmmov %vm17136_vm0 }
 0x91d   : > { %13080 = vmatpush3.bf16.msra.mxu0 %v13079_v30 }
 0x91e   : > { %v9289_v49 = vsel %vm17133_vm11, %v14435_v46, %v14436_v51  ;;  %v13083_v52 = vpack.c.bf16 %v14435_v46, %v14425_v58  ;;  %v9291_v63 = vsel %vm17134_vm12, %v14440_v35, %v14441_v50  ;;  %vm17139_vm11 = vmmov %vm17136_vm0 }
 0x91f   : > { %v14449_v56 = vpop.permute.xlu1 %14448  ;;  %v14444_v13 = vpop.permute.xlu0 %14443  ;;  %v13081_v60 = vpack.c.bf16 %v9289_v49, %v9287_v55 }
 0x920   : > { %v14451_v16 = vunpack.i.h.bf16 %v14449_v56  ;;  %v14450_v47 = vunpack.i.l.bf16 %v14449_v56  ;;  %v14446_v11 = vunpack.i.h.bf16 %v14444_v13  ;;  %v14445_v25 = vunpack.i.l.bf16 %v14444_v13  ;;  %12471 = vmatmul.mubr.msk.f32.vlgmr.msra.gmra.mrb[22].mxu0 %vm2518_vm15, %v11629_v39 }
 0x921   : > { %13082 = vmatprep.subr.bf16.mxu0 %v13081_v60  ;;  %9572 = vmatprep.mubr.f32.mxu0 %v14739_v5 }
 0x922   : > { %13085 = vmatpush1.bf16.msk.msra.mxu0 %vm15481_vm2, %v13083_v52  ;;  %v9293_v42 = vsel %vm17135_vm7, %v14445_v25, %v14446_v11  ;;  %v9288_v4 = vsel %vm17136_vm0, %v14426_v54, %v14450_v47  ;;  %v9290_v18 = vsel %vm17137_vm10, %v14436_v51, %v14451_v16  ;;  %v13088_v20 = vpack.c.bf16 %v14445_v25, %v14440_v35 }
 0x923   : > { %v14454_v2 = vpop.permute.xlu1 %14453  ;;  %v14459_v36 = vpop.permute.xlu0 %14458  ;;  %v13086_v21 = vpack.c.bf16 %v9293_v42, %v9291_v63  ;;  %v13092_v62 = vpack.c.bf16 %v9290_v18, %v9288_v4 }
 0x924   : > { %v14461_v14 = vunpack.i.h.bf16 %v14459_v36  ;;  %v14460_v39 = vunpack.i.l.bf16 %v14459_v36  ;;  %v14456_v22 = vunpack.i.h.bf16 %v14454_v2  ;;  %v14455_v34 = vunpack.i.l.bf16 %v14454_v2 }
 0x925   : > { %13087 = vmatprep.subr.bf16.mxu0 %v13086_v21 }
 0x926   : > { %13090 = vmatpush1.bf16.msk.msra.mxu0 %vm15481_vm2, %v13088_v20  ;;  %v9292_v58 = vsel %vm17138_vm14, %v14441_v50, %v14460_v39  ;;  %v9294_v27 = vsel %vm17139_vm11, %v14446_v11, %v14461_v14  ;;  %vm17140_vm2 = vcmask 138240   ;;  %v11650_v39 = vld [vmem:[%s16958_s6 + $0x4] sm:$0x3] }
 0x927   : > { %v14469_v45 = vpop.permute.xlu1 %14468  ;;  %v14464_v54 = vpop.permute.xlu0 %14463  ;;  %13091 = vmatprep.subr.bf16.mxu0 %v14749_v3  ;;  %v13095_v41 = vpack.c.bf16 %v9294_v27, %v9292_v58  ;;  %vm17141_vm12 = vmmov %vm17140_vm2 }
 0x928   : > { %v14466_v32 = vunpack.i.h.bf16 %v14464_v54  ;;  %v14465_v30 = vunpack.i.l.bf16 %v14464_v54  ;;  %v9675_v51 = vsel %vm17141_vm12, %v14455_v34, %v14456_v22  ;;  %v14471_v46 = vunpack.i.h.bf16 %v14469_v45  ;;  %vm17142_vm7 = vmmov %vm17140_vm2 }
 0x929   : > { %11648 = vmatmul.mubr.msk.f32.vlgmr.msra.gmra.mrb[20].mxu0 %vm2518_vm15, %v9250_v57  ;;  %v14470_v50 = vunpack.i.l.bf16 %v14469_v45  ;;  %vm17143_vm0 = vmmov %vm17140_vm2 }
 0x92a   : > { %13093 = vmatpush3.bf16.msra.mxu0 %v13092_v62  ;;  %v9677_v19 = vsel %vm17140_vm2, %v14465_v30, %v14466_v32  ;;  %12481 = vmatprep.mubr.msk.f32.mxu0 %vm14750_vm13, %v14739_v5  ;;  %v13099_v60 = vpack.c.bf16 %v14465_v30, %v14455_v34  ;;  %vm17144_vm10 = vmmov %vm17143_vm0 }
 0x92b   : > { %v14474_v0 = vpop.permute.xlu0 %14473  ;;  %13094 = vmatprep.subr.bf16.mxu0 %v14749_v3  ;;  %v14479_v35 = vpop.permute.xlu1 %14478  ;;  %v13097_v52 = vpack.c.bf16 %v9677_v19, %v9675_v51  ;;  %v9679_v16 = vsel %vm17143_vm0, %v14470_v50, %v14471_v46  ;;  %vm17145_vm14 = vmmov %vm17143_vm0 }
 0x92c   : > { %v14476_v55 = vunpack.i.h.bf16 %v14474_v0  ;;  %v14475_v49 = vunpack.i.l.bf16 %v14474_v0  ;;  %v14481_v47 = vunpack.i.h.bf16 %v14479_v35  ;;  %v14480_v11 = vunpack.i.l.bf16 %v14479_v35  ;;  %vm17146_vm11 = vmmov %vm17143_vm0 }
 0x92d   : > { %vm17147_vm2 = vmmov %vm17143_vm0 }
 0x92e   : > { %13096 = vmatpush3.bf16.msra.mxu0 %v13095_v41  ;;  %v9681_v56 = vsel %vm17142_vm7, %v14475_v49, %v14476_v55  ;;  %v13104_v4 = vpack.c.bf16 %v14475_v49, %v14470_v50  ;;  %v9676_v2 = vsel %vm17144_vm10, %v14456_v22, %v14480_v11  ;;  %v9678_v36 = vsel %vm17145_vm14, %v14466_v32, %v14481_v47 }
 0x92f   : > { %v14489_v13 = vpop.permute.xlu0 %14488  ;;  %13098 = vmatprep.subr.bf16.mxu0 %v13097_v52  ;;  %v13102_v25 = vpack.c.bf16 %v9681_v56, %v9679_v16  ;;  %v14484_v63 = vpop.permute.xlu1 %14483  ;;  %v13108_v62 = vpack.c.bf16 %v9678_v36, %v9676_v2 }
 0x930   : > { %v14491_v21 = vunpack.i.h.bf16 %v14489_v13  ;;  %v14490_v18 = vunpack.i.l.bf16 %v14489_v13  ;;  %v14486_v34 = vunpack.i.h.bf16 %v14484_v63  ;;  %v14485_v45 = vunpack.i.l.bf16 %v14484_v63 }
 0x931   : > { %12482 = vmatmul.mubr.msk.f32.vlgmr.msra.gmra.mrb[24].mxu0 %vm2518_vm15, %v9250_v57 }
 0x932   : > { %13101 = vmatpush1.bf16.msk.msra.mxu0 %vm15510_vm1, %v13099_v60  ;;  %9766 = vmatprep.mubr.f32.mxu0 %v14739_v5  ;;  %v9680_v54 = vsel %vm17146_vm11, %v14471_v46, %v14490_v18  ;;  %v9682_v58 = vsel %vm17147_vm2, %v14476_v55, %v14491_v21  ;;  %v9872_v0 = vsel %vm993_vm5, %v14485_v45, %v14486_v34  ;;  %vm17156_vm11 = vcmask 908288  }
 0x933   : > { %v14494_v42 = vpop.permute.xlu0 %14493  ;;  %13103 = vmatprep.subr.bf16.mxu0 %v13102_v25  ;;  %v14499_v22 = vpop.permute.xlu1 %14498  ;;  %v13111_v30 = vpack.c.bf16 %v9682_v58, %v9680_v54  ;;  %vm17157_vm2 = vmmov %vm17156_vm11 }
 0x934   : > { %v14496_v20 = vunpack.i.h.bf16 %v14494_v42  ;;  %v14495_v14 = vunpack.i.l.bf16 %v14494_v42  ;;  %v14501_v19 = vunpack.i.h.bf16 %v14499_v22  ;;  %v14500_v41 = vunpack.i.l.bf16 %v14499_v22  ;;  %v11661_v42 = vld [vmem:[%s16958_s6 + $0x6] sm:$0x3] }
 0x936   : > { %13106 = vmatpush1.bf16.msk.msra.mxu0 %vm15510_vm1, %v13104_v4  ;;  %v9874_v32 = vsel %vm993_vm5, %v14495_v14, %v14496_v20  ;;  %v13115_v35 = vpack.c.bf16 %v14495_v14, %v14485_v45  ;;  %v9876_v55 = vsel %vm993_vm5, %v14500_v41, %v14501_v19  ;;  %vm17148_vm1 = vcmask 1039360  }
 0x937   : > { %v14504_v57 = vpop.permute.xlu0 %14503  ;;  %13107 = vmatprep.subr.bf16.mxu0 %v14749_v3  ;;  %v13113_v51 = vpack.c.bf16 %v9874_v32, %v9872_v0  ;;  %v14509_v46 = vpop.permute.xlu1 %14508  ;;  %vm17151_vm12 = vmmov %vm17148_vm1 }
 0x938   : > { %v14506_v27 = vunpack.i.h.bf16 %v14504_v57  ;;  %v14505_v12 = vunpack.i.l.bf16 %v14504_v57  ;;  %v14511_v49 = vunpack.i.h.bf16 %v14509_v46  ;;  %v14510_v52 = vunpack.i.l.bf16 %v14509_v46  ;;  %vm17152_vm7 = vmmov %vm17148_vm1  ;;  %v11675_v46 = vld [vmem:[%s16958_s6 + $0xa] sm:$0x3] }
 0x939   : > { %11659 = vmatmul.mubr.msk.f32.vlgmr.msra.gmra.mrb[20].mxu0 %vm2518_vm15, %v11650_v39  ;;  %vm17153_vm0 = vmmov %vm17148_vm1 }
 0x93a   : > { %13109 = vmatpush3.bf16.msra.mxu0 %v13108_v62  ;;  %12492 = vmatprep.mubr.msk.f32.mxu0 %vm14750_vm13, %v14739_v5  ;;  %v9878_v50 = vsel %vm993_vm5, %v14505_v12, %v14506_v27  ;;  %v13120_v60 = vpack.c.bf16 %v14505_v12, %v14500_v41  ;;  %v9873_v16 = vsel %vm993_vm5, %v14486_v34, %v14510_v52  ;;  %vm17154_vm10 = vmmov %vm17153_vm0 }
 0x93b   : > { %13110 = vmatprep.subr.bf16.mxu0 %v14749_v3  ;;  %v13118_v56 = vpack.c.bf16 %v9878_v50, %v9876_v55  ;;  %v14514_v13 = vpop.permute.xlu0 %14513  ;;  %v9875_v47 = vsel %vm993_vm5, %v14496_v20, %v14511_v49  ;;  %v16718_v11 = vpop.permute.xlu1 %14518  ;;  %vm17155_vm14 = vmmov %vm17153_vm0 }
 0x93c   : > { %v14516_v25 = vunpack.i.h.bf16 %v14514_v13  ;;  %v14515_v63 = vunpack.i.l.bf16 %v14514_v13  ;;  %v13124_v4 = vpack.c.bf16 %v9875_v47, %v9873_v16  ;;  %v14521_v29 = vunpack.i.h.bf16 %v16718_v11 }
 0x93e   : > { %13112 = vmatpush3.bf16.msra.mxu0 %v13111_v30  ;;  %v9877_v36 = vsel %vm993_vm5, %v14501_v19, %v14515_v63  ;;  %v9879_v21 = vsel %vm993_vm5, %v14506_v27, %v14516_v25  ;;  %vm17150_vm5 = vmmov %vm17148_vm1 }
 0x93f   : > { %13114 = vmatprep.subr.bf16.mxu0 %v13113_v51  ;;  %v16726_v2 = vpop.permute.xlu0 %14523  ;;  %v14529_v7 = vpop.permute.xlu1 %14528  ;;  %v13127_v18 = vpack.c.bf16 %v9879_v21, %v9877_v36 }
 0x940   : > { %v14526_v57 = vunpack.i.h.bf16 %v16726_v2  ;;  %v14525_v23 = vunpack.i.l.bf16 %v16726_v2  ;;  %v14531_v59 = vunpack.i.h.bf16 %v14529_v7 }
 0x941   : > { %12493 = vmatmul.mubr.msk.f32.vlgmr.msra.gmra.mrb[26].mxu0 %vm2518_vm15, %v11650_v39 }
 0x942   : > { %13117 = vmatpush1.bf16.msk.msra.mxu0 %vm15539_vm4, %v13115_v35  ;;  %9963 = vmatprep.mubr.f32.mxu0 %v14739_v5  ;;  %v10221_v61 = vsel %vm17148_vm1, %v14525_v23, %v14526_v57  ;;  %v10220_v22 = vsel %vm17151_vm12, %v14531_v59, %v14525_v23  ;;  %v13152_v50 = vpack.c.bf16 %v14526_v57, %v14521_v29  ;;  %v11682_v59 = vld [vmem:[%s16958_s6 + $0xc] sm:$0x3] }
 0x943   : > { %13119 = vmatprep.subr.bf16.mxu0 %v13118_v56  ;;  %v16734_v20 = vpop.permute.xlu0 %14538  ;;  %v16739_v14 = vpop.permute.xlu1 %14533 }
 0x944   : > { %v14536_v44 = vunpack.i.h.bf16 %v16739_v14  ;;  %v14535_v53 = vunpack.i.l.bf16 %v16739_v14 }
 0x946   : > { %13122 = vmatpush1.bf16.msk.msra.mxu0 %vm15539_vm4, %v13120_v60  ;;  %vm17149_vm4 = vmmov %vm17148_vm1  ;;  %v10225_v15 = vsel %vm17153_vm0, %v14535_v53, %v14536_v44 }
 0x947   : > { %13123 = vmatprep.subr.bf16.mxu0 %v14749_v3  ;;  %v14544_v39 = vpop.permute.xlu0 %14543  ;;  %v16757_v9 = vpop.permute.xlu1 %14548  ;;  %vm17158_vm1 = vmmov %vm17157_vm2 }
 0x948   : > { %v14546_v54 = vunpack.i.h.bf16 %v14544_v39  ;;  %v14545_v58 = vunpack.i.l.bf16 %v14544_v39  ;;  %v14551_v35 = vunpack.i.h.bf16 %v16757_v9  ;;  %v14550_v55 = vunpack.i.l.bf16 %v16757_v9  ;;  %vm17161_vm12 = vmmov %vm17158_vm1 }
 0x949   : > { %11670 = vmatmul.mubr.msk.f32.vlgmr.msra.gmra.mrb[20].mxu0 %vm2518_vm15, %v11661_v42  ;;  %vm17163_vm0 = vmmov %vm17158_vm1 }
 0x94a   : > { %13125 = vmatpush3.bf16.msra.mxu0 %v13124_v4  ;;  %12503 = vmatprep.mubr.msk.f32.mxu0 %vm14750_vm13, %v14739_v5  ;;  %v10224_v30 = vsel %vm17154_vm10, %v14546_v54, %v14535_v53  ;;  %v10416_v4 = vsel %vm17158_vm1, %v14550_v55, %v14551_v35 }
 0x94b   : > { %13126 = vmatprep.subr.bf16.mxu0 %v14749_v3  ;;  %v16768_v62 = vpop.permute.xlu0 %14553  ;;  %v14559_v27 = vpop.permute.xlu1 %14558 }
 0x94c   : > { %v14555_v0 = vunpack.i.l.bf16 %v16768_v62  ;;  %v14560_v49 = vunpack.i.l.bf16 %v14559_v27  ;;  %v14561_v52 = vunpack.i.h.bf16 %v14559_v27 }
 0x94e   : > { %13128 = vmatpush3.bf16.msra.mxu0 %v13127_v18  ;;  %v10415_v63 = vsel %vm17157_vm2, %v14560_v49, %v14550_v55 }
 0x94f   : > { %13130 = vmatprep.subr.bf16.mxu0 %v13129_v31  ;;  %v14530_v31 = vunpack.i.l.bf16 %v14529_v7  ;;  %v16784_v32 = vpop.permute.xlu0 %14568  ;;  %v16790_v26 = vpop.permute.xlu1 %14563 }
 0x950   : > { %v14566_v60 = vunpack.i.h.bf16 %v16790_v26  ;;  %v14565_v16 = vunpack.i.l.bf16 %v16790_v26  ;;  %v14571_v47 = vunpack.i.h.bf16 %v16784_v32 }
 0x951   : > { %12504 = vmatmul.mubr.msk.f32.vlgmr.msra.gmra.mrb[28].mxu0 %vm2518_vm15, %v11661_v42 }
 0x952   : > { %13132 = vmatpush1.bf16.msra.mxu0 %v13131_v38  ;;  %10112 = vmatprep.mubr.f32.mxu0 %v14739_v5  ;;  %v14520_v38 = vunpack.i.l.bf16 %v16718_v11  ;;  %v14570_v11 = vunpack.i.l.bf16 %v16784_v32 }
 0x953   : > { %13134 = vmatprep.subr.bf16.mxu0 %v13133_v8  ;;  %v14540_v8 = vunpack.i.l.bf16 %v16734_v20  ;;  %v14574_v51 = vpop.permute.xlu0 %14573  ;;  %v16800_v56 = vpop.permute.xlu1 %14578 }
 0x954   : > { %v10218_v34 = vsel %vm17149_vm4, %v14530_v31, %v14520_v38  ;;  %v10219_v45 = vsel %vm17150_vm5, %v14520_v38, %v14521_v29  ;;  %vm17159_vm4 = vmmov %vm17158_vm1  ;;  %v14576_v36 = vunpack.i.h.bf16 %v14574_v51  ;;  %v14575_v21 = vunpack.i.l.bf16 %v14574_v51 }
 0x955   : > { %v13143_v12 = vpack.c.bf16 %v10221_v61, %v10219_v45  ;;  %v10222_v19 = vsel %vm17155_vm14, %v14545_v58, %v14540_v8  ;;  %v10417_v2 = vsel %vm17159_vm4, %v14561_v52, %v14555_v0  ;;  %vm17160_vm5 = vmmov %vm17158_vm1  ;;  %v14580_v53 = vunpack.i.l.bf16 %v16800_v56  ;;  %v11689_v52 = vld [vmem:[%s16958_s6 + $0xe] sm:$0x3] }
 0x956   : > { %13136 = vmatpush1.bf16.msra.mxu0 %v13135_v17  ;;  %v14541_v17 = vunpack.i.h.bf16 %v16734_v20  ;;  %v13149_v43 = vpack.c.bf16 %v10224_v30, %v10222_v19  ;;  %v10420_v18 = vsel %vm17160_vm5, %v14570_v11, %v14571_v47  ;;  %v10422_v20 = vsel %vm17161_vm12, %v14565_v16, %v14566_v60 }
 0x957   : > { %13137 = vmatprep.subr.bf16.mxu0 %v14749_v3  ;;  %v16814_v42 = vpop.permute.xlu0 %14583  ;;  %v14589_v14 = vpop.permute.xlu1 %14588  ;;  %v13161_v39 = vpack.c.bf16 %v10417_v2, %v10415_v63  ;;  %v10419_v23 = vsel %vm17163_vm0, %v14575_v21, %v14570_v11 }
 0x958   : > { %v10223_v28 = vsel %vm17152_vm7, %v14540_v8, %v14541_v17  ;;  %v13156_v25 = vpack.c.bf16 %v14536_v44, %v14541_v17  ;;  %vm17162_vm7 = vmmov %vm17158_vm1  ;;  %v14586_v29 = vunpack.i.h.bf16 %v16814_v42  ;;  %v14585_v38 = vunpack.i.l.bf16 %v16814_v42 }
 0x959   : > { %11673 = vmatmul.mubr.msk.f32.vlgmr.msra.gmra.mrb[20].mxu0 %vm2518_vm15, %v11672_v33  ;;  %v13147_v41 = vpack.c.bf16 %v10225_v15, %v10223_v28  ;;  %v10421_v57 = vsel %vm17162_vm7, %v14576_v36, %v14565_v16  ;;  %v14581_v44 = vunpack.i.h.bf16 %v16800_v56  ;;  %v14590_v17 = vunpack.i.l.bf16 %v14589_v14 }
 0x95a   : > { %13139 = vmatpush3.bf16.msra.mxu0 %v13138_v40  ;;  %12514 = vmatprep.mubr.msk.f32.mxu0 %vm14750_vm13, %v14739_v5  ;;  %v13145_v40 = vpack.c.bf16 %v10220_v22, %v10218_v34  ;;  %v13165_v1 = vpack.c.bf16 %v10421_v57, %v10419_v23 }
 0x95b   : > { %13140 = vmatprep.subr.bf16.mxu0 %v14749_v3  ;;  %v16825_v9 = vpop.permute.xlu0 %14598  ;;  %v16830_v31 = vpop.permute.xlu1 %14593 }
 0x95c   : > { %v14596_v45 = vunpack.i.h.bf16 %v16830_v31  ;;  %v14595_v22 = vunpack.i.l.bf16 %v16830_v31  ;;  %v14601_v54 = vunpack.i.h.bf16 %v16825_v9  ;;  %v14600_v58 = vunpack.i.l.bf16 %v16825_v9 }
 0x95e   : > { %13142 = vmatpush3.bf16.msra.mxu0 %v13141_v48  ;;  %v14556_v48 = vunpack.i.h.bf16 %v16768_v62  ;;  %v14591_v62 = vunpack.i.h.bf16 %v14589_v14  ;;  %v13188_v21 = vpack.c.bf16 %v14596_v45, %v14601_v54 }
 0x95f   : > { %13144 = vmatprep.subr.bf16.mxu0 %v13143_v12  ;;  %v14604_v8 = vpop.permute.xlu0 %14603  ;;  %v16848_v27 = vpop.permute.xlu1 %14608  ;;  %v13172_v12 = vpack.c.bf16 %v14566_v60, %v14571_v47 }
 0x960   : > { %v10418_v13 = vsel %vm17156_vm11, %v14555_v0, %v14556_v48  ;;  %v13168_v61 = vpack.c.bf16 %v14556_v48, %v14551_v35  ;;  %v14606_v32 = vunpack.i.h.bf16 %v14604_v8  ;;  %v14605_v30 = vunpack.i.l.bf16 %v14604_v8 }
 0x961   : > { %12515 = vmatmul.mubr.msk.f32.vlgmr.msra.gmra.mrb[30].mxu0 %vm2518_vm15, %v11672_v33  ;;  %v13159_v7 = vpack.c.bf16 %v10418_v13, %v10416_v4  ;;  %v13163_v33 = vpack.c.bf16 %v10422_v20, %v10420_v18  ;;  %v13184_v13 = vpack.c.bf16 %v14586_v29, %v14581_v44  ;;  %v14611_v60 = vunpack.i.h.bf16 %v16848_v27 }
 0x962   : > { %13146 = vmatpush1.bf16.msra.mxu0 %v13145_v40  ;;  %10309 = vmatprep.mubr.f32.mxu0 %v14739_v5  ;;  %v14610_v16 = vunpack.i.l.bf16 %v16848_v27 }
 0x963   : > { %13148 = vmatprep.subr.bf16.mxu0 %v13147_v41  ;;  %v14614_v41 = vpop.permute.xlu0 %14613 }
 0x964   : > { %v14616_v55 = vunpack.i.h.bf16 %v14614_v41  ;;  %v14615_v49 = vunpack.i.l.bf16 %v14614_v41 }
 0x966   : > { %13150 = vmatpush1.bf16.msra.mxu0 %v13149_v43 }
 0x967   : > { %13151 = vmatprep.subr.bf16.mxu0 %v14749_v3  ;;  %v14629_v35 = vpop.permute.xlu0 %14628 }
 0x968   : > { %v14631_v4 = vunpack.i.h.bf16 %v14629_v35  ;;  %v14630_v2 = vunpack.i.l.bf16 %v14629_v35 }
 0x969   : > { %11676 = vmatmul.mubr.msk.f32.vlgmr.msra.gmra.mrb[20].mxu0 %vm2518_vm15, %v11675_v46 }
 0x96a   : > { %13154 = vmatpush3.bf16.msk.msra.mxu0 %vm15606_vm3, %v13152_v50  ;;  %12525 = vmatprep.mubr.msk.f32.mxu0 %vm14750_vm13, %v14739_v5 }
 0x96b   : > { %13155 = vmatprep.subr.bf16.mxu0 %v14749_v3  ;;  %v14634_v36 = vpop.permute.xlu0 %14633 }
 0x96c   : > { %v14636_v14 = vunpack.i.h.bf16 %v14634_v36 }
 0x96e   : > { %13158 = vmatpush3.bf16.msk.msra.mxu0 %vm15606_vm3, %v13156_v25  ;;  %vm17164_vm3 = vcmask 900096  }
 0x96f   : > { %13160 = vmatprep.subr.bf16.mxu0 %v13159_v7  ;;  %v10615_v34 = vsel %vm17164_vm3, %v14585_v38, %v14586_v29  ;;  %vm17165_vm10 = vmmov %vm17164_vm3 }
 0x970   : > { %v10612_v28 = vsel %vm17165_vm10, %v14590_v17, %v14580_v53  ;;  %vm17166_vm14 = vmmov %vm17164_vm3 }
 0x971   : > { %12526 = vmatmul.mubr.msk.f32.vlgmr.msra.gmra.mrb[32].mxu0 %vm2518_vm15, %v11675_v46  ;;  %v10613_v15 = vsel %vm17166_vm14, %v14580_v53, %v14581_v44  ;;  %vm17167_vm11 = vmmov %vm17164_vm3  ;;  %v14619_v46 = vpop.permute.xlu1 %14618 }
 0x972   : > { %13162 = vmatpush1.bf16.msra.mxu0 %v13161_v39  ;;  %10506 = vmatprep.mubr.f32.mxu0 %v14739_v5  ;;  %v10614_v40 = vsel %vm17167_vm11, %v14591_v62, %v14585_v38  ;;  %v13175_v19 = vpack.c.bf16 %v10615_v34, %v10613_v15  ;;  %vm17168_vm2 = vmmov %vm17164_vm3  ;;  %v14620_v47 = vunpack.i.l.bf16 %v14619_v46  ;;  %v14621_v11 = vunpack.i.h.bf16 %v14619_v46 }
 0x973   : > { %13164 = vmatprep.subr.bf16.mxu0 %v13163_v33  ;;  %v10617_v26 = vsel %vm17168_vm2, %v14600_v58, %v14601_v54  ;;  %vm17169_vm1 = vmmov %vm17168_vm2  ;;  %v13177_v48 = vpack.c.bf16 %v10614_v40, %v10612_v28  ;;  %v14635_v39 = vunpack.i.l.bf16 %v14634_v36 }
 0x974   : > { %v10619_v43 = vsel %vm17169_vm1, %v14595_v22, %v14596_v45  ;;  %vm17170_vm4 = vmmov %vm17169_vm1 }
 0x975   : > { %v10618_v0 = vsel %vm17170_vm4, %v14606_v32, %v14595_v22  ;;  %vm17171_vm5 = vmmov %vm17169_vm1  ;;  %v13179_v50 = vpack.c.bf16 %v10619_v43, %v10617_v26  ;;  %v14624_v56 = vpop.permute.xlu1 %14623  ;;  %v10988_v43 = vld [vmem:[%s14891_s24] sm:$0x3f]  ;;  %s13609_s24 = smul.u32 96, %s14818_s9  ;;  %s11038_s9 = scalar_lea.sflag [#allocation5], %s311_s13 }
 0x976   : > { %13166 = vmatpush1.bf16.msra.mxu0 %v13165_v1  ;;  %v10616_v51 = vsel %vm17171_vm5, %v14605_v30, %v14600_v58  ;;  %v14626_v63 = vunpack.i.h.bf16 %v14624_v56  ;;  %v14625_v42 = vunpack.i.l.bf16 %v14624_v56 }
 0x977   : > { %13167 = vmatprep.subr.bf16.mxu0 %v14749_v3  ;;  %v13181_v37 = vpack.c.bf16 %v10618_v0, %v10616_v51  ;;  %s16910_s10 = scalar_lea.hbm %s16960_s8, %s13609_s24 }
 0x979   : > { %11683 = vmatmul.mubr.msk.f32.vlgmr.msra.gmra.mrb[20].mxu0 %vm2518_vm15, %v11682_v59  ;;  %v10983_v0 = vpop.permute.xlu1 %10982 }
 0x97a   : > { %13170 = vmatpush3.bf16.msk.msra.mxu0 %vm15644_vm6, %v13168_v61  ;;  %12536 = vmatprep.mubr.msk.f32.mxu0 %vm14750_vm13, %v14739_v5  ;;  %v13204_v61 = vpack.c.bf16 %v14626_v63, %v14631_v4 }
 0x97b   : > { %13171 = vmatprep.subr.bf16.mxu0 %v14749_v3 }
 0x97e   : > { %13174 = vmatpush3.bf16.msk.msra.mxu0 %vm15644_vm6, %v13172_v12  ;;  %vm17172_vm6 = vcmask 891904  }
 0x97f   : > { %13176 = vmatprep.subr.bf16.mxu0 %v13175_v19  ;;  %v10812_v25 = vsel %vm17172_vm6, %v14615_v49, %v14616_v55  ;;  %vm17173_vm12 = vmmov %vm17172_vm6 }
 0x980   : > { %v10809_v7 = vsel %vm17173_vm12, %v14620_v47, %v14610_v16  ;;  %vm17174_vm7 = vmmov %vm17172_vm6 }
 0x981   : > { %12537 = vmatmul.mubr.msk.f32.vlgmr.msra.gmra.mrb[34].mxu0 %vm2518_vm15, %v11682_v59  ;;  %v10810_v18 = vsel %vm17174_vm7, %v14610_v16, %v14611_v60  ;;  %vm17175_vm0 = vmmov %vm17172_vm6  ;;  %v13200_v59 = vpack.c.bf16 %v14616_v55, %v14611_v60 }
 0x982   : > { %13178 = vmatpush1.bf16.msra.mxu0 %v13177_v48  ;;  %10703 = vmatprep.mubr.f32.mxu0 %v14739_v5  ;;  %v10811_v20 = vsel %vm17175_vm0, %v14621_v11, %v14615_v49  ;;  %v13191_v57 = vpack.c.bf16 %v10812_v25, %v10810_v18  ;;  %vm17176_vm3 = vmmov %vm17175_vm0  ;;  %v10997_v48 = vrot.slane %v10988_v43, %v14886_v6 }
 0x983   : > { %13180 = vmatprep.subr.bf16.mxu0 %v13179_v50  ;;  %v10814_v23 = vsel %vm17176_vm3, %v14630_v2, %v14631_v4  ;;  %vm17177_vm10 = vmmov %vm17175_vm0  ;;  %v13193_v9 = vpack.c.bf16 %v10811_v20, %v10809_v7 }
 0x984   : > { %v10816_v33 = vsel %vm17177_vm10, %v14625_v42, %v14626_v63  ;;  %vm17178_vm14 = vmmov %vm17175_vm0  ;;  %v11005_v46 = vcombine.high %v10997_v48, %v10997_v48 }
 0x985   : > { %v10815_v1 = vsel %vm17178_vm14, %v14636_v14, %v14625_v42  ;;  %vm17179_vm11 = vmmov %vm17175_vm0  ;;  %v13195_v38 = vpack.c.bf16 %v10816_v33, %v10814_v23 }
 0x986   : > { %13182 = vmatpush1.bf16.msra.mxu0 %v13181_v37  ;;  %v10813_v29 = vsel %vm17179_vm11, %v14635_v39, %v14630_v2 }
 0x987   : > { %13183 = vmatprep.subr.bf16.mxu0 %v14749_v3  ;;  %v13197_v31 = vpack.c.bf16 %v10815_v1, %v10813_v29 }
 0x989   : > { %11690 = vmatmul.mubr.msk.f32.vlgmr.msra.gmra.mrb[20].mxu0 %vm2518_vm15, %v11689_v52 }
 0x98a   : > { %13186 = vmatpush3.bf16.msk.msra.mxu0 %vm15680_vm8, %v13184_v13  ;;  %12547 = vmatprep.mubr.msk.f32.mxu0 %vm14750_vm13, %v14739_v5 }
 0x98b   : > { %13187 = vmatprep.subr.bf16.mxu0 %v14749_v3 }
 0x98e   : > { %13190 = vmatpush3.bf16.msk.msra.mxu0 %vm15680_vm8, %v13188_v21  ;;  %vm17180_vm8 = vcmask 1041408  }
 0x98f   : > { %13192 = vmatprep.subr.bf16.mxu0 %v13191_v57 }
 0x991   : > { %12548 = vmatmul.mubr.msk.f32.vlgmr.msra.gmra.mrb[36].mxu0 %vm2518_vm15, %v11689_v52  ;;  %v10990_v52 = vcombine.high %v10988_v43, %v10988_v43 }
 0x992   : > { %13194 = vmatpush1.bf16.msra.mxu0 %v13193_v9  ;;  %10900 = vmatprep.mubr.f32.mxu0 %v14739_v5 }
 0x993   : > { %13196 = vmatprep.subr.bf16.mxu0 %v13195_v38  ;;  %v11004_v16 = vrot.slane %v10990_v52, %v14886_v6 }
 0x996   : > { %13198 = vmatpush1.bf16.msra.mxu0 %v13197_v31 }
 0x997   : > { %13199 = vmatprep.subr.bf16.mxu0 %v14749_v3 }
 0x999   : > { %11697 = vmatmul.mubr.msk.f32.vlgmr.msra.gmra.mrb[20].mxu0 %vm2518_vm15, %v11696_v24 }
 0x99a   : > { %13202 = vmatpush3.bf16.msk.msra.mxu0 %vm15714_vm9, %v13200_v59  ;;  %12558 = vmatprep.mubr.msk.f32.mxu0 %vm14750_vm13, %v14739_v5  ;;  %vm11034_vm13 = vcmask 553988  }
 0x99b   : > { %13203 = vmatprep.subr.bf16.mxu0 %v14749_v3 }
 0x99e   : > { %13206 = vmatpush3.bf16.msk.msra.mxu0 %vm15714_vm9, %v13204_v61 }
 0x9a1   : > { %12559 = vmatmul.mubr.msk.f32.vlgmr.msra.gmra.mrb[38].mxu0 %vm2518_vm15, %v11696_v24  ;;  %vm11032_vm15 = vcmask 1043458  }
 0x9a2   : > { %vm11033_vm9 = vmor %vm11032_vm15, %vm17180_vm8 }
 0x9a3   : > { %vm11035_vm2 = vmor %vm11034_vm13, %vm11033_vm9 }
 0x9f3   : > { %v9501_v44 = vpop.f32.mrb[22].mxu0 }
 0x9f4   : > { %v12472_v53 = vpop.f32.mrb[23].mxu0 }
 0xa04   : > { %v9645_v17 = vpop.f32.mrb[24].mxu0 }
 0xa05   : > { %v9646_v8 = vadd.f32 %v9645_v17, %v9501_v44  ;;  %v12483_v62 = vpop.f32.mrb[25].mxu0 }
 0xa14   : > { %v9839_v34 = vpop.f32.mrb[26].mxu0 }
 0xa15   : > { %v9845_v45 = vadd.f32 %v9839_v34, %v9646_v8  ;;  %v12494_v22 = vpop.f32.mrb[27].mxu0 }
 0xa24   : > { %v10036_v54 = vpop.f32.mrb[28].mxu0 }
 0xa25   : > { %v10042_v58 = vadd.f32 %v10036_v54, %v9845_v45  ;;  %v12505_v5 = vpop.f32.mrb[29].mxu0 }
 0xa34   : > { %v10185_v27 = vpop.f32.mrb[30].mxu0 }
 0xa35   : > { %v10191_v3 = vadd.f32 %v10185_v27, %v10042_v58  ;;  %v12516_v12 = vpop.f32.mrb[31].mxu0 }
 0xa44   : > { %v10382_v28 = vpop.f32.mrb[32].mxu0 }
 0xa45   : > { %v10388_v10 = vadd.f32 %v10382_v28, %v10191_v3  ;;  %v12527_v15 = vpop.f32.mrb[33].mxu0 }
 0xa54   : > { %v10579_v40 = vpop.f32.mrb[34].mxu0 }
 0xa55   : > { %v10585_v32 = vadd.f32 %v10579_v40, %v10388_v10  ;;  %v12538_v30 = vpop.f32.mrb[35].mxu0 }
 0xa64   : > { %v10776_v19 = vpop.f32.mrb[36].mxu0 }
 0xa65   : > { %v10782_v41 = vadd.f32 %v10776_v19, %v10585_v32  ;;  %v12549_v26 = vpop.f32.mrb[37].mxu0 }
 0xa6c   : > { %v10902_v51 = vpop.f32.mrb[20].mxu0 }
 0xa6d   : > { %v10985_v50 = vadd.f32 %v10983_v0, %v10902_v51  ;;  %v10904_v37 = vpop.f32.mrb[21].mxu0 }
 0xa6e   : > { %v10986_v35 = vadd.f32 %v10983_v0, %v10904_v37 }
 0xa6f   : > { %v11009_v55 = vadd.f32 %v10997_v48, %v10985_v50 }
 0xa70   : > { %v11010_v49 = vadd.f32 %v11005_v46, %v10986_v35 }
 0xa72   : > { %v11015_v56 = vcombine.low %v11009_v55, %v11010_v49 }
 0xa74   : > { %v10973_v13 = vpop.f32.mrb[38].mxu0  ;;  %v11022_v63 = vrot.slane %v11015_v56, %v14886_v6 }
 0xa75   : > { %v10979_v60 = vadd.f32 %v10973_v13, %v10782_v41  ;;  %v12560_v47 = vpop.f32.mrb[39].mxu0 }
 0xa77   : > { %v10987_v11 = vadd.f32 %v10983_v0, %v10979_v60 }
 0xa79   : > { %v11011_v25 = vadd.f32 %v11004_v16, %v10987_v11 }
 0xa7b   : > { %v11029_v42 = vrot.slane %v11011_v25, %v14886_v6 }
 0xa7d   : > { %v11030_v4 = vcombine.low %v11022_v63, %v11029_v42 }
 0xa7f   : > { %11036 = vst.msk [vmem:[%s313_s21] sm:$0x3f] %vm11035_vm2, %v11030_v4 }
 0xa80   : > { %14680 = shalt.err (!%p14677_p7)
}
 0xa81   : > { %s14681_s23 = scalar_lea.hbm %s16910_s10, 96  ;;  %s14685_s25 = scalar_lea.hbm %s16960_s8, 192 }
 0xa82   : > { %p14682_p8 = scmp.ne.s32.totalorder %s16910_s10, %s14681_s23  ;;  %p14686_p1 = scmp.lt.u32.totalorder %s16910_s10, %s16960_s8 }
 0xa83   : > { %p14687_p0 = scmp.lt.u32.totalorder %s14685_s25, %s14681_s23  ;;  %p14689_p6 = scmp.lt.u32.totalorder %s14681_s23, %s16910_s10 }
 0xa84   : > { %p14683_p11 = pnand %p14682_p8, %p17181_p9 }
 0xa85   : > { %p14688_p5 = por %p14687_p0, %p14686_p1 }
 0xa86   : > { %p14684_p13 = pneg %p14683_p11 }
 0xa87   : > { %p14690_p10 = por %p14689_p6, %p14688_p5 }
 0xa89   : > { %p14691_p12 = pnand %p14690_p10, %p14684_p13 }
 0xa8b   : > { %14694 = shalt.err (!%p14691_p12)
}
 0xa8c   : > { %13614 = dma.vmem_to_hbm [thread:$0]  (%p17181_p9), %s16912_s22, 96, %s16910_s10, %s11038_s9  }
 0xa8d PF: > { %p13626_p2 = scmp.ge.s32.totalorder %s14733_s30, 2  ;;  %s11064_s18 = sand.u32 1, %s14721_s27  }
 0xa8e   : > { %p17182_p3 = scmp.ne.s32.totalorder %s16994_s16, 0  ;;  %s11065_s24 = scalar_lea.sflag [#allocation5], %s11064_s18 }
 0xa90   : > { %p13621_p4 = pnand %p13626_p2, %p17182_p3 }
 0xa92   : > { %14716 = dma.done.wait (!%p13621_p4), %s11065_s24, 96  }
 0xa93   : > { %14718 = vsyncadd (!%p13621_p4), %s11065_s24, 4294967200  ;;  %p19_p7 = scmp.ge.s32.totalorder %s14822_s11, 4   ;;  %s17183_s27 = smov %s14725_s28 }
 0xa94   : > { %s17184_s28 = smov %s14729_s29  ;;  %s17185_s29 = smov %s14833_s14 }
 0xa95   : > { %s17186_s30 = smov %s14822_s11  ;;  %21 = sbr.rel (!%p19_p7) target bundleno = 9 (0x9), region = 137 }
 0xa9c   :  { %11070 = vsyncpa [#allocation4], 1 }
 0xa9d   :  { %11072 = vsyncpa [#allocation4 + $0x1], 1 }
 0xa9e   :  { %11073 = vsyncpa [#allocation5], 1 }
 0xa9f   :  { %11075 = vsyncpa [#allocation5 + $0x1], 1 }

</bundles_post_ra>
